<compile_context>
chip_gen: v5e
topology: v5e:2x2
jax: 0.10.0
libtpu: 0.0.40
codegen_flags: <defaults>
</compile_context>

<pallas_src>
import jax
import jax.numpy as jnp
from jax.experimental import pallas as pl
from jax.experimental.pallas import tpu as pltpu

INPUT_SIZE = 28     # fixed by the PyTorch module
HIDDEN = 64
NUM_CLASSES = 10

OUT_PAD = 128       # lane-dense output width (unmasked vst); wrapper slices :10


def lstm_last_step_kernel(x_ref, wih_ref, whh_ref, b_ref, wout_ref, bout_ref,
                          out_ref, pre_ref):
    """LSTM over the full sequence + Linear on the last hidden state.

    x_ref:    (T*Bp, I)     time-major input, flattened (rows t*Bp .. t*Bp+Bp)
    wih_ref:  (I, 4H)       input->gates weights, pre-transposed, gate order [i,f,o,g]
    whh_ref:  (H, 4H)       hidden->gates weights, pre-transposed, gate order [i,f,o,g]
    b_ref:    (1, 4H)       combined bias (b_ih + b_hh), gate order [i,f,o,g]
    wout_ref: (H, OUT_PAD)  output linear weights, zero-padded cols, pre-transposed
    bout_ref: (1, OUT_PAD)  output linear bias, zero-padded
    out_ref:  (Bp, OUT_PAD)
    pre_ref:  (T*Bp, 4H)    VMEM scratch holding the hoisted input projection.
    """
    Bp = out_ref.shape[0]
    H = whh_ref.shape[0]                 # 64
    T = x_ref.shape[0] // Bp
    hp = jax.lax.Precision.HIGHEST       # exact f32 matmul (matches reference)

    # --- Hoisted input projection: one batched GEMM for all timesteps, staged
    # in VMEM scratch so the recurrence reads one (Bp, 4H) slice per step
    # instead of keeping the whole (T*Bp, 4H) slab live in vregs.
    # NOTE: padded batch rows (zero x) pick up the bias here and evolve a
    # nonzero h/c — harmless (no cross-row mixing); wrapper slices them off.
    pre_ref[...] = (jnp.dot(x_ref[...], wih_ref[...],
                            preferred_element_type=jnp.float32, precision=hp)
                    + b_ref[...])

    # h / c live in registers; loop fully unrolled (T is static & small).
    h = jnp.zeros((Bp, H), jnp.float32)
    c = jnp.zeros((Bp, H), jnp.float32)

    for t in range(T):
        # whh_ref[...] is loaded inside the loop on purpose (bounded live range,
        # no 64-vreg weight value pinned across the whole unrolled loop).
        gates = pre_ref[t * Bp:(t + 1) * Bp, :] + jnp.dot(
            h, whh_ref[...], preferred_element_type=jnp.float32,
            precision=hp)                                   # (Bp, 4H) [i|f|o|g]

        # One fused sigmoid over the three contiguous sigmoid gates using the
        # exact identity sigmoid(x) = 0.5*tanh(0.5*x) + 0.5, one tanh for g.
        sig = 0.5 * jnp.tanh(0.5 * gates[:, :3 * H]) + 0.5  # (Bp, 3H) = i|f|o
        g_g = jnp.tanh(gates[:, 3 * H:])                    # (Bp, H)

        i_g = sig[:, 0 * H:1 * H]
        f_g = sig[:, 1 * H:2 * H]
        o_g = sig[:, 2 * H:3 * H]

        c = f_g * c + i_g * g_g
        h = o_g * jnp.tanh(c)

    # out = h_T @ W_out + b_out  (lane-dense padded write; wrapper slices [:, :10])
    out_ref[...] = (jnp.dot(h, wout_ref[...],
                            preferred_element_type=jnp.float32, precision=hp)
                    + bout_ref[...])


def _reorder_ifog(w_t, h):
    """(in_dim, 4h) with PyTorch gate order [i,f,g,o] -> order [i,f,o,g]."""
    i = w_t[:, 0 * h:1 * h]
    f = w_t[:, 1 * h:2 * h]
    g = w_t[:, 2 * h:3 * h]
    o = w_t[:, 3 * h:4 * h]
    return jnp.concatenate([i, f, o, g], axis=1)


def prepare_params(params):
    """One-time weight preprocessing — keep OUT of the per-forward path."""
    wih = _reorder_ifog(params["w_ih"].T, HIDDEN)                     # (I, 4H)
    whh = _reorder_ifog(params["w_hh"].T, HIDDEN)                     # (H, 4H)
    b = _reorder_ifog((params["b_ih"] + params["b_hh"]).reshape(1, -1),
                      HIDDEN)                                         # (1, 4H)
    wout = jnp.zeros((HIDDEN, OUT_PAD), jnp.float32).at[
        :, :NUM_CLASSES].set(params["w_out"].T)                       # (H, 128)
    bout = jnp.zeros((1, OUT_PAD), jnp.float32).at[
        :, :NUM_CLASSES].set(params["b_out"])                         # (1, 128)
    return {"wih": wih, "whh": whh, "b": b, "wout": wout, "bout": bout}


def rnn_forward(x, prep):
    """x: (B, T, INPUT_SIZE) float32, batch_first. prep: prepare_params(...).
    Returns (B, 10)."""
    B, T, I = x.shape
    assert I == INPUT_SIZE
    B_pad = ((B + 7) // 8) * 8

    # Time-major, batch padded to a sublane multiple, flattened to 2D so the
    # hoisted input projection is a single (T*Bp, I) x (I, 4H) GEMM.
    x_tm = jnp.transpose(x, (1, 0, 2))                          # (T, B, I)
    x_tm = jnp.pad(x_tm, ((0, 0), (0, B_pad - B), (0, 0)))      # (T, Bp, I)
    x2d = x_tm.reshape(T * B_pad, I)                            # (T*Bp, I)

    out_p = pl.pallas_call(
        lstm_last_step_kernel,
        out_shape=jax.ShapeDtypeStruct((B_pad, OUT_PAD), jnp.float32),
        in_specs=[pl.BlockSpec(memory_space=pltpu.MemorySpace.VMEM)] * 6,
        out_specs=pl.BlockSpec(memory_space=pltpu.MemorySpace.VMEM),
        scratch_shapes=[pltpu.VMEM((T * B_pad, 4 * HIDDEN), jnp.float32)],
    )(x2d, prep["wih"], prep["whh"], prep["b"], prep["wout"], prep["bout"])

    # TODO(synk): when B (or #sequences) grows, add a leading batch grid axis
    # with dimension_semantics=("parallel",) so v7x's 2 TensorCores are both
    # used, and stream the time dimension via BlockSpec/emit_pipeline once the
    # resident x/pre buffers approach the 64 MiB v7x VMEM budget.
    return out_p[:B, :NUM_CLASSES]


def rnn_forward_ref(x, params):
    """Pure-JAX reference matching PyTorch nn.LSTM + nn.Linear semantics."""
    B, T, _ = x.shape
    H = HIDDEN
    hp = jax.lax.Precision.HIGHEST
    h = jnp.zeros((B, H), jnp.float32)
    c = jnp.zeros((B, H), jnp.float32)
    for t in range(T):
        gates = (jnp.dot(x[:, t, :], params["w_ih"].T, precision=hp)
                 + params["b_ih"]
                 + jnp.dot(h, params["w_hh"].T, precision=hp)
                 + params["b_hh"])
        i_g = jax.nn.sigmoid(gates[:, 0:H])
        f_g = jax.nn.sigmoid(gates[:, H:2 * H])
        g_g = jnp.tanh(gates[:, 2 * H:3 * H])
        o_g = jax.nn.sigmoid(gates[:, 3 * H:4 * H])
        c = f_g * c + i_g * g_g
        h = o_g * jnp.tanh(c)
    return jnp.dot(h, params["w_out"].T, precision=hp) + params["b_out"]


def init_params(key):
    """Deterministic init with PyTorch parameter shapes (gate order i,f,g,o)."""
    ks = jax.random.split(key, 6)
    bound = 1.0 / jnp.sqrt(HIDDEN)
    u = lambda k, shape: jax.random.uniform(k, shape, jnp.float32, -bound, bound)
    return {
        "w_ih": u(ks[0], (4 * HIDDEN, INPUT_SIZE)),
        "w_hh": u(ks[1], (4 * HIDDEN, HIDDEN)),
        "b_ih": u(ks[2], (4 * HIDDEN,)),
        "b_hh": u(ks[3], (4 * HIDDEN,)),
        "w_out": u(ks[4], (NUM_CLASSES, HIDDEN)),
        "b_out": u(ks[5], (NUM_CLASSES,)),
    }


if __name__ == "__main__":
    key = jax.random.PRNGKey(0)
    k_param, k_x = jax.random.split(key)
    params = init_params(k_param)
    prep = prepare_params(params)          # one-time weight prep (off hot path)

    B, T = 4, 8                            # small seq; input size fixed at 28
    x = jax.random.normal(k_x, (B, T, INPUT_SIZE), jnp.float32)

    out = jax.block_until_ready(rnn_forward(x, prep))
    ref = jax.block_until_ready(rnn_forward_ref(x, params))

    assert out.shape == (B, NUM_CLASSES)
    # atol has a little headroom because the kernel uses the (exact) tanh-based
    # sigmoid identity, whose hardware approximation differs by a few ULPs from
    # the exp-based reference sigmoid.
    assert jnp.allclose(out, ref, rtol=1e-5, atol=2e-5), "mismatch vs reference"
    print("KERNEL_OK")
</pallas_src>

<mosaic_0001>
module attributes {stable_mosaic.version = 11 : i64} {
  func.func @lstm_last_step_kernel(%arg0: memref<64x28xf32, #tpu.memory_space<vmem>>, %arg1: memref<28x256xf32, #tpu.memory_space<vmem>>, %arg2: memref<64x256xf32, #tpu.memory_space<vmem>>, %arg3: memref<1x256xf32, #tpu.memory_space<vmem>>, %arg4: memref<64x128xf32, #tpu.memory_space<vmem>>, %arg5: memref<1x128xf32, #tpu.memory_space<vmem>>, %arg6: memref<8x128xf32, #tpu.memory_space<vmem>>, %arg7: memref<64x256xf32, #tpu.memory_space<vmem>>) attributes {dimension_semantics = [], scalar_prefetch = 0 : i64, scratch_operands = 1 : i64, tpu.core_type = #tpu.core_type<tc>} {
    %c0 = arith.constant 0 : index
    %c0_0 = arith.constant 0 : index
    %0 = vector.load %arg0[%c0, %c0_0] : memref<64x28xf32, #tpu.memory_space<vmem>>, vector<64x28xf32>
    %c0_1 = arith.constant 0 : index
    %c0_2 = arith.constant 0 : index
    %1 = vector.load %arg1[%c0_1, %c0_2] : memref<28x256xf32, #tpu.memory_space<vmem>>, vector<28x256xf32>
    %cst = arith.constant dense<0.000000e+00> : vector<64x256xf32>
    %2 = tpu.matmul %0, %1, %cst {dimension_numbers = #tpu.dot_dimension_numbers<[1], [0], [0], [1], [0, 0, 1, 1], [], []>, precision = #tpu.contract_precision<fp32>} : vector<64x28xf32>, vector<28x256xf32>, vector<64x256xf32> -> vector<64x256xf32>
    %c0_3 = arith.constant 0 : index
    %c0_4 = arith.constant 0 : index
    %3 = vector.load %arg3[%c0_3, %c0_4] : memref<1x256xf32, #tpu.memory_space<vmem>>, vector<1x256xf32>
    %4 = vector.broadcast %3 : vector<1x256xf32> to vector<64x256xf32>
    %5 = arith.addf %2, %4 : vector<64x256xf32>
    %c0_5 = arith.constant 0 : index
    %c0_6 = arith.constant 0 : index
    %6 = vector.load %arg7[%c0_5, %c0_6] : memref<64x256xf32, #tpu.memory_space<vmem>>, vector<64x256xf32>
    tpu.vector_store %arg7[%c0_5, %c0_6], %5 {strides = array<i32>} : memref<64x256xf32, #tpu.memory_space<vmem>>, vector<64x256xf32>,
    %cst_7 = arith.constant 0.000000e+00 : f32
    %7 = vector.broadcast %cst_7 : f32 to vector<8x64xf32>
    %cst_8 = arith.constant 0.000000e+00 : f32
    %8 = vector.broadcast %cst_8 : f32 to vector<8x64xf32>
    %c0_9 = arith.constant 0 : index
    %c0_10 = arith.constant 0 : index
    %9 = vector.load %arg7[%c0_9, %c0_10] : memref<64x256xf32, #tpu.memory_space<vmem>>, vector<8x256xf32>
    %c0_11 = arith.constant 0 : index
    %c0_12 = arith.constant 0 : index
    %10 = vector.load %arg2[%c0_11, %c0_12] : memref<64x256xf32, #tpu.memory_space<vmem>>, vector<64x256xf32>
    %cst_13 = arith.constant dense<0.000000e+00> : vector<8x256xf32>
    %11 = tpu.matmul %7, %10, %cst_13 {dimension_numbers = #tpu.dot_dimension_numbers<[1], [0], [0], [1], [0, 0, 1, 1], [], []>, precision = #tpu.contract_precision<fp32>} : vector<8x64xf32>, vector<64x256xf32>, vector<8x256xf32> -> vector<8x256xf32>
    %12 = arith.addf %9, %11 : vector<8x256xf32>
    %13 = vector.extract_strided_slice %12 {offsets = [0, 0], sizes = [8, 192], strides = [1, 1]} : vector<8x256xf32> to vector<8x192xf32>
    %cst_14 = arith.constant 5.000000e-01 : f32
    %14 = vector.broadcast %cst_14 : f32 to vector<8x192xf32>
    %15 = arith.mulf %14, %13 : vector<8x192xf32>
    %16 = math.tanh %15 : vector<8x192xf32>
    %cst_15 = arith.constant 5.000000e-01 : f32
    %17 = vector.broadcast %cst_15 : f32 to vector<8x192xf32>
    %18 = arith.mulf %17, %16 : vector<8x192xf32>
    %cst_16 = arith.constant 5.000000e-01 : f32
    %19 = vector.broadcast %cst_16 : f32 to vector<8x192xf32>
    %20 = arith.addf %18, %19 : vector<8x192xf32>
    %21 = vector.extract_strided_slice %12 {offsets = [0, 192], sizes = [8, 64], strides = [1, 1]} : vector<8x256xf32> to vector<8x64xf32>
    %22 = math.tanh %21 : vector<8x64xf32>
    %23 = vector.extract_strided_slice %20 {offsets = [0, 0], sizes = [8, 64], strides = [1, 1]} : vector<8x192xf32> to vector<8x64xf32>
    %24 = vector.extract_strided_slice %20 {offsets = [0, 64], sizes = [8, 64], strides = [1, 1]} : vector<8x192xf32> to vector<8x64xf32>
    %25 = vector.extract_strided_slice %20 {offsets = [0, 128], sizes = [8, 64], strides = [1, 1]} : vector<8x192xf32> to vector<8x64xf32>
    %26 = arith.mulf %24, %8 : vector<8x64xf32>
    %27 = arith.mulf %23, %22 : vector<8x64xf32>
    %28 = arith.addf %26, %27 : vector<8x64xf32>
    %29 = math.tanh %28 : vector<8x64xf32>
    %30 = arith.mulf %25, %29 : vector<8x64xf32>
    %c8 = arith.constant 8 : index
    %c0_17 = arith.constant 0 : index
    %31 = vector.load %arg7[%c8, %c0_17] : memref<64x256xf32, #tpu.memory_space<vmem>>, vector<8x256xf32>
    %c0_18 = arith.constant 0 : index
    %c0_19 = arith.constant 0 : index
    %32 = vector.load %arg2[%c0_18, %c0_19] : memref<64x256xf32, #tpu.memory_space<vmem>>, vector<64x256xf32>
    %cst_20 = arith.constant dense<0.000000e+00> : vector<8x256xf32>
    %33 = tpu.matmul %30, %32, %cst_20 {dimension_numbers = #tpu.dot_dimension_numbers<[1], [0], [0], [1], [0, 0, 1, 1], [], []>, precision = #tpu.contract_precision<fp32>} : vector<8x64xf32>, vector<64x256xf32>, vector<8x256xf32> -> vector<8x256xf32>
    %34 = arith.addf %31, %33 : vector<8x256xf32>
    %35 = vector.extract_strided_slice %34 {offsets = [0, 0], sizes = [8, 192], strides = [1, 1]} : vector<8x256xf32> to vector<8x192xf32>
    %cst_21 = arith.constant 5.000000e-01 : f32
    %36 = vector.broadcast %cst_21 : f32 to vector<8x192xf32>
    %37 = arith.mulf %36, %35 : vector<8x192xf32>
    %38 = math.tanh %37 : vector<8x192xf32>
    %cst_22 = arith.constant 5.000000e-01 : f32
    %39 = vector.broadcast %cst_22 : f32 to vector<8x192xf32>
    %40 = arith.mulf %39, %38 : vector<8x192xf32>
    %cst_23 = arith.constant 5.000000e-01 : f32
    %41 = vector.broadcast %cst_23 : f32 to vector<8x192xf32>
    %42 = arith.addf %40, %41 : vector<8x192xf32>
    %43 = vector.extract_strided_slice %34 {offsets = [0, 192], sizes = [8, 64], strides = [1, 1]} : vector<8x256xf32> to vector<8x64xf32>
    %44 = math.tanh %43 : vector<8x64xf32>
    %45 = vector.extract_strided_slice %42 {offsets = [0, 0], sizes = [8, 64], strides = [1, 1]} : vector<8x192xf32> to vector<8x64xf32>
    %46 = vector.extract_strided_slice %42 {offsets = [0, 64], sizes = [8, 64], strides = [1, 1]} : vector<8x192xf32> to vector<8x64xf32>
    %47 = vector.extract_strided_slice %42 {offsets = [0, 128], sizes = [8, 64], strides = [1, 1]} : vector<8x192xf32> to vector<8x64xf32>
    %48 = arith.mulf %46, %28 : vector<8x64xf32>
    %49 = arith.mulf %45, %44 : vector<8x64xf32>
    %50 = arith.addf %48, %49 : vector<8x64xf32>
    %51 = math.tanh %50 : vector<8x64xf32>
    %52 = arith.mulf %47, %51 : vector<8x64xf32>
    %c16 = arith.constant 16 : index
    %c0_24 = arith.constant 0 : index
    %53 = vector.load %arg7[%c16, %c0_24] : memref<64x256xf32, #tpu.memory_space<vmem>>, vector<8x256xf32>
    %c0_25 = arith.constant 0 : index
    %c0_26 = arith.constant 0 : index
    %54 = vector.load %arg2[%c0_25, %c0_26] : memref<64x256xf32, #tpu.memory_space<vmem>>, vector<64x256xf32>
    %cst_27 = arith.constant dense<0.000000e+00> : vector<8x256xf32>
    %55 = tpu.matmul %52, %54, %cst_27 {dimension_numbers = #tpu.dot_dimension_numbers<[1], [0], [0], [1], [0, 0, 1, 1], [], []>, precision = #tpu.contract_precision<fp32>} : vector<8x64xf32>, vector<64x256xf32>, vector<8x256xf32> -> vector<8x256xf32>
    %56 = arith.addf %53, %55 : vector<8x256xf32>
    %57 = vector.extract_strided_slice %56 {offsets = [0, 0], sizes = [8, 192], strides = [1, 1]} : vector<8x256xf32> to vector<8x192xf32>
    %cst_28 = arith.constant 5.000000e-01 : f32
    %58 = vector.broadcast %cst_28 : f32 to vector<8x192xf32>
    %59 = arith.mulf %58, %57 : vector<8x192xf32>
    %60 = math.tanh %59 : vector<8x192xf32>
    %cst_29 = arith.constant 5.000000e-01 : f32
    %61 = vector.broadcast %cst_29 : f32 to vector<8x192xf32>
    %62 = arith.mulf %61, %60 : vector<8x192xf32>
    %cst_30 = arith.constant 5.000000e-01 : f32
    %63 = vector.broadcast %cst_30 : f32 to vector<8x192xf32>
    %64 = arith.addf %62, %63 : vector<8x192xf32>
    %65 = vector.extract_strided_slice %56 {offsets = [0, 192], sizes = [8, 64], strides = [1, 1]} : vector<8x256xf32> to vector<8x64xf32>
    %66 = math.tanh %65 : vector<8x64xf32>
    %67 = vector.extract_strided_slice %64 {offsets = [0, 0], sizes = [8, 64], strides = [1, 1]} : vector<8x192xf32> to vector<8x64xf32>
    %68 = vector.extract_strided_slice %64 {offsets = [0, 64], sizes = [8, 64], strides = [1, 1]} : vector<8x192xf32> to vector<8x64xf32>
    %69 = vector.extract_strided_slice %64 {offsets = [0, 128], sizes = [8, 64], strides = [1, 1]} : vector<8x192xf32> to vector<8x64xf32>
    %70 = arith.mulf %68, %50 : vector<8x64xf32>
    %71 = arith.mulf %67, %66 : vector<8x64xf32>
    %72 = arith.addf %70, %71 : vector<8x64xf32>
    %73 = math.tanh %72 : vector<8x64xf32>
    %74 = arith.mulf %69, %73 : vector<8x64xf32>
    %c24 = arith.constant 24 : index
    %c0_31 = arith.constant 0 : index
    %75 = vector.load %arg7[%c24, %c0_31] : memref<64x256xf32, #tpu.memory_space<vmem>>, vector<8x256xf32>
    %c0_32 = arith.constant 0 : index
    %c0_33 = arith.constant 0 : index
    %76 = vector.load %arg2[%c0_32, %c0_33] : memref<64x256xf32, #tpu.memory_space<vmem>>, vector<64x256xf32>
    %cst_34 = arith.constant dense<0.000000e+00> : vector<8x256xf32>
    %77 = tpu.matmul %74, %76, %cst_34 {dimension_numbers = #tpu.dot_dimension_numbers<[1], [0], [0], [1], [0, 0, 1, 1], [], []>, precision = #tpu.contract_precision<fp32>} : vector<8x64xf32>, vector<64x256xf32>, vector<8x256xf32> -> vector<8x256xf32>
    %78 = arith.addf %75, %77 : vector<8x256xf32>
    %79 = vector.extract_strided_slice %78 {offsets = [0, 0], sizes = [8, 192], strides = [1, 1]} : vector<8x256xf32> to vector<8x192xf32>
    %cst_35 = arith.constant 5.000000e-01 : f32
    %80 = vector.broadcast %cst_35 : f32 to vector<8x192xf32>
    %81 = arith.mulf %80, %79 : vector<8x192xf32>
    %82 = math.tanh %81 : vector<8x192xf32>
    %cst_36 = arith.constant 5.000000e-01 : f32
    %83 = vector.broadcast %cst_36 : f32 to vector<8x192xf32>
    %84 = arith.mulf %83, %82 : vector<8x192xf32>
    %cst_37 = arith.constant 5.000000e-01 : f32
    %85 = vector.broadcast %cst_37 : f32 to vector<8x192xf32>
    %86 = arith.addf %84, %85 : vector<8x192xf32>
    %87 = vector.extract_strided_slice %78 {offsets = [0, 192], sizes = [8, 64], strides = [1, 1]} : vector<8x256xf32> to vector<8x64xf32>
    %88 = math.tanh %87 : vector<8x64xf32>
    %89 = vector.extract_strided_slice %86 {offsets = [0, 0], sizes = [8, 64], strides = [1, 1]} : vector<8x192xf32> to vector<8x64xf32>
    %90 = vector.extract_strided_slice %86 {offsets = [0, 64], sizes = [8, 64], strides = [1, 1]} : vector<8x192xf32> to vector<8x64xf32>
    %91 = vector.extract_strided_slice %86 {offsets = [0, 128], sizes = [8, 64], strides = [1, 1]} : vector<8x192xf32> to vector<8x64xf32>
    %92 = arith.mulf %90, %72 : vector<8x64xf32>
    %93 = arith.mulf %89, %88 : vector<8x64xf32>
    %94 = arith.addf %92, %93 : vector<8x64xf32>
    %95 = math.tanh %94 : vector<8x64xf32>
    %96 = arith.mulf %91, %95 : vector<8x64xf32>
    %c32 = arith.constant 32 : index
    %c0_38 = arith.constant 0 : index
    %97 = vector.load %arg7[%c32, %c0_38] : memref<64x256xf32, #tpu.memory_space<vmem>>, vector<8x256xf32>
    %c0_39 = arith.constant 0 : index
    %c0_40 = arith.constant 0 : index
    %98 = vector.load %arg2[%c0_39, %c0_40] : memref<64x256xf32, #tpu.memory_space<vmem>>, vector<64x256xf32>
    %cst_41 = arith.constant dense<0.000000e+00> : vector<8x256xf32>
    %99 = tpu.matmul %96, %98, %cst_41 {dimension_numbers = #tpu.dot_dimension_numbers<[1], [0], [0], [1], [0, 0, 1, 1], [], []>, precision = #tpu.contract_precision<fp32>} : vector<8x64xf32>, vector<64x256xf32>, vector<8x256xf32> -> vector<8x256xf32>
    %100 = arith.addf %97, %99 : vector<8x256xf32>
    %101 = vector.extract_strided_slice %100 {offsets = [0, 0], sizes = [8, 192], strides = [1, 1]} : vector<8x256xf32> to vector<8x192xf32>
    %cst_42 = arith.constant 5.000000e-01 : f32
    %102 = vector.broadcast %cst_42 : f32 to vector<8x192xf32>
    %103 = arith.mulf %102, %101 : vector<8x192xf32>
    %104 = math.tanh %103 : vector<8x192xf32>
    %cst_43 = arith.constant 5.000000e-01 : f32
    %105 = vector.broadcast %cst_43 : f32 to vector<8x192xf32>
    %106 = arith.mulf %105, %104 : vector<8x192xf32>
    %cst_44 = arith.constant 5.000000e-01 : f32
    %107 = vector.broadcast %cst_44 : f32 to vector<8x192xf32>
    %108 = arith.addf %106, %107 : vector<8x192xf32>
    %109 = vector.extract_strided_slice %100 {offsets = [0, 192], sizes = [8, 64], strides = [1, 1]} : vector<8x256xf32> to vector<8x64xf32>
    %110 = math.tanh %109 : vector<8x64xf32>
    %111 = vector.extract_strided_slice %108 {offsets = [0, 0], sizes = [8, 64], strides = [1, 1]} : vector<8x192xf32> to vector<8x64xf32>
    %112 = vector.extract_strided_slice %108 {offsets = [0, 64], sizes = [8, 64], strides = [1, 1]} : vector<8x192xf32> to vector<8x64xf32>
    %113 = vector.extract_strided_slice %108 {offsets = [0, 128], sizes = [8, 64], strides = [1, 1]} : vector<8x192xf32> to vector<8x64xf32>
    %114 = arith.mulf %112, %94 : vector<8x64xf32>
    %115 = arith.mulf %111, %110 : vector<8x64xf32>
    %116 = arith.addf %114, %115 : vector<8x64xf32>
    %117 = math.tanh %116 : vector<8x64xf32>
    %118 = arith.mulf %113, %117 : vector<8x64xf32>
    %c40 = arith.constant 40 : index
    %c0_45 = arith.constant 0 : index
    %119 = vector.load %arg7[%c40, %c0_45] : memref<64x256xf32, #tpu.memory_space<vmem>>, vector<8x256xf32>
    %c0_46 = arith.constant 0 : index
    %c0_47 = arith.constant 0 : index
    %120 = vector.load %arg2[%c0_46, %c0_47] : memref<64x256xf32, #tpu.memory_space<vmem>>, vector<64x256xf32>
    %cst_48 = arith.constant dense<0.000000e+00> : vector<8x256xf32>
    %121 = tpu.matmul %118, %120, %cst_48 {dimension_numbers = #tpu.dot_dimension_numbers<[1], [0], [0], [1], [0, 0, 1, 1], [], []>, precision = #tpu.contract_precision<fp32>} : vector<8x64xf32>, vector<64x256xf32>, vector<8x256xf32> -> vector<8x256xf32>
    %122 = arith.addf %119, %121 : vector<8x256xf32>
    %123 = vector.extract_strided_slice %122 {offsets = [0, 0], sizes = [8, 192], strides = [1, 1]} : vector<8x256xf32> to vector<8x192xf32>
    %cst_49 = arith.constant 5.000000e-01 : f32
    %124 = vector.broadcast %cst_49 : f32 to vector<8x192xf32>
    %125 = arith.mulf %124, %123 : vector<8x192xf32>
    %126 = math.tanh %125 : vector<8x192xf32>
    %cst_50 = arith.constant 5.000000e-01 : f32
    %127 = vector.broadcast %cst_50 : f32 to vector<8x192xf32>
    %128 = arith.mulf %127, %126 : vector<8x192xf32>
    %cst_51 = arith.constant 5.000000e-01 : f32
    %129 = vector.broadcast %cst_51 : f32 to vector<8x192xf32>
    %130 = arith.addf %128, %129 : vector<8x192xf32>
    %131 = vector.extract_strided_slice %122 {offsets = [0, 192], sizes = [8, 64], strides = [1, 1]} : vector<8x256xf32> to vector<8x64xf32>
    %132 = math.tanh %131 : vector<8x64xf32>
    %133 = vector.extract_strided_slice %130 {offsets = [0, 0], sizes = [8, 64], strides = [1, 1]} : vector<8x192xf32> to vector<8x64xf32>
    %134 = vector.extract_strided_slice %130 {offsets = [0, 64], sizes = [8, 64], strides = [1, 1]} : vector<8x192xf32> to vector<8x64xf32>
    %135 = vector.extract_strided_slice %130 {offsets = [0, 128], sizes = [8, 64], strides = [1, 1]} : vector<8x192xf32> to vector<8x64xf32>
    %136 = arith.mulf %134, %116 : vector<8x64xf32>
    %137 = arith.mulf %133, %132 : vector<8x64xf32>
    %138 = arith.addf %136, %137 : vector<8x64xf32>
    %139 = math.tanh %138 : vector<8x64xf32>
    %140 = arith.mulf %135, %139 : vector<8x64xf32>
    %c48 = arith.constant 48 : index
    %c0_52 = arith.constant 0 : index
    %141 = vector.load %arg7[%c48, %c0_52] : memref<64x256xf32, #tpu.memory_space<vmem>>, vector<8x256xf32>
    %c0_53 = arith.constant 0 : index
    %c0_54 = arith.constant 0 : index
    %142 = vector.load %arg2[%c0_53, %c0_54] : memref<64x256xf32, #tpu.memory_space<vmem>>, vector<64x256xf32>
    %cst_55 = arith.constant dense<0.000000e+00> : vector<8x256xf32>
    %143 = tpu.matmul %140, %142, %cst_55 {dimension_numbers = #tpu.dot_dimension_numbers<[1], [0], [0], [1], [0, 0, 1, 1], [], []>, precision = #tpu.contract_precision<fp32>} : vector<8x64xf32>, vector<64x256xf32>, vector<8x256xf32> -> vector<8x256xf32>
    %144 = arith.addf %141, %143 : vector<8x256xf32>
    %145 = vector.extract_strided_slice %144 {offsets = [0, 0], sizes = [8, 192], strides = [1, 1]} : vector<8x256xf32> to vector<8x192xf32>
    %cst_56 = arith.constant 5.000000e-01 : f32
    %146 = vector.broadcast %cst_56 : f32 to vector<8x192xf32>
    %147 = arith.mulf %146, %145 : vector<8x192xf32>
    %148 = math.tanh %147 : vector<8x192xf32>
    %cst_57 = arith.constant 5.000000e-01 : f32
    %149 = vector.broadcast %cst_57 : f32 to vector<8x192xf32>
    %150 = arith.mulf %149, %148 : vector<8x192xf32>
    %cst_58 = arith.constant 5.000000e-01 : f32
    %151 = vector.broadcast %cst_58 : f32 to vector<8x192xf32>
    %152 = arith.addf %150, %151 : vector<8x192xf32>
    %153 = vector.extract_strided_slice %144 {offsets = [0, 192], sizes = [8, 64], strides = [1, 1]} : vector<8x256xf32> to vector<8x64xf32>
    %154 = math.tanh %153 : vector<8x64xf32>
    %155 = vector.extract_strided_slice %152 {offsets = [0, 0], sizes = [8, 64], strides = [1, 1]} : vector<8x192xf32> to vector<8x64xf32>
    %156 = vector.extract_strided_slice %152 {offsets = [0, 64], sizes = [8, 64], strides = [1, 1]} : vector<8x192xf32> to vector<8x64xf32>
    %157 = vector.extract_strided_slice %152 {offsets = [0, 128], sizes = [8, 64], strides = [1, 1]} : vector<8x192xf32> to vector<8x64xf32>
    %158 = arith.mulf %156, %138 : vector<8x64xf32>
    %159 = arith.mulf %155, %154 : vector<8x64xf32>
    %160 = arith.addf %158, %159 : vector<8x64xf32>
    %161 = math.tanh %160 : vector<8x64xf32>
    %162 = arith.mulf %157, %161 : vector<8x64xf32>
    %c56 = arith.constant 56 : index
    %c0_59 = arith.constant 0 : index
    %163 = vector.load %arg7[%c56, %c0_59] : memref<64x256xf32, #tpu.memory_space<vmem>>, vector<8x256xf32>
    %c0_60 = arith.constant 0 : index
    %c0_61 = arith.constant 0 : index
    %164 = vector.load %arg2[%c0_60, %c0_61] : memref<64x256xf32, #tpu.memory_space<vmem>>, vector<64x256xf32>
    %cst_62 = arith.constant dense<0.000000e+00> : vector<8x256xf32>
    %165 = tpu.matmul %162, %164, %cst_62 {dimension_numbers = #tpu.dot_dimension_numbers<[1], [0], [0], [1], [0, 0, 1, 1], [], []>, precision = #tpu.contract_precision<fp32>} : vector<8x64xf32>, vector<64x256xf32>, vector<8x256xf32> -> vector<8x256xf32>
    %166 = arith.addf %163, %165 : vector<8x256xf32>
    %167 = vector.extract_strided_slice %166 {offsets = [0, 0], sizes = [8, 192], strides = [1, 1]} : vector<8x256xf32> to vector<8x192xf32>
    %cst_63 = arith.constant 5.000000e-01 : f32
    %168 = vector.broadcast %cst_63 : f32 to vector<8x192xf32>
    %169 = arith.mulf %168, %167 : vector<8x192xf32>
    %170 = math.tanh %169 : vector<8x192xf32>
    %cst_64 = arith.constant 5.000000e-01 : f32
    %171 = vector.broadcast %cst_64 : f32 to vector<8x192xf32>
    %172 = arith.mulf %171, %170 : vector<8x192xf32>
    %cst_65 = arith.constant 5.000000e-01 : f32
    %173 = vector.broadcast %cst_65 : f32 to vector<8x192xf32>
    %174 = arith.addf %172, %173 : vector<8x192xf32>
    %175 = vector.extract_strided_slice %166 {offsets = [0, 192], sizes = [8, 64], strides = [1, 1]} : vector<8x256xf32> to vector<8x64xf32>
    %176 = math.tanh %175 : vector<8x64xf32>
    %177 = vector.extract_strided_slice %174 {offsets = [0, 0], sizes = [8, 64], strides = [1, 1]} : vector<8x192xf32> to vector<8x64xf32>
    %178 = vector.extract_strided_slice %174 {offsets = [0, 64], sizes = [8, 64], strides = [1, 1]} : vector<8x192xf32> to vector<8x64xf32>
    %179 = vector.extract_strided_slice %174 {offsets = [0, 128], sizes = [8, 64], strides = [1, 1]} : vector<8x192xf32> to vector<8x64xf32>
    %180 = arith.mulf %178, %160 : vector<8x64xf32>
    %181 = arith.mulf %177, %176 : vector<8x64xf32>
    %182 = arith.addf %180, %181 : vector<8x64xf32>
    %183 = math.tanh %182 : vector<8x64xf32>
    %184 = arith.mulf %179, %183 : vector<8x64xf32>
    %c0_66 = arith.constant 0 : index
    %c0_67 = arith.constant 0 : index
    %185 = vector.load %arg4[%c0_66, %c0_67] : memref<64x128xf32, #tpu.memory_space<vmem>>, vector<64x128xf32>
    %cst_68 = arith.constant dense<0.000000e+00> : vector<8x128xf32>
    %186 = tpu.matmul %184, %185, %cst_68 {dimension_numbers = #tpu.dot_dimension_numbers<[1], [0], [0], [1], [0, 0, 1, 1], [], []>, precision = #tpu.contract_precision<fp32>} : vector<8x64xf32>, vector<64x128xf32>, vector<8x128xf32> -> vector<8x128xf32>
    %c0_69 = arith.constant 0 : index
    %c0_70 = arith.constant 0 : index
    %187 = vector.load %arg5[%c0_69, %c0_70] : memref<1x128xf32, #tpu.memory_space<vmem>>, vector<1x128xf32>
    %188 = vector.broadcast %187 : vector<1x128xf32> to vector<8x128xf32>
    %189 = arith.addf %186, %188 : vector<8x128xf32>
    %c0_71 = arith.constant 0 : index
    %c0_72 = arith.constant 0 : index
    %190 = vector.load %arg6[%c0_71, %c0_72] : memref<8x128xf32, #tpu.memory_space<vmem>>, vector<8x128xf32>
    tpu.vector_store %arg6[%c0_71, %c0_72], %189 {strides = array<i32>} : memref<8x128xf32, #tpu.memory_space<vmem>>, vector<8x128xf32>,
    return
  }
}

</mosaic_0001>

<bundles_post_ra>
// kernel: tpu_custom_call.1
= control target key start
LH: loop header
LB: loop body
LE: loop exit
PB: predicated region body
PF: predicated region fallthrough
CT: control target
= control target key end

     0   :  { %11 = vsyncpa [#allocation4], 0  ;;  %s7197_s0 = inlined_call_operand.vmem [shape: f32[64,28], index: 0, kind: input, shape index: {}]   ;;  %s7198_s1 = inlined_call_operand.vmem [shape: f32[28,256], index: 1, kind: input, shape index: {}]   ;;  %s7199_s2 = inlined_call_operand.hbm [shape: f32[64,256], index: 2, kind: input, shape index: {}]   ;;  %s7200_s3 = inlined_call_operand.vmem [shape: f32[1,256], index: 3, kind: input, shape index: {}]   ;;  %s7201_s4 = inlined_call_operand.hbm [shape: f32[64,128], index: 4, kind: input, shape index: {}]   ;;  %s7202_s5 = inlined_call_operand.vmem [shape: f32[1,128], index: 5, kind: input, shape index: {}]   ;;  %s7203_s6 = inlined_call_operand.hbm [shape: f32[8,128], index: 6, kind: output, shape index: {}]  }
   0x1   :  { %12 = vsyncpa [#allocation7], 0 }
   0x2   :  { %13 = vsyncpa [#allocation5], 0  ;;  %s22_s23 = sshll.u32 %s7199_s2, 4  ;;  %s5434_s24 = smov [#allocation3]   ;;  %s23_s23 = int_to_ptr.hbm [resolvable:$true] %s22_s23 }
   0x3   :  { %s24_s25 = sshll.u32 %s5434_s24, 4  ;;  %s37_s28 = sshll.u32 %s7201_s4, 4  ;;  %s25_s25 = int_to_ptr.vmem [resolvable:$true] %s24_s25  ;;  %s38_s28 = int_to_ptr.hbm [resolvable:$true] %s37_s28 }
   0x4   :  { %s5435_s29 = smov 256   ;;  %s5436_s30 = smov 16  }
   0x5   :  { %30 = dma.hbm_to_vmem [thread:$0]  %s23_s23, 2048, %s25_s25, [#allocation4], %s5435_s29, %s5435_s29, %s5436_s30  }
   0x6   :  { %s5437_s7 = smov [#allocation6]   ;;  %s5438_s9 = smov 128  }
   0x7   :  { %s39_s8 = sshll.u32 %s5437_s7, 4  ;;  %s5439_s10 = smov 8   ;;  %s40_s8 = int_to_ptr.vmem [resolvable:$true] %s39_s8 }
   0x8   :  { %45 = dma.hbm_to_vmem [thread:$0]  %s38_s28, 1024, %s40_s8, [#allocation7], %s5438_s9, %s5438_s9, %s5439_s10  }
   0x9   :  { %5428 = dma.done.wait [#allocation4], 2048  }
   0xa   :  { %5429 = vsyncadd [#allocation4], 4294965248 }
   0xb   :  { %5430 = dma.done.wait [#allocation7], 1024  }
   0xc   :  { %5431 = vsyncadd [#allocation7], 4294966272  ;;  %vm103_vm0 = vcmask 1043456   ;;  %vm78_vm1 = vcmask 228352   ;;  %v70_v0 = vld [vmem:[%s7198_s1 + $0x30] sm:$0xf] }
   0xd   :  { %v68_v1 = vld [vmem:[%s7198_s1 + $0x20] sm:$0xff]  ;;  %v66_v2 = vld [vmem:[%s7198_s1 + $0x10] sm:$0xff]  ;;  %v105_v3 = vsel %vm103_vm0, %v70_v0, 0  ;;  %v63_v8 = vld [vmem:[%s7197_s0 + $0x38] sm:$0xff]  ;;  %vm948_vm2 = vcmask 523264   ;;  %s5442_s17 = smov [#allocation8]  }
   0xe   :  { %v5494_v4 = vand.u32 4294901760, %v68_v1  ;;  %v5496_v5 = vand.u32 4294901760, %v66_v2  ;;  %v64_v6 = vld [vmem:[%s7198_s1] sm:$0xff]  ;;  %v5507_v9 = vand.u32 4294901760, %v105_v3  ;;  %v101_v12 = vsel %vm78_vm1, %v63_v8, 0  ;;  %v57_v13 = vld [vmem:[%s7197_s0 + $0x8] sm:$0xff] }
   0xf   :  { %v56_v7 = vld [vmem:[%s7197_s0] sm:$0xff]  ;;  %v5509_v10 = vand.u32 4294901760, %v64_v6  ;;  %v5518_v15 = vand.u32 4294901760, %v101_v12  ;;  %v71_v18 = vld [vmem:[%s7198_s1 + $0x38] sm:$0xf]  ;;  %v83_v21 = vsel %vm78_vm1, %v57_v13, 0 }
  0x10   :  { %v80_v11 = vsel %vm78_vm1, %v56_v7, 0  ;;  %v214_v16 = vsub.f32 %v68_v1, %v5494_v4  ;;  %v5522_v17 = vsub.f32 %v66_v2, %v5496_v5  ;;  %123 = vmatpush.msra.mxu0 %v5507_v9  ;;  %5274 = vmatpush.msra.mxu2 %v5507_v9  ;;  %v208_v19 = vsub.f32 %v105_v3, %v5507_v9  ;;  %v58_v27 = vld [vmem:[%s7197_s0 + $0x10] sm:$0xff]  ;;  %v69_v41 = vld [vmem:[%s7198_s1 + $0x28] sm:$0xff]  ;;  %v59_v49 = vld [vmem:[%s7197_s0 + $0x18] sm:$0xff]  ;;  %s5261_s18 = sshll.u32 %s5442_s17, 4  ;;  %s5263_s21 = sshll.u32 %s7203_s6, 4  ;;  %s5262_s18 = int_to_ptr.vmem [resolvable:$true] %s5261_s18  ;;  %s5264_s21 = int_to_ptr.hbm [resolvable:$true] %s5263_s21 }
  0x11   :  { %v5516_v14 = vand.u32 4294901760, %v80_v11  ;;  %v5531_v20 = vsub.f32 %v64_v6, %v5509_v10  ;;  %v108_v22 = vsel %vm103_vm0, %v71_v18, 0  ;;  %v5539_v24 = vsub.f32 %v101_v12, %v5518_v15  ;;  %v60_v63 = vld [vmem:[%s7197_s0 + $0x20] sm:$0xff]  ;;  %v67_v3 = vld [vmem:[%s7198_s1 + $0x18] sm:$0xff] }
  0x12   :  { %v215_v25 = vand.u32 4294901760, %v214_v16  ;;  %v221_v26 = vand.u32 4294901760, %v5522_v17  ;;  %125 = vmatpush.msra.mxu0 %v5494_v4  ;;  %5275 = vmatpush.msra.mxu2 %v5494_v4  ;;  %v209_v28 = vand.u32 4294901760, %v208_v19  ;;  %v5548_v30 = vand.u32 4294901760, %v83_v21 }
  0x13   :  { %v5536_v23 = vsub.f32 %v80_v11, %v5516_v14  ;;  %v227_v29 = vand.u32 4294901760, %v5531_v20  ;;  %v5554_v32 = vand.u32 4294901760, %v5539_v24  ;;  %v5556_v34 = vand.u32 4294901760, %v108_v22 }
  0x14   :  { %v216_v33 = vsub.f32 %v214_v16, %v215_v25  ;;  %127 = vmatpush.msra.mxu0 %v5496_v5  ;;  %5276 = vmatpush.msra.mxu2 %v5496_v5  ;;  %v210_v35 = vsub.f32 %v208_v19, %v209_v28  ;;  %v222_v36 = vsub.f32 %v5522_v17, %v221_v26  ;;  %v86_v38 = vsel %vm78_vm1, %v58_v27, 0 }
  0x15   :  { %v5551_v31 = vand.u32 4294901760, %v5536_v23  ;;  %v5562_v37 = vsub.f32 %v83_v21, %v5548_v30  ;;  %v189_v40 = vsub.f32 %v5539_v24, %v5554_v32  ;;  %v228_v44 = vsub.f32 %v5531_v20, %v227_v29 }
  0x16   :  { %129 = vmatpush.msra.mxu0 %v5509_v10  ;;  %5277 = vmatpush.msra.mxu2 %v5509_v10  ;;  %v211_v42 = vand.u32 4294901760, %v210_v35  ;;  %v217_v43 = vand.u32 4294901760, %v216_v33  ;;  %v5584_v48 = vand.u32 4294901760, %v86_v38  ;;  %v223_v50 = vand.u32 4294901760, %v222_v36  ;;  %v65_v33 = vld [vmem:[%s7198_s1 + $0x8] sm:$0xff] }
  0x17   :  { %v133_v39 = vsub.f32 %v5536_v23, %v5551_v31  ;;  %v5578_v45 = vand.u32 4294901760, %v5562_v37  ;;  %v5582_v47 = vand.u32 4294901760, %v189_v40  ;;  %v5590_v51 = vsub.f32 %v108_v22, %v5556_v34 }
  0x18   :  { %278 = vmatpush.msrb.mxu2 %v208_v19  ;;  %413 = vmatpush.msrb.mxu0 %v209_v28  ;;  %v5592_v52 = vand.u32 4294901760, %v69_v41  ;;  %v5599_v54 = vsub.f32 %v86_v38, %v5584_v48  ;;  %v229_v55 = vand.u32 4294901760, %v228_v44  ;;  %v89_v56 = vsel %vm78_vm1, %v59_v49, 0 }
  0x19   :  { %v5580_v46 = vand.u32 4294901760, %v133_v39  ;;  %212 = vmatpush.msra.mxu1 %v211_v42  ;;  %5278 = vmatpush.msra.mxu3 %v211_v42  ;;  %v141_v53 = vsub.f32 %v5562_v37, %v5578_v45  ;;  %v611_v58 = vand.u32 4294901760, %v5590_v51  ;;  %v5612_v61 = vand.u32 4294901760, %v89_v56 }
  0x1a   :  { %191 = vmatmul.f32.vlgmr.msra.gmra.mxu2 %v5582_v47  ;;  %v5603_v57 = vsub.f32 %v69_v41, %v5592_v52  ;;  %417 = vmatpush.msrb.mxu0 %v215_v25  ;;  %v5610_v60 = vand.u32 4294901760, %v5599_v54  ;;  %v92_v7 = vsel %vm78_vm1, %v60_v63, 0  ;;  %v5641_v8 = vand.u32 4294901760, %v67_v3 }
  0x1b   :  { %135 = vmatmul.f32.vlgmr.msra.gmra.mxu0 %v5580_v46  ;;  %218 = vmatpush.msra.mxu1 %v217_v43  ;;  %v5607_v59 = vand.u32 4294901760, %v141_v53  ;;  %v612_v0 = vsub.f32 %v5590_v51, %v611_v58  ;;  %v5630_v2 = vsub.f32 %v89_v56, %v5612_v61  ;;  %v530_v36 = vand.u32 4294901760, %v65_v33 }
  0x1c   :  { %5279 = vmatpush.msra.mxu3 %v217_v43  ;;  %281 = vmatpush.msrb.mxu2 %v214_v16  ;;  %v617_v62 = vand.u32 4294901760, %v5603_v57  ;;  %v149_v1 = vsub.f32 %v5599_v54, %v5610_v60  ;;  %v5653_v16 = vand.u32 4294901760, %v92_v7  ;;  %v622_v18 = vsub.f32 %v67_v3, %v5641_v8  ;;  %v5796_v3 = vld [vmem:[%s7200_s3] sm:$0x3]  ;;  %s5441_s3 = smov 64  }
  0x1d   :  { %224 = vmatpush.msra.mxu1 %v223_v50  ;;  %421 = vmatpush.msrb.mxu0 %v221_v26  ;;  %v613_v11 = vand.u32 4294901760, %v612_v0  ;;  %v5651_v13 = vand.u32 4294901760, %v5630_v2  ;;  %v628_v41 = vsub.f32 %v65_v33, %v530_v36  ;;  %7300 = vst [vmem:[#allocation15_spill] sm:$0xff] %v5796_v3 }
  0x1e   :  { %5280 = vmatpush.msra.mxu3 %v223_v50  ;;  %284 = vmatpush.msrb.mxu2 %v5522_v17  ;;  %v618_v6 = vsub.f32 %v5603_v57, %v617_v62  ;;  %v5648_v12 = vand.u32 4294901760, %v149_v1  ;;  %v61_v17 = vld [vmem:[%s7197_s0 + $0x28] sm:$0xff]  ;;  %v5671_v19 = vsub.f32 %v92_v7, %v5653_v16  ;;  %v942_v7 = vld [vmem:[#allocation3 + $0x50] sm:$0xff] }
  0x1f   :  { %230 = vmatpush.msra.mxu1 %v229_v55  ;;  %425 = vmatpush.msrb.mxu0 %v227_v29  ;;  %v95_v21 = vsel %vm78_vm1, %v61_v17, 0  ;;  %v629_v44 = vand.u32 4294901760, %v628_v41 }
  0x20   :  { %5281 = vmatpush.msra.mxu3 %v229_v55  ;;  %232 = vmatmul.f32.vlgmr.msra.gmra.mxu1 %v5516_v14  ;;  %v5680_v25 = vand.u32 4294901760, %v5671_v19  ;;  %v5682_v26 = vand.u32 4294901760, %v95_v21 }
  0x21   :  { %260 = vmatmul.f32.vlgmr.msra.gmra.mxu3 %v5518_v15  ;;  %287 = vmatpush.msrb.mxu2 %v5531_v20  ;;  %v623_v20 = vand.u32 4294901760, %v622_v18  ;;  %v630_v49 = vsub.f32 %v628_v41, %v629_v44 }
  0x22   :  { %342 = vmatpush.msrb.mxu3 %v5507_v9  ;;  %290 = vmatmul.f32.vlgmr.msrb.gmra.mxu2 %v5536_v23  ;;  %v165_v28 = vsub.f32 %v5671_v19, %v5680_v25  ;;  %v5696_v29 = vsub.f32 %v95_v21, %v5682_v26  ;;  %v940_v21 = vld [vmem:[#allocation3 + $0x40] sm:$0xff] }
  0x23   :  { %143 = vmatmul.f32.gmra.mxu0 %v5607_v59  ;;  %525 = vmatpush.msra.mxu2 %v5556_v34  ;;  %v624_v22 = vsub.f32 %v622_v18, %v623_v20  ;;  %v631_v53 = vand.u32 4294901760, %v630_v49 }
  0x24   :  { %344 = vmatpush.msrb.mxu3 %v5494_v4  ;;  %472 = vmatpush.msrb.mxu1 %v5507_v9  ;;  %v619_v9 = vand.u32 4294901760, %v618_v6  ;;  %v166_v38 = vand.u32 4294901760, %v165_v28  ;;  %v5703_v39 = vand.u32 4294901760, %v5696_v29 }
  0x25   :  { %527 = vmatpush.msra.mxu2 %v5592_v52  ;;  %680 = vmatpush.msra.mxu0 %v5590_v51  ;;  %v625_v27 = vand.u32 4294901760, %v624_v22 }
  0x26   :  { %346 = vmatpush.msrb.mxu3 %v5496_v5  ;;  %474 = vmatpush.msrb.mxu1 %v5494_v4  ;;  %v157_v4 = vsub.f32 %v5630_v2, %v5651_v13  ;;  %v173_v42 = vsub.f32 %v5696_v29, %v5703_v39 }
  0x27   :  { %529 = vmatpush.msra.mxu2 %v5641_v8  ;;  %683 = vmatpush.msra.mxu0 %v5603_v57 }
  0x28   :  { %348 = vmatpush.msrb.mxu3 %v5509_v10  ;;  %236 = vmatmul.f32.gmra.mxu1 %v5548_v30  ;;  %v174_v50 = vand.u32 4294901760, %v173_v42 }
  0x29   :  { %352 = vmatmul.f32.vlgmr.msrb.gmra.mxu3 %v5551_v31  ;;  %476 = vmatpush.msrb.mxu1 %v5496_v5  ;;  %v5677_v5 = vand.u32 4294901760, %v157_v4 }
  0x2a   :  { %614 = vmatpush.msra.mxu3 %v613_v11  ;;  %295 = vmatmul.f32.gmra.mxu2 %v5562_v37  ;;  %v5804_v11 = vand.u32 4294901760, %v942_v7 }
  0x2b   :  { %151 = vmatmul.f32.gmra.mxu0 %v5648_v12  ;;  %478 = vmatpush.msrb.mxu1 %v5509_v10  ;;  %v62_v10 = vld [vmem:[%s7197_s0 + $0x30] sm:$0xff] }
  0x2c   :  { %620 = vmatpush.msra.mxu3 %v619_v9  ;;  %686 = vmatpush.msra.mxu0 %v622_v18  ;;  %v98_v35 = vsel %vm78_vm1, %v62_v10, 0  ;;  %7301 = vst [vmem:[#allocation16_spill] sm:$0xff] %v5804_v11  ;;  %v5813_v9 = vsub.f32 %v942_v7, %v5804_v11 }
  0x2d   :  { %744 = vmatpush.msra.mxu1 %v5556_v34  ;;  %531 = vmatpush.msra.mxu2 %v530_v36  ;;  %v5705_v40 = vand.u32 4294901760, %v98_v35 }
  0x2e   :  { %626 = vmatpush.msra.mxu3 %v625_v27  ;;  %689 = vmatpush.msra.mxu0 %v628_v41  ;;  %7303 = vst [vmem:[#allocation18_spill] sm:$0xff] %v5813_v9  ;;  %v5819_v18 = vand.u32 4294901760, %v5813_v9 }
  0x2f   :  { %746 = vmatpush.msra.mxu1 %v5592_v52  ;;  %815 = vmatpush.msrb.mxu2 %v611_v58  ;;  %v5717_v43 = vsub.f32 %v98_v35, %v5705_v40 }
  0x30   :  { %240 = vmatmul.f32.gmra.mxu1 %v5584_v48  ;;  %632 = vmatpush.msra.mxu3 %v631_v53  ;;  %7304 = vst [vmem:[#allocation19_spill] sm:$0xff] %v5819_v18 }
  0x31   :  { %358 = vmatmul.f32.gmra.mxu3 %v5578_v45  ;;  %748 = vmatpush.msra.mxu1 %v5641_v8  ;;  %v5720_v51 = vand.u32 4294901760, %v5717_v43 }
  0x32   :  { %300 = vmatmul.f32.gmra.mxu2 %v5599_v54  ;;  %874 = vmatpush.msrb.mxu3 %v5556_v34  ;;  %v946_v34 = vld [vmem:[#allocation3 + $0x70] sm:$0xff] }
  0x33   :  { %159 = vmatmul.f32.gmra.mxu0 %v5677_v5  ;;  %750 = vmatpush.msra.mxu1 %v530_v36  ;;  %v181_v55 = vsub.f32 %v5717_v43, %v5720_v51 }
  0x34   :  { %819 = vmatpush.msrb.mxu2 %v617_v62  ;;  %876 = vmatpush.msrb.mxu3 %v5592_v52 }
  0x35   :  { %v182_v56 = vand.u32 4294901760, %v181_v55 }
  0x36   :  { %823 = vmatpush.msrb.mxu2 %v623_v20  ;;  %878 = vmatpush.msrb.mxu3 %v5641_v8 }
  0x38   :  { %244 = vmatmul.f32.gmra.mxu1 %v5612_v61  ;;  %827 = vmatpush.msrb.mxu2 %v629_v44  ;;  %v938_v44 = vld [vmem:[#allocation3 + $0x30] sm:$0xff] }
  0x39   :  { %364 = vmatmul.f32.gmra.mxu3 %v5610_v60 }
  0x3a   :  { %305 = vmatmul.f32.gmra.mxu2 %v5630_v2  ;;  %880 = vmatpush.msrb.mxu3 %v530_v36 }
  0x3b   :  { %167 = vmatmul.f32.gmra.mxu0 %v166_v38 }
  0x40   :  { %248 = vmatmul.f32.gmra.mxu1 %v5653_v16 }
  0x41   :  { %370 = vmatmul.f32.gmra.mxu3 %v5651_v13 }
  0x42   :  { %310 = vmatmul.f32.gmra.mxu2 %v5671_v19 }
  0x43   :  { %175 = vmatmul.f32.gmra.mxu0 %v174_v50 }
  0x48   :  { %252 = vmatmul.f32.gmra.mxu1 %v5682_v26 }
  0x49   :  { %376 = vmatmul.f32.gmra.mxu3 %v5680_v25 }
  0x4a   :  { %315 = vmatmul.f32.gmra.mxu2 %v5696_v29 }
  0x4b   :  { %183 = vmatmul.f32.gmra.mxu0 %v182_v56 }
  0x50   :  { %256 = vmatmul.f32.gmra.mxu1 %v5705_v40 }
  0x51   :  { %382 = vmatmul.f32.gmra.mxu3 %v5703_v39 }
  0x52   :  { %320 = vmatmul.f32.gmra.mxu2 %v5717_v43 }
  0x53   :  { %427 = vmatmul.f32.vlgmr.msrb.gmra.mxu0 %v5516_v14 }
  0x58   :  { %480 = vmatmul.f32.vlgmr.msrb.gmra.mxu1 %v5516_v14 }
  0x59   :  { %388 = vmatmul.f32.gmra.mxu3 %v5720_v51 }
  0x5a   :  { %325 = vmatmul.f32.gmra.mxu2 %v5539_v24 }
  0x5b   :  { %431 = vmatmul.f32.gmra.mxu0 %v5548_v30 }
  0x60   :  { %484 = vmatmul.f32.gmra.mxu1 %v5548_v30 }
  0x61   :  { %394 = vmatmul.f32.gmra.mxu3 %v5554_v32 }
  0x62   :  { %537 = vmatmul.f32.vlgmr.msra.gmra.mxu2 %v5580_v46  ;;  %v5762_v46 = vand.u32 4294901760, %v946_v34 }
  0x63   :  { %435 = vmatmul.f32.gmra.mxu0 %v5584_v48 }
  0x64   :  { %v5766_v52 = vsub.f32 %v946_v34, %v5762_v46  ;;  %961 = vmatpush.msrb.mxu0 %v5762_v46 }
  0x66   :  { %1056 = vmatpush.msra.mxu2 %v5766_v52  ;;  %v5772_v57 = vand.u32 4294901760, %v5766_v52 }
  0x68   :  { %488 = vmatmul.f32.gmra.mxu1 %v5584_v48  ;;  %7297 = vst [vmem:[#allocation12_spill] sm:$0xff] %v5772_v57  ;;  %v996_v58 = vsub.f32 %v5766_v52, %v5772_v57 }
  0x69   :  { %634 = vmatmul.f32.vlgmr.msra.gmra.mxu3 %v5516_v14 }
  0x6a   :  { %545 = vmatmul.f32.gmra.mxu2 %v5607_v59  ;;  %1093 = vmatpush.msra.mxu3 %v5762_v46  ;;  %v944_v59 = vld [vmem:[#allocation3 + $0x60] sm:$0xff]  ;;  %v5778_v62 = vand.u32 4294901760, %v996_v58 }
  0x6b   :  { %439 = vmatmul.f32.gmra.mxu0 %v5612_v61  ;;  %v5780_v63 = vand.u32 4294901760, %v944_v59  ;;  %v936_v58 = vld [vmem:[#allocation3 + $0x20] sm:$0xff] }
  0x6c   :  { %998 = vmatpush.msrb.mxu1 %v5778_v62 }
  0x6d   :  { %7298 = vst [vmem:[#allocation13_spill] sm:$0xff] %v5780_v63  ;;  %v5785_v0 = vsub.f32 %v944_v59, %v5780_v63  ;;  %963 = vmatpush.msrb.mxu0 %v5780_v63  ;;  %1095 = vmatpush.msra.mxu3 %v5780_v63 }
  0x6f   :  { %1059 = vmatpush.msra.mxu2 %v5785_v0  ;;  %v5791_v1 = vand.u32 4294901760, %v5785_v0  ;;  %965 = vmatpush.msrb.mxu0 %v5804_v11 }
  0x70   :  { %492 = vmatmul.f32.gmra.mxu1 %v5612_v61  ;;  %1097 = vmatpush.msra.mxu3 %v5804_v11 }
  0x71   :  { %638 = vmatmul.f32.gmra.mxu3 %v5548_v30  ;;  %7299 = vst [vmem:[#allocation14_spill] sm:$0xff] %v5791_v1  ;;  %v1002_v6 = vsub.f32 %v5785_v0, %v5791_v1  ;;  %1062 = vmatpush.msra.mxu2 %v5813_v9 }
  0x72   :  { %553 = vmatmul.f32.gmra.mxu2 %v5648_v12  ;;  %v5807_v12 = vperm.slane %v5796_v3, 0 }
  0x73   :  { %443 = vmatmul.f32.gmra.mxu0 %v5653_v16  ;;  %v5802_v8 = vand.u32 4294901760, %v1002_v6  ;;  %v5869_v6 = vand.u32 4294901760, %v936_v58 }
  0x74   :  { %7302 = vst [vmem:[#allocation17_spill] sm:$0xff] %v5807_v12 }
  0x75   :  { %1004 = vmatpush.msrb.mxu1 %v5802_v8  ;;  %7314 = vst [vmem:[#allocation29_spill] sm:$0xff] %v5869_v6 }
  0x78   :  { %496 = vmatmul.f32.gmra.mxu1 %v5653_v16 }
  0x79   :  { %642 = vmatmul.f32.gmra.mxu3 %v5584_v48 }
  0x7a   :  { %561 = vmatmul.f32.gmra.mxu2 %v5677_v5  ;;  %v5829_v5 = vand.u32 4294901760, %v940_v21 }
  0x7b   :  { %447 = vmatmul.f32.gmra.mxu0 %v5682_v26 }
  0x7c   :  { %7305 = vst [vmem:[#allocation20_spill] sm:$0xff] %v5829_v5  ;;  %v5835_v10 = vsub.f32 %v940_v21, %v5829_v5  ;;  %967 = vmatpush.msrb.mxu0 %v5829_v5  ;;  %1099 = vmatpush.msra.mxu3 %v5829_v5  ;;  %v932_v21 = vld [vmem:[#allocation3] sm:$0xff] }
  0x7e   :  { %7306 = vst [vmem:[#allocation21_spill] sm:$0xff] %v5835_v10  ;;  %1065 = vmatpush.msra.mxu2 %v5835_v10 }
  0x80   :  { %500 = vmatmul.f32.gmra.mxu1 %v5682_v26 }
  0x81   :  { %646 = vmatmul.f32.gmra.mxu3 %v5612_v61 }
  0x82   :  { %569 = vmatmul.f32.gmra.mxu2 %v166_v38 }
  0x83   :  { %451 = vmatmul.f32.gmra.mxu0 %v5705_v40 }
  0x88   :  { %504 = vmatmul.f32.gmra.mxu1 %v5705_v40 }
  0x89   :  { %650 = vmatmul.f32.gmra.mxu3 %v5653_v16 }
  0x8a   :  { %577 = vmatmul.f32.gmra.mxu2 %v174_v50  ;;  %v5852_v50 = vand.u32 4294901760, %v938_v44 }
  0x8b   :  { %455 = vmatmul.f32.gmra.mxu0 %v5518_v15 }
  0x8c   :  { %7310 = vst [vmem:[#allocation25_spill] sm:$0xff] %v5852_v50  ;;  %969 = vmatpush.msrb.mxu0 %v5852_v50  ;;  %1101 = vmatpush.msra.mxu3 %v5852_v50 }
  0x8e   :  { %971 = vmatpush.msrb.mxu0 %v5869_v6  ;;  %1103 = vmatpush.msra.mxu3 %v5869_v6 }
  0x90   :  { %508 = vmatmul.f32.gmra.mxu1 %v5518_v15 }
  0x91   :  { %654 = vmatmul.f32.gmra.mxu3 %v5682_v26 }
  0x92   :  { %585 = vmatmul.f32.gmra.mxu2 %v182_v56  ;;  %v5858_v56 = vsub.f32 %v938_v44, %v5852_v50 }
  0x93   :  { %692 = vmatmul.f32.vlgmr.msra.gmra.mxu0 %v5536_v23 }
  0x94   :  { %7311 = vst [vmem:[#allocation26_spill] sm:$0xff] %v5858_v56  ;;  %1068 = vmatpush.msra.mxu2 %v5858_v56 }
  0x98   :  { %v136_v23 = vpop.f32.mrf.mxu0  ;;  %754 = vmatmul.f32.vlgmr.msra.gmra.mxu1 %v5551_v31 }
  0x99   :  { %658 = vmatmul.f32.gmra.mxu3 %v5705_v40  ;;  %v137_v20 = vadd.f32 %v136_v23, %v5807_v12 }
  0x9a   :  { %593 = vmatmul.f32.gmra.mxu2 %v5582_v47 }
  0x9b   :  { %697 = vmatmul.f32.gmra.mxu0 %v5562_v37  ;;  %v1008_v37 = vsub.f32 %v5813_v9, %v5819_v18 }
  0x9d   :  { %v192_v31 = vpop.f32.mrf.mxu2  ;;  %v233_v17 = vpop.f32.mrf.mxu1  ;;  %v5827_v22 = vand.u32 4294901760, %v1008_v37  ;;  %v947_v37 = vld [vmem:[#allocation3 + $0x78] sm:$0xff] }
  0x9e   :  { %v193_v47 = vadd.f32 %v192_v31, %v5807_v12  ;;  %v234_v28 = vadd.f32 %v233_v17, %v137_v20  ;;  %v934_v17 = vld [vmem:[#allocation3 + $0x10] sm:$0xff] }
  0x9f   :  { %1010 = vmatpush.msrb.mxu1 %v5827_v22 }
  0xa0   :  { %v144_v4 = vpop.f32.mrf.mxu0  ;;  %760 = vmatmul.f32.gmra.mxu1 %v5578_v45 }
  0xa1   :  { %662 = vmatmul.f32.gmra.mxu3 %v5518_v15  ;;  %v145_v36 = vadd.f32 %v144_v4, %v5807_v12  ;;  %v5880_v4 = vand.u32 4294901760, %v934_v17 }
  0xa2   :  { %829 = vmatmul.f32.vlgmr.msrb.gmra.mxu2 %v5516_v14 }
  0xa3   :  { %702 = vmatmul.f32.gmra.mxu0 %v5599_v54  ;;  %v5843_v54 = vand.u32 4294901760, %v5835_v10  ;;  %7317 = vst [vmem:[#allocation32_spill] sm:$0xff] %v5880_v4  ;;  %1105 = vmatpush.msra.mxu3 %v5880_v4 }
  0xa4   :  { %v261_v27 = vpop.f32.mrf.mxu3  ;;  %973 = vmatpush.msrb.mxu0 %v5880_v4 }
  0xa5   :  { %v5838_v33 = vadd.f32 %v261_v27, %v193_v47  ;;  %v291_v45 = vpop.f32.mrf.mxu2  ;;  %v237_v35 = vpop.f32.mrf.mxu1  ;;  %7308 = vst [vmem:[#allocation23_spill] sm:$0xff] %v5843_v54  ;;  %v1014_v41 = vsub.f32 %v5835_v10, %v5843_v54  ;;  %v5878_v47 = vsub.f32 %v936_v58, %v5869_v6  ;;  %v5886_v27 = vand.u32 4294901760, %v947_v37 }
  0xa6   :  { %v292_v42 = vadd.f32 %v291_v45, %v234_v28  ;;  %v238_v53 = vadd.f32 %v237_v35, %v145_v36  ;;  %v5896_v45 = vand.u32 4294901760, %v932_v21  ;;  %v945_v35 = vld [vmem:[#allocation3 + $0x68] sm:$0xff] }
  0xa7   :  { %7307 = vst [vmem:[#allocation22_spill] sm:$0xff] %v5838_v33  ;;  %v5850_v49 = vand.u32 4294901760, %v1014_v41  ;;  %1071 = vmatpush.msra.mxu2 %v5878_v47 }
  0xa8   :  { %v152_v38 = vpop.f32.mrf.mxu0  ;;  %766 = vmatmul.f32.gmra.mxu1 %v5610_v60  ;;  %7316 = vst [vmem:[#allocation31_spill] sm:$0xff] %v5878_v47  ;;  %v5911_v44 = vsub.f32 %v932_v21, %v5896_v45  ;;  %975 = vmatpush.msrb.mxu0 %v5896_v45  ;;  %v941_v21 = vld [vmem:[#allocation3 + $0x48] sm:$0xff] }
  0xa9   :  { %882 = vmatmul.f32.vlgmr.msrb.gmra.mxu3 %v5516_v14  ;;  %7309 = vst [vmem:[#allocation24_spill] sm:$0xff] %v5850_v49  ;;  %1016 = vmatpush.msrb.mxu1 %v5850_v49  ;;  %v153_v59 = vadd.f32 %v152_v38, %v5807_v12  ;;  %v5900_v38 = vand.u32 4294901760, %v945_v35 }
  0xaa   :  { %833 = vmatmul.f32.gmra.mxu2 %v5548_v30  ;;  %7321 = vst [vmem:[#allocation36_spill] sm:$0xff] %v5896_v45  ;;  %1107 = vmatpush.msra.mxu3 %v5896_v45 }
  0xab   :  { %707 = vmatmul.f32.gmra.mxu0 %v5630_v2  ;;  %v5866_v2 = vand.u32 4294901760, %v5858_v56  ;;  %7323 = vst [vmem:[#allocation38_spill] sm:$0xff] %v5911_v44 }
  0xac   :  { %v353_v55 = vpop.f32.mrf.mxu3  ;;  %1126 = vmatpush.msra.mxu0 %v5772_v57 }
  0xad   :  { %v5861_v60 = vadd.f32 %v353_v55, %v292_v42  ;;  %v296_v14 = vpop.f32.mrf.mxu2  ;;  %v241_v34 = vpop.f32.mrf.mxu1  ;;  %7313 = vst [vmem:[#allocation28_spill] sm:$0xff] %v5866_v2  ;;  %v1020_v31 = vsub.f32 %v5858_v56, %v5866_v2  ;;  %v943_v55 = vld [vmem:[#allocation3 + $0x58] sm:$0xff] }
  0xae   :  { %v297_v23 = vadd.f32 %v296_v14, %v238_v53  ;;  %v242_v28 = vadd.f32 %v241_v34, %v153_v59  ;;  %v5923_v59 = vand.u32 4294901760, %v943_v55  ;;  %1130 = vmatpush.msra.mxu0 %v5791_v1 }
  0xaf   :  { %7312 = vst [vmem:[#allocation27_spill] sm:$0xff] %v5861_v60  ;;  %v5882_v20 = vand.u32 4294901760, %v1020_v31 }
  0xb0   :  { %v5871_v7 = vpop.f32.mrf.mxu0  ;;  %772 = vmatmul.f32.gmra.mxu1 %v5651_v13  ;;  %v5894_v13 = vsub.f32 %v934_v17, %v5880_v4  ;;  %1134 = vmatpush.msra.mxu0 %v5819_v18 }
  0xb1   :  { %7315 = vst [vmem:[#allocation30_spill] sm:$0xff] %v5871_v7  ;;  %886 = vmatmul.f32.gmra.mxu3 %v5548_v30  ;;  %v5891_v30 = vand.u32 4294901760, %v5878_v47  ;;  %1022 = vmatpush.msrb.mxu1 %v5882_v20 }
  0xb2   :  { %7318 = vst [vmem:[#allocation33_spill] sm:$0xff] %v5882_v20  ;;  %837 = vmatmul.f32.gmra.mxu2 %v5584_v48  ;;  %v5915_v53 = vand.u32 4294901760, %v5894_v13  ;;  %1138 = vmatpush.msra.mxu0 %v5843_v54 }
  0xb3   :  { %712 = vmatmul.f32.gmra.mxu0 %v5671_v19  ;;  %7319 = vst [vmem:[#allocation34_spill] sm:$0xff] %v5891_v30  ;;  %v5903_v19 = vsub.f32 %v947_v37, %v5886_v27  ;;  %v1026_v42 = vsub.f32 %v5878_v47, %v5891_v30  ;;  %1074 = vmatpush.msra.mxu2 %v5894_v13 }
  0xb4   :  { %7320 = vst [vmem:[#allocation35_spill] sm:$0xff] %v5894_v13  ;;  %v359_v36 = vpop.f32.mrf.mxu3  ;;  %v1032_v37 = vsub.f32 %v5894_v13, %v5915_v53  ;;  %1142 = vmatpush.msra.mxu0 %v5866_v2 }
  0xb5   :  { %v5905_v41 = vadd.f32 %v359_v36, %v297_v23  ;;  %7324 = vst [vmem:[#allocation39_spill] sm:$0xff] %v5915_v53  ;;  %v301_v14 = vpop.f32.mrf.mxu2  ;;  %v5917_v34 = vpop.f32.mrf.mxu1  ;;  %v5921_v58 = vand.u32 4294901760, %v5903_v19  ;;  %v5926_v23 = vsub.f32 %v945_v35, %v5900_v38  ;;  %v5928_v17 = vand.u32 4294901760, %v1026_v42  ;;  %1077 = vmatpush.msra.mxu2 %v5911_v44 }
  0xb6   :  { %7325 = vst [vmem:[#allocation40_spill] sm:$0xff] %v5917_v34  ;;  %v302_v31 = vadd.f32 %v301_v14, %v242_v28  ;;  %v5941_v28 = vand.u32 4294901760, %v5911_v44  ;;  %v5946_v14 = vand.u32 4294901760, %v941_v21  ;;  %v5950_v33 = vand.u32 4294901760, %v1032_v37  ;;  %v939_v34 = vld [vmem:[#allocation3 + $0x38] sm:$0xff]  ;;  %v937_v37 = vld [vmem:[#allocation3 + $0x28] sm:$0xff]  ;;  %1146 = vmatpush.msra.mxu0 %v5891_v30 }
  0xb7   :  { %7322 = vst [vmem:[#allocation37_spill] sm:$0xff] %v5905_v41  ;;  %v1233_v35 = vsub.f32 %v5903_v19, %v5921_v58  ;;  %v5944_v42 = vand.u32 4294901760, %v5926_v23  ;;  %1028 = vmatpush.msrb.mxu1 %v5928_v17  ;;  %1198 = vmatpush.msrb.mxu2 %v5886_v27  ;;  %v5963_v41 = vand.u32 4294901760, %v939_v34 }
  0xb8   :  { %7326 = vst [vmem:[#allocation41_spill] sm:$0xff] %v5928_v17  ;;  %v5934_v36 = vpop.f32.mrf.mxu0  ;;  %778 = vmatmul.f32.gmra.mxu1 %v5680_v25  ;;  %v1038_v12 = vsub.f32 %v5911_v44, %v5941_v28  ;;  %v5979_v44 = vand.u32 4294901760, %v937_v37  ;;  %1150 = vmatpush.msra.mxu0 %v5915_v53 }
  0xb9   :  { %7327 = vst [vmem:[#allocation42_spill] sm:$0xff] %v5934_v36  ;;  %890 = vmatmul.f32.gmra.mxu3 %v5584_v48  ;;  %v5953_v36 = vsub.f32 %v943_v55, %v5923_v59  ;;  %v5957_v7 = vand.u32 4294901760, %v1233_v35  ;;  %v1239_v25 = vsub.f32 %v5926_v23, %v5944_v42  ;;  %v5971_v55 = vsub.f32 %v941_v21, %v5946_v14 }
  0xba   :  { %7328 = vst [vmem:[#allocation43_spill] sm:$0xff] %v5941_v28  ;;  %841 = vmatmul.f32.gmra.mxu2 %v5612_v61  ;;  %1034 = vmatpush.msrb.mxu1 %v5950_v33  ;;  %v5975_v60 = vand.u32 4294901760, %v1038_v12  ;;  %v935_v12 = vld [vmem:[#allocation3 + $0x18] sm:$0xff] }
  0xbb   :  { %7329 = vst [vmem:[#allocation44_spill] sm:$0xff] %v5950_v33  ;;  %717 = vmatmul.f32.gmra.mxu0 %v5696_v29  ;;  %v5968_v48 = vand.u32 4294901760, %v5953_v36  ;;  %1200 = vmatpush.msrb.mxu2 %v5900_v38  ;;  %v5977_v3 = vand.u32 4294901760, %v1239_v25  ;;  %v5982_v29 = vsub.f32 %v939_v34, %v5963_v41  ;;  %v5991_v57 = vand.u32 4294901760, %v5971_v55 }
  0xbc   :  { %7330 = vst [vmem:[#allocation45_spill] sm:$0xff] %v5957_v7  ;;  %v365_v35 = vpop.f32.mrf.mxu3  ;;  %1235 = vmatpush.msrb.mxu3 %v5957_v7  ;;  %1040 = vmatpush.msrb.mxu1 %v5975_v60 }
  0xbd   :  { %7331 = vst [vmem:[#allocation46_spill] sm:$0xff] %v5975_v60  ;;  %v5984_v13 = vadd.f32 %v365_v35, %v302_v31  ;;  %v1245_v21 = vsub.f32 %v5953_v36, %v5968_v48  ;;  %v5993_v25 = vpop.f32.mrf.mxu2  ;;  %v5995_v47 = vpop.f32.mrf.mxu1  ;;  %1202 = vmatpush.msrb.mxu2 %v5923_v59  ;;  %v6000_v34 = vand.u32 4294901760, %v5982_v29  ;;  %v6002_v31 = vand.u32 4294901760, %v935_v12  ;;  %1154 = vmatpush.msra.mxu0 %v5941_v28 }
  0xbe   :  { %7332 = vst [vmem:[#allocation47_spill] sm:$0xff] %v5977_v3  ;;  %v6005_v35 = vsub.f32 %v937_v37, %v5979_v44  ;;  %1169 = vmatpush.msra.mxu1 %v5762_v46  ;;  %1241 = vmatpush.msrb.mxu3 %v5977_v3 }
  0xbf   :  { %7333 = vst [vmem:[#allocation48_spill] sm:$0xff] %v5984_v13  ;;  %v6009_v13 = vand.u32 4294901760, %v1245_v21  ;;  %1204 = vmatpush.msrb.mxu2 %v5946_v14  ;;  %v1257_v37 = vsub.f32 %v5982_v29, %v6000_v34  ;;  %v6025_v21 = vsub.f32 %v935_v12, %v6002_v31 }
  0xc0   :  { %7334 = vst [vmem:[#allocation49_spill] sm:$0xff] %v5993_v25  ;;  %v933_v25 = vld [vmem:[#allocation3 + $0x8] sm:$0xff]  ;;  %v6013_v7 = vpop.f32.mrf.mxu0  ;;  %v6020_v1 = vand.u32 4294901760, %v6005_v35  ;;  %784 = vmatmul.f32.gmra.mxu1 %v5703_v39 }
  0xc1   :  { %7335 = vst [vmem:[#allocation50_spill] sm:$0xff] %v5995_v47  ;;  %v1251_v47 = vsub.f32 %v5971_v55, %v5991_v57  ;;  %v6022_v56 = vand.u32 4294901760, %v933_v25  ;;  %894 = vmatmul.f32.gmra.mxu3 %v5612_v61  ;;  %1171 = vmatpush.msra.mxu1 %v5780_v63  ;;  %v6036_v18 = vand.u32 4294901760, %v6025_v21  ;;  %v6043_v61 = vand.u32 4294901760, %v1257_v37 }
  0xc2   :  { %7336 = vst [vmem:[#allocation51_spill] sm:$0xff] %v6009_v13  ;;  %1247 = vmatpush.msrb.mxu3 %v6009_v13  ;;  %v1263_v3 = vsub.f32 %v6005_v35, %v6020_v1  ;;  %845 = vmatmul.f32.gmra.mxu2 %v5653_v16 }
  0xc3   :  { %7337 = vst [vmem:[#allocation52_spill] sm:$0xff] %v6013_v7  ;;  %v6029_v7 = vand.u32 4294901760, %v1251_v47  ;;  %v6039_v10 = vsub.f32 %v933_v25, %v6022_v56  ;;  %722 = vmatmul.f32.gmra.mxu0 %v5717_v43  ;;  %1173 = vmatpush.msra.mxu1 %v5804_v11  ;;  %v1269_v43 = vsub.f32 %v6025_v21, %v6036_v18 }
  0xc4   :  { %7339 = vst [vmem:[#allocation54_spill] sm:$0xff] %v6043_v61  ;;  %v6045_v39 = vpop.f32.mrf.mxu3  ;;  %1206 = vmatpush.msrb.mxu2 %v5963_v41  ;;  %v6062_v37 = vand.u32 4294901760, %v1263_v3 }
  0xc5   :  { %7338 = vst [vmem:[#allocation53_spill] sm:$0xff] %v6029_v7  ;;  %v6050_v47 = vand.u32 4294901760, %v6039_v10  ;;  %1253 = vmatpush.msrb.mxu3 %v6029_v7  ;;  %v6056_v12 = vpop.f32.mrf.mxu2  ;;  %v6058_v25 = vpop.f32.mrf.mxu1  ;;  %1175 = vmatpush.msra.mxu1 %v5829_v5 }
  0xc6   :  { %7340 = vst [vmem:[#allocation55_spill] sm:$0xff] %v6045_v39  ;;  %1208 = vmatpush.msrb.mxu2 %v5979_v44 }
  0xc7   :  { %7341 = vst [vmem:[#allocation56_spill] sm:$0xff] %v6056_v12  ;;  %1259 = vmatpush.msrb.mxu3 %v6043_v61  ;;  %v1275_v39 = vsub.f32 %v6039_v10, %v6050_v47  ;;  %1177 = vmatpush.msra.mxu1 %v5852_v50 }
  0xc8   :  { %7342 = vst [vmem:[#allocation57_spill] sm:$0xff] %v6058_v25  ;;  %v6068_v7 = vpop.f32.mrf.mxu0  ;;  %790 = vmatmul.f32.gmra.mxu1 %v5720_v51  ;;  %v6074_v25 = vand.u32 4294901760, %v1269_v43  ;;  %1210 = vmatpush.msrb.mxu2 %v6002_v31 }
  0xc9   :  { %7343 = vst [vmem:[#allocation58_spill] sm:$0xff] %v6062_v37  ;;  %898 = vmatmul.f32.gmra.mxu3 %v5653_v16  ;;  %v6080_v3 = vand.u32 4294901760, %v1275_v39  ;;  %1179 = vmatpush.msra.mxu1 %v5869_v6  ;;  %v7229_v39 = vmov 0.0  }
  0xca   :  { %7344 = vst [vmem:[#allocation59_spill] sm:$0xff] %v6068_v7  ;;  %1265 = vmatpush.msrb.mxu3 %v6062_v37  ;;  %849 = vmatmul.f32.gmra.mxu2 %v5682_v26 }
  0xcb   :  { %7345 = vst [vmem:[#allocation60_spill] sm:$0xff] %v6074_v25  ;;  %727 = vmatmul.f32.gmra.mxu0 %v5539_v24  ;;  %1212 = vmatpush.msrb.mxu2 %v6022_v56 }
  0xcc   :  { %7346 = vst [vmem:[#allocation61_spill] sm:$0xff] %v6080_v3  ;;  %v6082_v7 = vpop.f32.mrf.mxu3  ;;  %1271 = vmatpush.msrb.mxu3 %v6074_v25  ;;  %1181 = vmatpush.msra.mxu1 %v5880_v4 }
  0xcd   :  { %7347 = vst [vmem:[#allocation62_spill] sm:$0xff] %v6082_v7  ;;  %v6088_v16 = vpop.f32.mrf.mxu2  ;;  %v6090_v51 = vpop.f32.mrf.mxu1 }
  0xce   :  { %7348 = vst [vmem:[#allocation63_spill] sm:$0xff] %v6088_v16  ;;  %1277 = vmatpush.msrb.mxu3 %v6080_v3  ;;  %1183 = vmatpush.msra.mxu1 %v5896_v45 }
  0xcf   :  { %7349 = vst [vmem:[#allocation64_spill] sm:$0xff] %v6090_v51 }
  0xd0   :  { %v6095_v24 = vpop.f32.mrf.mxu0  ;;  %796 = vmatmul.f32.gmra.mxu1 %v5554_v32 }
  0xd1   :  { %902 = vmatmul.f32.gmra.mxu3 %v5682_v26 }
  0xd2   :  { %853 = vmatmul.f32.gmra.mxu2 %v5705_v40 }
  0xd3   :  { %981 = vmatmul.f32.vlgmr.msrb.gmra.mxu0 %v7229_v39 }
  0xd4   :  { %v6102_v43 = vpop.f32.mrf.mxu3  ;;  %1293 = vmatpush.msrb.mxu0 %v5903_v19 }
  0xd5   :  { %7350 = vst [vmem:[#allocation65_spill] sm:$0xff] %v6102_v43  ;;  %v6105_v51 = vpop.f32.mrf.mxu2  ;;  %v6107_v16 = vpop.f32.mrf.mxu1 }
  0xd6   :  { %7351 = vst [vmem:[#allocation66_spill] sm:$0xff] %v6105_v51  ;;  %1296 = vmatpush.msrb.mxu0 %v5926_v23 }
  0xd8   :  { %v6110_v7 = vpop.f32.mrf.mxu0  ;;  %1299 = vmatpush.msrb.mxu0 %v5953_v36  ;;  %1042 = vmatmul.f32.vlgmr.msrb.gmra.mxu1 %v7229_v39 }
  0xd9   :  { %7352 = vst [vmem:[#allocation67_spill] sm:$0xff] %v6110_v7  ;;  %906 = vmatmul.f32.gmra.mxu3 %v5705_v40  ;;  %1330 = vmatpush.msrb.mxu1 %v5886_v27  ;;  %v7374_v7 = vld [vmem:[#allocation12_spill] sm:$0xff] }
  0xda   :  { %1302 = vmatpush.msrb.mxu0 %v5971_v55  ;;  %857 = vmatmul.f32.gmra.mxu2 %v5518_v15 }
  0xdb   :  { %1156 = vmatmul.f32.vlgmr.msra.gmra.mxu0 %v7229_v39  ;;  %1332 = vmatpush.msrb.mxu1 %v5900_v38 }
  0xdc   :  { %v6119_v32 = vpop.f32.mrf.mxu3  ;;  %1305 = vmatpush.msrb.mxu0 %v5982_v29 }
  0xdd   :  { %7353 = vst [vmem:[#allocation68_spill] sm:$0xff] %v6119_v32  ;;  %v6123_v26 = vpop.f32.mrf.mxu2  ;;  %v6125_v51 = vpop.f32.mrf.mxu1  ;;  %1334 = vmatpush.msrb.mxu1 %v5923_v59 }
  0xde   :  { %7354 = vst [vmem:[#allocation69_spill] sm:$0xff] %v6123_v26  ;;  %1308 = vmatpush.msrb.mxu0 %v6005_v35 }
  0xdf   :  { %7355 = vst [vmem:[#allocation70_spill] sm:$0xff] %v6125_v51  ;;  %1336 = vmatpush.msrb.mxu1 %v5946_v14  ;;  %v7373_v51 = vld [vmem:[#allocation31_spill] sm:$0xff] }
  0xe0   :  { %v6129_v40 = vpop.f32.mrf.mxu0  ;;  %1311 = vmatpush.msrb.mxu0 %v6025_v21  ;;  %1185 = vmatmul.f32.vlgmr.msra.gmra.mxu1 %v7229_v39 }
  0xe1   :  { %7356 = vst [vmem:[#allocation71_spill] sm:$0xff] %v6129_v40  ;;  %910 = vmatmul.f32.gmra.mxu3 %v5518_v15  ;;  %1338 = vmatpush.msrb.mxu1 %v5963_v41 }
  0xe2   :  { %1314 = vmatpush.msrb.mxu0 %v6039_v10  ;;  %1080 = vmatmul.f32.vlgmr.msra.gmra.mxu2 %v7229_v39 }
  0xe3   :  { %1317 = vmatmul.f32.vlgmr.msrb.gmra.mxu0 %v7229_v39  ;;  %1363 = vmatpush.msra.mxu2 %v5921_v58 }
  0xe4   :  { %v6139_v26 = vpop.f32.mrf.mxu3  ;;  %1340 = vmatpush.msrb.mxu1 %v5979_v44  ;;  %1468 = vmatpush.msra.mxu0 %v5762_v46 }
  0xe5   :  { %7357 = vst [vmem:[#allocation72_spill] sm:$0xff] %v6139_v26  ;;  %v6144_v32 = vpop.f32.mrf.mxu2  ;;  %v6146_v15 = vpop.f32.mrf.mxu1  ;;  %1367 = vmatpush.msra.mxu2 %v5944_v42 }
  0xe6   :  { %7358 = vst [vmem:[#allocation73_spill] sm:$0xff] %v6146_v15  ;;  %1342 = vmatpush.msrb.mxu1 %v6002_v31  ;;  %1470 = vmatpush.msra.mxu0 %v5780_v63  ;;  %v7363_v15 = vmov 0.0  }
  0xe7   :  { %1371 = vmatpush.msra.mxu2 %v5968_v48 }
  0xe8   :  { %v6151_v43 = vpop.f32.mrf.mxu0  ;;  %1344 = vmatpush.msrb.mxu1 %v6022_v56  ;;  %1472 = vmatpush.msra.mxu0 %v5804_v11 }
  0xe9   :  { %7359 = vst [vmem:[#allocation74_spill] sm:$0xff] %v6151_v43  ;;  %1111 = vmatmul.f32.vlgmr.msra.gmra.mxu3 %v7229_v39  ;;  %1348 = vmatmul.f32.vlgmr.msrb.gmra.mxu1 %v7229_v39 }
  0xea   :  { %1406 = vmatpush.msra.mxu3 %v5886_v27  ;;  %1375 = vmatpush.msra.mxu2 %v5991_v57 }
  0xeb   :  { %1218 = vmatmul.f32.vlgmr.msrb.gmra.mxu2 %v7229_v39  ;;  %1505 = vmatpush.msra.mxu1 %v5778_v62 }
  0xec   :  { %v6161_v26 = vpop.f32.mrf.mxu3  ;;  %1408 = vmatpush.msra.mxu3 %v5900_v38  ;;  %1379 = vmatpush.msra.mxu2 %v6000_v34 }
  0xed   :  { %1511 = vmatpush.msra.mxu1 %v5802_v8  ;;  %v6167_v12 = vpop.f32.mrf.mxu2  ;;  %v6169_v43 = vpop.f32.mrf.mxu1  ;;  %1474 = vmatpush.msra.mxu0 %v5829_v5 }
  0xee   :  { %7360 = vst [vmem:[#allocation75_spill] sm:$0xff] %v6167_v12  ;;  %1410 = vmatpush.msra.mxu3 %v5923_v59  ;;  %1383 = vmatpush.msra.mxu2 %v6020_v1 }
  0xef   :  { %7361 = vst [vmem:[#allocation76_spill] sm:$0xff] %v6169_v43  ;;  %1517 = vmatpush.msra.mxu1 %v5827_v22  ;;  %1476 = vmatpush.msra.mxu0 %v5852_v50 }
  0xf0   :  { %v6175_v39 = vpop.f32.mrf.mxu0  ;;  %1412 = vmatpush.msra.mxu3 %v5946_v14  ;;  %1387 = vmatpush.msra.mxu2 %v6036_v18 }
  0xf1   :  { %7362 = vst [vmem:[#allocation77_spill] sm:$0xff] %v6175_v39  ;;  %1279 = vmatmul.f32.vlgmr.msrb.gmra.mxu3 %v7363_v15  ;;  %1523 = vmatpush.msra.mxu1 %v5850_v49 }
  0xf2   :  { %1414 = vmatpush.msra.mxu3 %v5963_v41  ;;  %1391 = vmatpush.msra.mxu2 %v6050_v47 }
  0xf3   :  { %1393 = vmatmul.f32.vlgmr.msra.gmra.mxu2 %v7363_v15  ;;  %1529 = vmatpush.msra.mxu1 %v5882_v20 }
  0xf4   :  { %v6185_v43 = vpop.f32.mrf.mxu3  ;;  %1416 = vmatpush.msra.mxu3 %v5979_v44  ;;  %1563 = vmatpush.msrb.mxu2 %v5766_v52 }
  0xf5   :  { %7364 = vst [vmem:[#allocation78_spill] sm:$0xff] %v6185_v43  ;;  %1535 = vmatpush.msra.mxu1 %v5928_v17  ;;  %v6191_v39 = vpop.f32.mrf.mxu2  ;;  %v6193_v40 = vpop.f32.mrf.mxu1  ;;  %1478 = vmatpush.msra.mxu0 %v5869_v6 }
  0xf6   :  { %7365 = vst [vmem:[#allocation79_spill] sm:$0xff] %v6191_v39  ;;  %1418 = vmatpush.msra.mxu3 %v6002_v31  ;;  %1566 = vmatpush.msrb.mxu2 %v5785_v0 }
  0xf7   :  { %7366 = vst [vmem:[#allocation80_spill] sm:$0xff] %v6193_v40  ;;  %1541 = vmatpush.msra.mxu1 %v5950_v33  ;;  %v7368_v40 = vld [vmem:[#allocation21_spill] sm:$0xff]  ;;  %1480 = vmatpush.msra.mxu0 %v5880_v4  ;;  %v7377_v33 = vld [vmem:[#allocation14_spill] sm:$0xff] }
  0xf8   :  { %v6199_v43 = vpop.f32.mrf.mxu0  ;;  %1420 = vmatpush.msra.mxu3 %v6022_v56  ;;  %1569 = vmatpush.msrb.mxu2 %v5813_v9 }
  0xf9   :  { %7367 = vst [vmem:[#allocation81_spill] sm:$0xff] %v6199_v43  ;;  %1422 = vmatmul.f32.vlgmr.msra.gmra.mxu3 %v7363_v15  ;;  %1547 = vmatpush.msra.mxu1 %v5975_v60  ;;  %v7370_v43 = vld [vmem:[#allocation26_spill] sm:$0xff]  ;;  %v7376_v60 = vld [vmem:[#allocation35_spill] sm:$0xff] }
  0xfa   :  { %1600 = vmatpush.msrb.mxu3 %v5762_v46  ;;  %1572 = vmatpush.msrb.mxu2 %v7368_v40 }
  0xfb   :  { %1676 = vmatpush.msrb.mxu1 %v5762_v46  ;;  %1482 = vmatpush.msra.mxu0 %v5896_v45 }
  0xfc   :  { %v6209_v39 = vpop.f32.mrf.mxu3  ;;  %1602 = vmatpush.msrb.mxu3 %v5780_v63  ;;  %1575 = vmatpush.msrb.mxu2 %v7370_v43 }
  0xfd   :  { %7369 = vst [vmem:[#allocation82_spill] sm:$0xff] %v6209_v39  ;;  %1678 = vmatpush.msrb.mxu1 %v5780_v63  ;;  %v6215_v15 = vpop.f32.mrf.mxu2  ;;  %v6217_v12 = vpop.f32.mrf.mxu1  ;;  %1633 = vmatpush.msrb.mxu0 %v7374_v7 }
  0xfe   :  { %7371 = vst [vmem:[#allocation83_spill] sm:$0xff] %v6215_v15  ;;  %1604 = vmatpush.msrb.mxu3 %v5804_v11  ;;  %1578 = vmatpush.msrb.mxu2 %v7373_v51 }
  0xff   :  { %7372 = vst [vmem:[#allocation84_spill] sm:$0xff] %v6217_v12  ;;  %1680 = vmatpush.msrb.mxu1 %v5804_v11  ;;  %1637 = vmatpush.msrb.mxu0 %v7377_v33  ;;  %v7378_v12 = vld [vmem:[#allocation38_spill] sm:$0xff] }
 0x100   :  { %v6223_v39 = vpop.f32.mrf.mxu0  ;;  %1606 = vmatpush.msrb.mxu3 %v5829_v5  ;;  %1581 = vmatpush.msrb.mxu2 %v7376_v60  ;;  %v7423_v60 = vld [vmem:[#allocation15_spill] sm:$0xff] }
 0x101   :  { %7375 = vst [vmem:[#allocation85_spill] sm:$0xff] %v6223_v39  ;;  %1682 = vmatpush.msrb.mxu1 %v5829_v5  ;;  %v7380_v39 = vld [vmem:[#allocation19_spill] sm:$0xff] }
 0x102   :  { %1608 = vmatpush.msrb.mxu3 %v5852_v50  ;;  %1584 = vmatpush.msrb.mxu2 %v7378_v12 }
 0x103   :  { %1684 = vmatpush.msrb.mxu1 %v5852_v50  ;;  %1641 = vmatpush.msrb.mxu0 %v7380_v39  ;;  %v7384_v39 = vld [vmem:[#allocation45_spill] sm:$0xff] }
 0x104   :  { %1705 = vmatpush.msra.mxu2 %v5886_v27  ;;  %v6233_v15 = vpop.f32.mrf.mxu3  ;;  %1610 = vmatpush.msrb.mxu3 %v5869_v6 }
 0x105   :  { %7379 = vst [vmem:[#allocation86_spill] sm:$0xff] %v6233_v15  ;;  %1686 = vmatpush.msrb.mxu1 %v5869_v6  ;;  %v6239_v7 = vpop.f32.mrf.mxu2  ;;  %v6241_v33 = vpop.f32.mrf.mxu1  ;;  %1645 = vmatpush.msrb.mxu0 %v5843_v54  ;;  %v7389_v54 = vld [vmem:[#allocation53_spill] sm:$0xff] }
 0x106   :  { %1707 = vmatpush.msra.mxu2 %v5900_v38  ;;  %7381 = vst [vmem:[#allocation87_spill] sm:$0xff] %v6239_v7  ;;  %1612 = vmatpush.msrb.mxu3 %v5880_v4 }
 0x107   :  { %7382 = vst [vmem:[#allocation88_spill] sm:$0xff] %v6241_v33  ;;  %1688 = vmatpush.msrb.mxu1 %v5880_v4  ;;  %1649 = vmatpush.msrb.mxu0 %v5866_v2  ;;  %v7385_v33 = vld [vmem:[#allocation47_spill] sm:$0xff] }
 0x108   :  { %1709 = vmatpush.msra.mxu2 %v5923_v59  ;;  %v6247_v15 = vpop.f32.mrf.mxu0  ;;  %1614 = vmatpush.msrb.mxu3 %v5896_v45 }
 0x109   :  { %7383 = vst [vmem:[#allocation89_spill] sm:$0xff] %v6247_v15  ;;  %1690 = vmatpush.msrb.mxu1 %v5896_v45  ;;  %1653 = vmatpush.msrb.mxu0 %v5891_v30 }
 0x10a   :  { %1742 = vmatpush.msra.mxu3 %v7384_v39  ;;  %1711 = vmatpush.msra.mxu2 %v5946_v14 }
 0x10b   :  { %1657 = vmatpush.msrb.mxu0 %v5915_v53 }
 0x10c   :  { %1748 = vmatpush.msra.mxu3 %v7385_v33  ;;  %1713 = vmatpush.msra.mxu2 %v5963_v41  ;;  %v6257_v7 = vpop.f32.mrf.mxu3 }
 0x10d   :  { %7386 = vst [vmem:[#allocation90_spill] sm:$0xff] %v6257_v7  ;;  %v6262_v15 = vpop.f32.mrf.mxu2  ;;  %v6264_v2 = vpop.f32.mrf.mxu1  ;;  %1661 = vmatpush.msrb.mxu0 %v5941_v28 }
 0x10e   :  { %1754 = vmatpush.msra.mxu3 %v6009_v13  ;;  %1715 = vmatpush.msra.mxu2 %v5979_v44  ;;  %7387 = vst [vmem:[#allocation91_spill] sm:$0xff] %v6262_v15 }
 0x10f   :  { %7388 = vst [vmem:[#allocation92_spill] sm:$0xff] %v6264_v2 }
 0x110   :  { %1760 = vmatpush.msra.mxu3 %v7389_v54  ;;  %1717 = vmatpush.msra.mxu2 %v6002_v31  ;;  %v693_v7 = vpop.f32.mrf.mxu0 }
 0x112   :  { %1766 = vmatpush.msra.mxu3 %v6043_v61  ;;  %1719 = vmatpush.msra.mxu2 %v6022_v56 }
 0x114   :  { %1772 = vmatpush.msra.mxu3 %v6062_v37  ;;  %v6272_v53 = vpop.f32.mrf.mxu3 }
 0x115   :  { %7390 = vst [vmem:[#allocation93_spill] sm:$0xff] %v6272_v53  ;;  %v6275_v15 = vpop.f32.mrf.mxu2  ;;  %v755_v2 = vpop.f32.mrf.mxu1 }
 0x116   :  { %1778 = vmatpush.msra.mxu3 %v6074_v25  ;;  %7391 = vst [vmem:[#allocation94_spill] sm:$0xff] %v6275_v15 }
 0x118   :  { %1784 = vmatpush.msra.mxu3 %v6080_v3  ;;  %v6278_v28 = vpop.f32.mrf.mxu0 }
 0x119   :  { %7392 = vst [vmem:[#allocation95_spill] sm:$0xff] %v6278_v28 }
 0x11c   :  { %v6280_v30 = vpop.f32.mrf.mxu3 }
 0x11d   :  { %7393 = vst [vmem:[#allocation96_spill] sm:$0xff] %v6280_v30  ;;  %v6282_v54 = vpop.f32.mrf.mxu2  ;;  %v6284_v61 = vpop.f32.mrf.mxu1 }
 0x11e   :  { %7394 = vst [vmem:[#allocation97_spill] sm:$0xff] %v6282_v54 }
 0x11f   :  { %7395 = vst [vmem:[#allocation98_spill] sm:$0xff] %v6284_v61 }
 0x120   :  { %v6288_v37 = vpop.f32.mrf.mxu0 }
 0x121   :  { %7397 = vst [vmem:[#allocation100_spill] sm:$0xff] %v6288_v37 }
 0x124   :  { %v6286_v13 = vpop.f32.mrf.mxu3 }
 0x125   :  { %7396 = vst [vmem:[#allocation99_spill] sm:$0xff] %v6286_v13  ;;  %v830_v53 = vpop.f32.mrf.mxu2  ;;  %v6290_v33 = vpop.f32.mrf.mxu1 }
 0x126   :  { %7398 = vst [vmem:[#allocation101_spill] sm:$0xff] %v6290_v33 }
 0x128   :  { %v6294_v39 = vpop.f32.mrf.mxu0 }
 0x129   :  { %7400 = vst [vmem:[#allocation103_spill] sm:$0xff] %v6294_v39 }
 0x12c   :  { %v883_v25 = vpop.f32.mrf.mxu3 }
 0x12d   :  { %v6292_v15 = vpop.f32.mrf.mxu2  ;;  %v6296_v3 = vpop.f32.mrf.mxu1 }
 0x12e   :  { %7399 = vst [vmem:[#allocation102_spill] sm:$0xff] %v6292_v15 }
 0x12f   :  { %7401 = vst [vmem:[#allocation104_spill] sm:$0xff] %v6296_v3 }
 0x130   :  { %v6302_v54 = vpop.f32.mrf.mxu0 }
 0x131   :  { %7404 = vst [vmem:[#allocation107_spill] sm:$0xff] %v6302_v54 }
 0x134   :  { %v6298_v28 = vpop.f32.mrf.mxu3 }
 0x135   :  { %7402 = vst [vmem:[#allocation105_spill] sm:$0xff] %v6298_v28  ;;  %v6300_v30 = vpop.f32.mrf.mxu2  ;;  %v6306_v13 = vpop.f32.mrf.mxu1 }
 0x136   :  { %7403 = vst [vmem:[#allocation106_spill] sm:$0xff] %v6300_v30 }
 0x137   :  { %7406 = vst [vmem:[#allocation109_spill] sm:$0xff] %v6306_v13 }
 0x138   :  { %v6310_v33 = vpop.f32.mrf.mxu0 }
 0x139   :  { %7408 = vst [vmem:[#allocation111_spill] sm:$0xff] %v6310_v33 }
 0x13c   :  { %v6304_v61 = vpop.f32.mrf.mxu3 }
 0x13d   :  { %7405 = vst [vmem:[#allocation108_spill] sm:$0xff] %v6304_v61  ;;  %v6308_v37 = vpop.f32.mrf.mxu2  ;;  %v6316_v39 = vpop.f32.mrf.mxu1 }
 0x13e   :  { %7407 = vst [vmem:[#allocation110_spill] sm:$0xff] %v6308_v37 }
 0x13f   :  { %7411 = vst [vmem:[#allocation114_spill] sm:$0xff] %v6316_v39 }
 0x140   :  { %v6320_v28 = vpop.f32.mrf.mxu0 }
 0x141   :  { %7413 = vst [vmem:[#allocation116_spill] sm:$0xff] %v6320_v28 }
 0x144   :  { %v6312_v45 = vpop.f32.mrf.mxu3 }
 0x145   :  { %7409 = vst [vmem:[#allocation112_spill] sm:$0xff] %v6312_v45  ;;  %v6314_v15 = vpop.f32.mrf.mxu2  ;;  %v6324_v54 = vpop.f32.mrf.mxu1 }
 0x146   :  { %7410 = vst [vmem:[#allocation113_spill] sm:$0xff] %v6314_v15 }
 0x147   :  { %7415 = vst [vmem:[#allocation118_spill] sm:$0xff] %v6324_v54 }
 0x148   :  { %v6330_v37 = vpop.f32.mrf.mxu0 }
 0x149   :  { %7418 = vst [vmem:[#allocation121_spill] sm:$0xff] %v6330_v37 }
 0x14c   :  { %v6318_v3 = vpop.f32.mrf.mxu3 }
 0x14d   :  { %7412 = vst [vmem:[#allocation115_spill] sm:$0xff] %v6318_v3  ;;  %v6322_v30 = vpop.f32.mrf.mxu2  ;;  %v6332_v33 = vpop.f32.mrf.mxu1 }
 0x14e   :  { %7414 = vst [vmem:[#allocation117_spill] sm:$0xff] %v6322_v30 }
 0x14f   :  { %7419 = vst [vmem:[#allocation122_spill] sm:$0xff] %v6332_v33 }
 0x150   :  { %v982_v39 = vpop.f32.mrf.mxu0 }
 0x154   :  { %v6326_v61 = vpop.f32.mrf.mxu3 }
 0x155   :  { %7416 = vst [vmem:[#allocation119_spill] sm:$0xff] %v6326_v61  ;;  %v6328_v13 = vpop.f32.mrf.mxu2  ;;  %v1043_v28 = vpop.f32.mrf.mxu1  ;;  %v6341_v61 = vperm.slane %v7423_v60, 1 }
 0x156   :  { %7417 = vst [vmem:[#allocation120_spill] sm:$0xff] %v6328_v13 }
 0x157   :  { %v539_v37 = vadd.f32 %v6144_v32, %v6341_v61  ;;  %v1044_v32 = vadd.f32 %v1043_v28, %v982_v39 }
 0x158   :  { %v1157_v30 = vpop.f32.mrf.mxu0 }
 0x15c   :  { %v6334_v45 = vpop.f32.mrf.mxu3 }
 0x15d   :  { %7420 = vst [vmem:[#allocation123_spill] sm:$0xff] %v6334_v45  ;;  %v6336_v15 = vpop.f32.mrf.mxu2  ;;  %v1186_v54 = vpop.f32.mrf.mxu1  ;;  %v636_v45 = vadd.f32 %v6161_v26, %v539_v37 }
 0x15e   :  { %7421 = vst [vmem:[#allocation124_spill] sm:$0xff] %v6336_v15 }
 0x15f   :  { %v694_v50 = vadd.f32 %v693_v7, %v636_v45  ;;  %v7424_v7 = vld [vmem:[#allocation27_spill] sm:$0xff] }
 0x160   :  { %v1318_v6 = vpop.f32.mrf.mxu0 }
 0x161   :  { %v756_v17 = vadd.f32 %v755_v2, %v694_v50 }
 0x163   :  { %v831_v40 = vadd.f32 %v830_v53, %v756_v17 }
 0x164   :  { %v6338_v3 = vpop.f32.mrf.mxu3 }
 0x165   :  { %7422 = vst [vmem:[#allocation125_spill] sm:$0xff] %v6338_v3  ;;  %v1081_v12 = vpop.f32.mrf.mxu2  ;;  %v884_v60 = vadd.f32 %v883_v25, %v831_v40 }
 0x166   :  { %v1349_v51 = vpop.f32.mrf.mxu1  ;;  %v1082_v37 = vadd.f32 %v1081_v12, %v1044_v32  ;;  %v7427_v32 = vld [vmem:[#allocation18_spill] sm:$0xff] }
 0x16c   :  { %v1112_v4 = vpop.f32.mrf.mxu3 }
 0x16e   :  { %v1219_v13 = vpop.f32.mrf.mxu2 }
 0x174   :  { %v1280_v33 = vpop.f32.mrf.mxu3 }
 0x175   :  { %v1281_v15 = vadd.f32 %v1280_v33, %v1219_v13  ;;  %v1113_v33 = vadd.f32 %v1112_v4, %v1082_v37  ;;  %v7428_v37 = vld [vmem:[#allocation16_spill] sm:$0xff] }
 0x176   :  { %v1394_v43 = vpop.f32.mrf.mxu2 }
 0x177   :  { %v1319_v3 = vadd.f32 %v1318_v6, %v1281_v15  ;;  %v1158_v13 = vadd.f32 %v1157_v30, %v1113_v33  ;;  %v429_v6 = vadd.f32 %v6095_v24, %v7424_v7  ;;  %v7425_v15 = vld [vmem:[#allocation13_spill] sm:$0xff]  ;;  %v7431_v7 = vld [vmem:[#allocation20_spill] sm:$0xff] }
 0x178   :  { %v7429_v33 = vld [vmem:[#allocation33_spill] sm:$0xff] }
 0x179   :  { %v1350_v5 = vadd.f32 %v1349_v51, %v1319_v3  ;;  %v1187_v50 = vadd.f32 %v1186_v54, %v1158_v13  ;;  %v482_v2 = vadd.f32 %v6107_v16, %v429_v6  ;;  %v7430_v13 = vld [vmem:[#allocation21_spill] sm:$0xff] }
 0x17a   :  { %v7432_v6 = vld [vmem:[#allocation41_spill] sm:$0xff] }
 0x17b   :  { %v1395_v20 = vadd.f32 %v1394_v43, %v1350_v5  ;;  %v1426_v5 = vadd.f32 %v1187_v50, %v482_v2  ;;  %v7433_v50 = vld [vmem:[#allocation26_spill] sm:$0xff]  ;;  %v7434_v2 = vld [vmem:[#allocation25_spill] sm:$0xff] }
 0x17c   :  { %v1423_v11 = vpop.f32.mrf.mxu3 }
 0x17d   :  { %v1424_v9 = vadd.f32 %v1423_v11, %v1395_v20  ;;  %v1428_v45 = vmul.f32 0.5, %v1426_v5  ;;  %v7435_v5 = vld [vmem:[#allocation44_spill] sm:$0xff] }
 0x17f   :  { %v1427_v49 = vadd.f32 %v1424_v9, %v884_v60  ;;  %v7426_v60 = vld [vmem:[#allocation24_spill] sm:$0xff] }
 0x181   :  { %5292 = vtanh.f32 %v1427_v49  ;;  %v1429_v54 = vmul.f32 0.5, %v1427_v49 }
 0x182   :  { %5294 = vtanh.f32 %v1428_v45  ;;  %v7436_v45 = vld [vmem:[#allocation31_spill] sm:$0xff] }
 0x187   :  { %v5293_v63 = vpop.eup %5292 }
 0x188   :  { %1439 = vrot.lane.b32.xlu0 %v5293_v63, %s5441_s3  ;;  %v5295_v11 = vpop.eup %5294 }
 0x189   :  { %v1432_v9 = vmul.f32 0.5, %v5295_v11  ;;  %v7437_v11 = vld [vmem:[#allocation29_spill] sm:$0xff] }
 0x18b   :  { %v1434_v20 = vadd.f32 0.5, %v1432_v9  ;;  %v7438_v9 = vld [vmem:[#allocation46_spill] sm:$0xff] }
 0x18d   :  { %v1437_v63 = vmul.f32 0.0, %v1434_v20 }
 0x1fa   :  { %v1440_v53 = vpop.permute.xlu0 %1439 }
 0x1fb   :  { %v1442_v17 = vmul.f32 %v1440_v53, %v1434_v20  ;;  %v7439_v20 = vld [vmem:[#allocation35_spill] sm:$0xff]  ;;  %v7440_v53 = vld [vmem:[#allocation32_spill] sm:$0xff] }
 0x1fd   :  { %1444 = vrot.lane.b32.xlu0 %v1442_v17, %s5441_s3  ;;  %v7441_v17 = vld [vmem:[#allocation38_spill] sm:$0xff] }
 0x26f   :  { %v1445_v28 = vpop.permute.xlu0 %1444 }
 0x270   :  { %v6351_v4 = vadd.f32 %v1445_v28, %v1437_v63  ;;  %v7442_v63 = vld [vmem:[#allocation36_spill] sm:$0xff]  ;;  %v7443_v28 = vld [vmem:[#allocation45_spill] sm:$0xff] }
 0x272   :  { %5296 = vtanh.f32 %v6351_v4 }
 0x273   :  { %5298 = vtanh.f32 %v1429_v54  ;;  %v7445_v54 = vld [vmem:[#allocation12_spill] sm:$0xff] }
 0x278   :  { %v5297_v30 = vpop.eup %5296 }
 0x279   :  { %1450 = vrot.lane.b32.xlu1 %v5297_v30, %s5441_s3  ;;  %v5299_v12 = vpop.eup %5298  ;;  %v7444_v30 = vld [vmem:[#allocation47_spill] sm:$0xff] }
 0x27a   :  { %v1433_v25 = vmul.f32 0.5, %v5299_v12  ;;  %v7446_v12 = vld [vmem:[#allocation51_spill] sm:$0xff] }
 0x27c   :  { %v1435_v3 = vadd.f32 0.5, %v1433_v25  ;;  %v7447_v25 = vld [vmem:[#allocation14_spill] sm:$0xff] }
 0x2eb   :  { %v1451_v16 = vpop.permute.xlu1 %1450 }
 0x2ec   :  { %v1453_v51 = vmul.f32 %v1451_v16, %v1435_v3  ;;  %v7448_v3 = vld [vmem:[#allocation53_spill] sm:$0xff]  ;;  %v7449_v16 = vld [vmem:[#allocation19_spill] sm:$0xff] }
 0x2ee   :  { %v1457_v24 = vsel %vm948_vm2, %v1453_v51, 0  ;;  %v7450_v51 = vld [vmem:[#allocation54_spill] sm:$0xff] }
 0x2ef   :  { %v1483_v39 = vand.u32 4294901760, %v1457_v24 }
 0x2f1   :  { %v1484_v43 = vsub.f32 %v1457_v24, %v1483_v39  ;;  %1549 = vmatmul.f32.vlgmr.msra.gmra.mxu1 %v1483_v39  ;;  %v7451_v24 = vld [vmem:[#allocation23_spill] sm:$0xff] }
 0x2f2   :  { %1837 = vmatpush.msra.mxu1 %v5886_v27 }
 0x2f3   :  { %v1485_v26 = vand.u32 4294901760, %v1484_v43  ;;  %1587 = vmatmul.f32.vlgmr.msrb.gmra.mxu2 %v1484_v43 }
 0x2f4   :  { %1839 = vmatpush.msra.mxu1 %v5900_v38  ;;  %1870 = vmatpush.msrb.mxu2 %v5921_v58 }
 0x2f5   :  { %v1486_v49 = vsub.f32 %v1484_v43, %v1485_v26  ;;  %1618 = vmatmul.f32.vlgmr.msrb.gmra.mxu3 %v1485_v26 }
 0x2f6   :  { %1841 = vmatpush.msra.mxu1 %v5923_v59  ;;  %1874 = vmatpush.msrb.mxu2 %v5944_v42 }
 0x2f7   :  { %1913 = vmatpush.msrb.mxu3 %v5886_v27  ;;  %v1487_v40 = vand.u32 4294901760, %v1486_v49  ;;  %v7455_v49 = vld [vmem:[#allocation34_spill] sm:$0xff] }
 0x2f8   :  { %1843 = vmatpush.msra.mxu1 %v5946_v14  ;;  %1878 = vmatpush.msrb.mxu2 %v5968_v48 }
 0x2f9   :  { %1915 = vmatpush.msrb.mxu3 %v5900_v38  ;;  %1488 = vmatmul.f32.vlgmr.msra.gmra.mxu0 %v1487_v40 }
 0x2fa   :  { %1692 = vmatmul.f32.vlgmr.msrb.gmra.mxu1 %v1483_v39  ;;  %1800 = vmatpush.msra.mxu0 %v5903_v19 }
 0x2fb   :  { %1845 = vmatpush.msra.mxu1 %v5963_v41  ;;  %1882 = vmatpush.msrb.mxu2 %v5991_v57 }
 0x2fc   :  { %1917 = vmatpush.msrb.mxu3 %v5923_v59  ;;  %1725 = vmatmul.f32.vlgmr.msra.gmra.mxu2 %v1487_v40  ;;  %v7456_v40 = vld [vmem:[#allocation61_spill] sm:$0xff] }
 0x2fd   :  { %1803 = vmatpush.msra.mxu0 %v5926_v23  ;;  %1847 = vmatpush.msra.mxu1 %v5979_v44 }
 0x2fe   :  { %1886 = vmatpush.msrb.mxu2 %v6000_v34  ;;  %1919 = vmatpush.msrb.mxu3 %v5946_v14 }
 0x2ff   :  { %1786 = vmatmul.f32.vlgmr.msra.gmra.mxu3 %v1483_v39  ;;  %1806 = vmatpush.msra.mxu0 %v5953_v36 }
 0x300   :  { %1849 = vmatpush.msra.mxu1 %v6002_v31  ;;  %1890 = vmatpush.msrb.mxu2 %v6020_v1 }
 0x301   :  { %1921 = vmatpush.msrb.mxu3 %v5963_v41  ;;  %1809 = vmatpush.msra.mxu0 %v5971_v55 }
 0x302   :  { %1851 = vmatpush.msra.mxu1 %v6022_v56  ;;  %1894 = vmatpush.msrb.mxu2 %v6036_v18 }
 0x303   :  { %1923 = vmatpush.msrb.mxu3 %v5979_v44  ;;  %1663 = vmatmul.f32.vlgmr.msrb.gmra.mxu0 %v1483_v39 }
 0x304   :  { %1855 = vmatmul.f32.vlgmr.msra.gmra.mxu1 %v1485_v26  ;;  %1812 = vmatpush.msra.mxu0 %v5982_v29  ;;  %v7454_v26 = vld [vmem:[#allocation60_spill] sm:$0xff] }
 0x305   :  { %1898 = vmatpush.msrb.mxu2 %v6050_v47  ;;  %1925 = vmatpush.msrb.mxu3 %v6002_v31 }
 0x306   :  { %1900 = vmatmul.f32.vlgmr.msrb.gmra.mxu2 %v1483_v39  ;;  %1815 = vmatpush.msra.mxu0 %v6005_v35 }
 0x307   :  { %1927 = vmatpush.msrb.mxu3 %v6022_v56  ;;  %2012 = vmatpush.msrb.mxu1 %v5778_v62 }
 0x308   :  { %1929 = vmatmul.f32.vlgmr.msrb.gmra.mxu3 %v1483_v39  ;;  %1818 = vmatpush.msra.mxu0 %v6025_v21  ;;  %v7452_v39 = vld [vmem:[#allocation58_spill] sm:$0xff] }
 0x309   :  { %2018 = vmatpush.msrb.mxu1 %v5802_v8  ;;  %2070 = vmatpush.msra.mxu2 %v5766_v52 }
 0x30a   :  { %1821 = vmatpush.msra.mxu0 %v6039_v10  ;;  %2107 = vmatpush.msra.mxu3 %v5762_v46 }
 0x30b   :  { %1824 = vmatmul.f32.vlgmr.msra.gmra.mxu0 %v1484_v43  ;;  %2024 = vmatpush.msrb.mxu1 %v5827_v22  ;;  %v7453_v43 = vld [vmem:[#allocation28_spill] sm:$0xff] }
 0x30c   :  { %2073 = vmatpush.msra.mxu2 %v5785_v0  ;;  %2109 = vmatpush.msra.mxu3 %v7425_v15 }
 0x30d   :  { %2030 = vmatpush.msrb.mxu1 %v7426_v60  ;;  %1975 = vmatpush.msrb.mxu0 %v5762_v46 }
 0x30e   :  { %2076 = vmatpush.msra.mxu2 %v7427_v32  ;;  %2111 = vmatpush.msra.mxu3 %v7428_v37 }
 0x30f   :  { %2036 = vmatpush.msrb.mxu1 %v7429_v33  ;;  %1977 = vmatpush.msrb.mxu0 %v7425_v15 }
 0x310   :  { %2079 = vmatpush.msra.mxu2 %v7430_v13  ;;  %2113 = vmatpush.msra.mxu3 %v7431_v7 }
 0x311   :  { %2042 = vmatpush.msrb.mxu1 %v7432_v6  ;;  %1979 = vmatpush.msrb.mxu0 %v7428_v37 }
 0x312   :  { %2082 = vmatpush.msra.mxu2 %v7433_v50  ;;  %2115 = vmatpush.msra.mxu3 %v7434_v2  ;;  %v7465_v50 = vld [vmem:[#allocation98_spill] sm:$0xff] }
 0x313   :  { %2048 = vmatpush.msrb.mxu1 %v7435_v5  ;;  %1981 = vmatpush.msrb.mxu0 %v7431_v7 }
 0x314   :  { %2085 = vmatpush.msra.mxu2 %v7436_v45  ;;  %2117 = vmatpush.msra.mxu3 %v7437_v11 }
 0x315   :  { %2054 = vmatpush.msrb.mxu1 %v7438_v9  ;;  %1983 = vmatpush.msrb.mxu0 %v7434_v2 }
 0x316   :  { %2088 = vmatpush.msra.mxu2 %v7439_v20  ;;  %2119 = vmatpush.msra.mxu3 %v7440_v53  ;;  %v7461_v20 = vld [vmem:[#allocation70_spill] sm:$0xff] }
 0x317   :  { %2183 = vmatpush.msra.mxu1 %v5762_v46  ;;  %1985 = vmatpush.msrb.mxu0 %v7437_v11 }
 0x318   :  { %2091 = vmatpush.msra.mxu2 %v7441_v17  ;;  %2121 = vmatpush.msra.mxu3 %v7442_v63  ;;  %v7460_v17 = vld [vmem:[#allocation67_spill] sm:$0xff] }
 0x319   :  { %2185 = vmatpush.msra.mxu1 %v7425_v15  ;;  %1987 = vmatpush.msrb.mxu0 %v7440_v53 }
 0x31a   :  { %2212 = vmatpush.msrb.mxu2 %v5886_v27  ;;  %2249 = vmatpush.msrb.mxu3 %v7443_v28 }
 0x31b   :  { %2187 = vmatpush.msra.mxu1 %v7428_v37  ;;  %1989 = vmatpush.msrb.mxu0 %v7442_v63 }
 0x31c   :  { %2214 = vmatpush.msrb.mxu2 %v5900_v38  ;;  %2255 = vmatpush.msrb.mxu3 %v7444_v30 }
 0x31d   :  { %2189 = vmatpush.msra.mxu1 %v7431_v7  ;;  %2140 = vmatpush.msra.mxu0 %v7445_v54 }
 0x31e   :  { %2216 = vmatpush.msrb.mxu2 %v5923_v59  ;;  %2261 = vmatpush.msrb.mxu3 %v7446_v12 }
 0x31f   :  { %2191 = vmatpush.msra.mxu1 %v7434_v2  ;;  %2144 = vmatpush.msra.mxu0 %v7447_v25 }
 0x320   :  { %2218 = vmatpush.msrb.mxu2 %v5946_v14  ;;  %2267 = vmatpush.msrb.mxu3 %v7448_v3 }
 0x321   :  { %2193 = vmatpush.msra.mxu1 %v7437_v11  ;;  %2148 = vmatpush.msra.mxu0 %v7449_v16  ;;  %v7457_v16 = vld [vmem:[#allocation39_spill] sm:$0xff] }
 0x322   :  { %2220 = vmatpush.msrb.mxu2 %v5963_v41  ;;  %2273 = vmatpush.msrb.mxu3 %v7450_v51  ;;  %v7458_v51 = vld [vmem:[#allocation43_spill] sm:$0xff] }
 0x323   :  { %2195 = vmatpush.msra.mxu1 %v7440_v53  ;;  %2152 = vmatpush.msra.mxu0 %v7451_v24 }
 0x324   :  { %2222 = vmatpush.msrb.mxu2 %v5979_v44  ;;  %2279 = vmatpush.msrb.mxu3 %v7452_v39 }
 0x325   :  { %2197 = vmatpush.msra.mxu1 %v7442_v63  ;;  %2156 = vmatpush.msra.mxu0 %v7453_v43  ;;  %v7459_v63 = vld [vmem:[#allocation37_spill] sm:$0xff] }
 0x326   :  { %2224 = vmatpush.msrb.mxu2 %v6002_v31  ;;  %2285 = vmatpush.msrb.mxu3 %v7454_v26  ;;  %v433_v26 = vadd.f32 %v7460_v17, %v7459_v63 }
 0x327   :  { %2160 = vmatpush.msra.mxu0 %v7455_v49 }
 0x328   :  { %2226 = vmatpush.msrb.mxu2 %v6022_v56  ;;  %2291 = vmatpush.msrb.mxu3 %v7456_v40  ;;  %v486_v40 = vadd.f32 %v7461_v20, %v433_v26 }
 0x329   :  { %2164 = vmatpush.msra.mxu0 %v7457_v16  ;;  %v7462_v16 = vld [vmem:[#allocation75_spill] sm:$0xff] }
 0x32a   :  { %v547_v9 = vadd.f32 %v7462_v16, %v6341_v61  ;;  %v7467_v16 = vld [vmem:[#allocation105_spill] sm:$0xff] }
 0x32b   :  { %2168 = vmatpush.msra.mxu0 %v7458_v51 }
 0x36e   :  { %v1550_v24 = vpop.f32.mrf.mxu1 }
 0x376   :  { %v1489_v3 = vpop.f32.mrf.mxu0  ;;  %v1588_v12 = vpop.f32.mrf.mxu2 }
 0x377   :  { %v1551_v25 = vadd.f32 %v1550_v24, %v1489_v3  ;;  %v1693_v43 = vpop.f32.mrf.mxu1  ;;  %v7463_v3 = vld [vmem:[#allocation78_spill] sm:$0xff] }
 0x378   :  { %v1619_v39 = vpop.f32.mrf.mxu3  ;;  %v640_v24 = vadd.f32 %v7463_v3, %v547_v9 }
 0x379   :  { %v1589_v54 = vadd.f32 %v1588_v12, %v1551_v25 }
 0x37b   :  { %v1620_v30 = vadd.f32 %v1619_v39, %v1589_v54  ;;  %v7464_v54 = vld [vmem:[#allocation95_spill] sm:$0xff] }
 0x37c   :  { %v699_v39 = vadd.f32 %v7464_v54, %v640_v24 }
 0x37e   :  { %v762_v17 = vadd.f32 %v7465_v50, %v699_v39 }
 0x37f   :  { %v1726_v49 = vpop.f32.mrf.mxu2 }
 0x380   :  { %v1664_v28 = vpop.f32.mrf.mxu0 }
 0x381   :  { %v1665_v53 = vadd.f32 %v1664_v28, %v1620_v30  ;;  %v1856_v2 = vpop.f32.mrf.mxu1  ;;  %v7466_v30 = vld [vmem:[#allocation102_spill] sm:$0xff] }
 0x382   :  { %v1787_v11 = vpop.f32.mrf.mxu3  ;;  %v835_v20 = vadd.f32 %v7466_v30, %v762_v17 }
 0x383   :  { %v1694_v51 = vadd.f32 %v1693_v43, %v1665_v53  ;;  %v1788_v12 = vadd.f32 %v1787_v11, %v1726_v49 }
 0x384   :  { %v888_v53 = vadd.f32 %v7467_v16, %v835_v20 }
 0x385   :  { %v1933_v45 = vadd.f32 %v1694_v51, %v486_v40 }
 0x387   :  { %v1935_v11 = vmul.f32 0.5, %v1933_v45 }
 0x388   :  { %v1825_v25 = vpop.f32.mrf.mxu0 }
 0x389   :  { %v1826_v5 = vadd.f32 %v1825_v25, %v1788_v12  ;;  %v1901_v28 = vpop.f32.mrf.mxu2 }
 0x38b   :  { %v1857_v63 = vadd.f32 %v1856_v2, %v1826_v5  ;;  %v1930_v6 = vpop.f32.mrf.mxu3 }
 0x38d   :  { %v1902_v26 = vadd.f32 %v1901_v28, %v1857_v63 }
 0x38f   :  { %v1931_v43 = vadd.f32 %v1930_v6, %v1902_v26 }
 0x391   :  { %v1934_v51 = vadd.f32 %v1931_v43, %v888_v53  ;;  %v7468_v53 = vld [vmem:[#allocation41_spill] sm:$0xff]  ;;  %v7469_v43 = vld [vmem:[#allocation26_spill] sm:$0xff] }
 0x393   :  { %5300 = vtanh.f32 %v1934_v51  ;;  %v1936_v25 = vmul.f32 0.5, %v1934_v51  ;;  %v7470_v51 = vld [vmem:[#allocation25_spill] sm:$0xff] }
 0x394   :  { %5302 = vtanh.f32 %v1935_v11  ;;  %v7472_v11 = vld [vmem:[#allocation31_spill] sm:$0xff] }
 0x399   :  { %v5301_v9 = vpop.eup %5300 }
 0x39a   :  { %1946 = vrot.lane.b32.xlu1 %v5301_v9, %s5441_s3  ;;  %v5303_v49 = vpop.eup %5302  ;;  %v7471_v9 = vld [vmem:[#allocation44_spill] sm:$0xff] }
 0x39b   :  { %v1939_v40 = vmul.f32 0.5, %v5303_v49  ;;  %v7473_v49 = vld [vmem:[#allocation29_spill] sm:$0xff] }
 0x39d   :  { %v1941_v3 = vadd.f32 0.5, %v1939_v40  ;;  %v7474_v40 = vld [vmem:[#allocation46_spill] sm:$0xff] }
 0x39f   :  { %v1944_v5 = vmul.f32 %v1941_v3, %v6351_v4 }
 0x40c   :  { %v1947_v50 = vpop.permute.xlu1 %1946 }
 0x40d   :  { %v1949_v2 = vmul.f32 %v1947_v50, %v1941_v3  ;;  %v7475_v3 = vld [vmem:[#allocation35_spill] sm:$0xff]  ;;  %v7476_v50 = vld [vmem:[#allocation32_spill] sm:$0xff] }
 0x40f   :  { %1951 = vrot.lane.b32.xlu2 %v1949_v2, %s5441_s3  ;;  %v7477_v2 = vld [vmem:[#allocation38_spill] sm:$0xff] }
 0x469   :  { %v1952_v24 = vpop.permute.xlu2 %1951 }
 0x46a   :  { %v6465_v12 = vadd.f32 %v1952_v24, %v1944_v5  ;;  %v7478_v5 = vld [vmem:[#allocation36_spill] sm:$0xff]  ;;  %v7479_v24 = vld [vmem:[#allocation45_spill] sm:$0xff] }
 0x46c   :  { %5304 = vtanh.f32 %v6465_v12 }
 0x46d   :  { %5306 = vtanh.f32 %v1936_v25  ;;  %v7481_v25 = vld [vmem:[#allocation12_spill] sm:$0xff] }
 0x472   :  { %v5305_v6 = vpop.eup %5304 }
 0x473   :  { %1957 = vrot.lane.b32.xlu2 %v5305_v6, %s5441_s3  ;;  %v5307_v45 = vpop.eup %5306  ;;  %v7480_v6 = vld [vmem:[#allocation47_spill] sm:$0xff] }
 0x474   :  { %v1940_v54 = vmul.f32 0.5, %v5307_v45  ;;  %v7482_v45 = vld [vmem:[#allocation51_spill] sm:$0xff] }
 0x476   :  { %v1942_v39 = vadd.f32 0.5, %v1940_v54  ;;  %v7483_v54 = vld [vmem:[#allocation14_spill] sm:$0xff] }
 0x4cd   :  { %v1958_v17 = vpop.permute.xlu2 %1957 }
 0x4ce   :  { %v1960_v63 = vmul.f32 %v1958_v17, %v1942_v39  ;;  %v7484_v39 = vld [vmem:[#allocation53_spill] sm:$0xff]  ;;  %v7485_v17 = vld [vmem:[#allocation19_spill] sm:$0xff] }
 0x4d0   :  { %v1964_v28 = vsel %vm948_vm2, %v1960_v63, 0  ;;  %v7486_v63 = vld [vmem:[#allocation54_spill] sm:$0xff] }
 0x4d1   :  { %v1990_v30 = vand.u32 4294901760, %v1964_v28 }
 0x4d3   :  { %v1991_v20 = vsub.f32 %v1964_v28, %v1990_v30  ;;  %2056 = vmatmul.f32.vlgmr.msrb.gmra.mxu1 %v1990_v30  ;;  %v7487_v28 = vld [vmem:[#allocation23_spill] sm:$0xff] }
 0x4d4   :  { %2344 = vmatpush.msrb.mxu1 %v5886_v27 }
 0x4d5   :  { %v1992_v4 = vand.u32 4294901760, %v1991_v20  ;;  %2094 = vmatmul.f32.vlgmr.msra.gmra.mxu2 %v1991_v20 }
 0x4d6   :  { %2346 = vmatpush.msrb.mxu1 %v5900_v38  ;;  %2377 = vmatpush.msra.mxu2 %v5921_v58 }
 0x4d7   :  { %v1993_v26 = vsub.f32 %v1991_v20, %v1992_v4  ;;  %2125 = vmatmul.f32.vlgmr.msra.gmra.mxu3 %v1992_v4 }
 0x4d8   :  { %2348 = vmatpush.msrb.mxu1 %v5923_v59  ;;  %2381 = vmatpush.msra.mxu2 %v5944_v42 }
 0x4d9   :  { %2420 = vmatpush.msra.mxu3 %v5886_v27  ;;  %v1994_v16 = vand.u32 4294901760, %v1993_v26  ;;  %v7491_v26 = vld [vmem:[#allocation34_spill] sm:$0xff] }
 0x4da   :  { %2350 = vmatpush.msrb.mxu1 %v5946_v14  ;;  %2385 = vmatpush.msra.mxu2 %v5968_v48 }
 0x4db   :  { %2422 = vmatpush.msra.mxu3 %v5900_v38  ;;  %1995 = vmatmul.f32.vlgmr.msrb.gmra.mxu0 %v1994_v16 }
 0x4dc   :  { %2199 = vmatmul.f32.vlgmr.msra.gmra.mxu1 %v1990_v30  ;;  %2307 = vmatpush.msrb.mxu0 %v5903_v19 }
 0x4dd   :  { %2352 = vmatpush.msrb.mxu1 %v5963_v41  ;;  %2389 = vmatpush.msra.mxu2 %v5991_v57 }
 0x4de   :  { %2424 = vmatpush.msra.mxu3 %v5923_v59  ;;  %2232 = vmatmul.f32.vlgmr.msrb.gmra.mxu2 %v1994_v16  ;;  %v7492_v16 = vld [vmem:[#allocation61_spill] sm:$0xff] }
 0x4df   :  { %2310 = vmatpush.msrb.mxu0 %v5926_v23  ;;  %2354 = vmatpush.msrb.mxu1 %v5979_v44 }
 0x4e0   :  { %2393 = vmatpush.msra.mxu2 %v6000_v34  ;;  %2426 = vmatpush.msra.mxu3 %v5946_v14 }
 0x4e1   :  { %2293 = vmatmul.f32.vlgmr.msrb.gmra.mxu3 %v1990_v30  ;;  %2313 = vmatpush.msrb.mxu0 %v5953_v36 }
 0x4e2   :  { %2356 = vmatpush.msrb.mxu1 %v6002_v31  ;;  %2397 = vmatpush.msra.mxu2 %v6020_v1 }
 0x4e3   :  { %2428 = vmatpush.msra.mxu3 %v5963_v41  ;;  %2316 = vmatpush.msrb.mxu0 %v5971_v55 }
 0x4e4   :  { %2358 = vmatpush.msrb.mxu1 %v6022_v56  ;;  %2401 = vmatpush.msra.mxu2 %v6036_v18 }
 0x4e5   :  { %2430 = vmatpush.msra.mxu3 %v5979_v44  ;;  %2170 = vmatmul.f32.vlgmr.msra.gmra.mxu0 %v1990_v30 }
 0x4e6   :  { %2362 = vmatmul.f32.vlgmr.msrb.gmra.mxu1 %v1992_v4  ;;  %2319 = vmatpush.msrb.mxu0 %v5982_v29  ;;  %v7490_v4 = vld [vmem:[#allocation60_spill] sm:$0xff] }
 0x4e7   :  { %2405 = vmatpush.msra.mxu2 %v6050_v47  ;;  %2432 = vmatpush.msra.mxu3 %v6002_v31 }
 0x4e8   :  { %2407 = vmatmul.f32.vlgmr.msra.gmra.mxu2 %v1990_v30  ;;  %2322 = vmatpush.msrb.mxu0 %v6005_v35 }
 0x4e9   :  { %2434 = vmatpush.msra.mxu3 %v6022_v56  ;;  %2519 = vmatpush.msra.mxu1 %v5778_v62 }
 0x4ea   :  { %2436 = vmatmul.f32.vlgmr.msra.gmra.mxu3 %v1990_v30  ;;  %2325 = vmatpush.msrb.mxu0 %v6025_v21  ;;  %v7488_v30 = vld [vmem:[#allocation58_spill] sm:$0xff] }
 0x4eb   :  { %2525 = vmatpush.msra.mxu1 %v5802_v8  ;;  %2577 = vmatpush.msrb.mxu2 %v5766_v52 }
 0x4ec   :  { %2328 = vmatpush.msrb.mxu0 %v6039_v10  ;;  %2614 = vmatpush.msrb.mxu3 %v5762_v46 }
 0x4ed   :  { %2331 = vmatmul.f32.vlgmr.msrb.gmra.mxu0 %v1991_v20  ;;  %2531 = vmatpush.msra.mxu1 %v5827_v22  ;;  %v7489_v20 = vld [vmem:[#allocation28_spill] sm:$0xff] }
 0x4ee   :  { %2580 = vmatpush.msrb.mxu2 %v5785_v0  ;;  %2616 = vmatpush.msrb.mxu3 %v7425_v15 }
 0x4ef   :  { %2537 = vmatpush.msra.mxu1 %v7426_v60  ;;  %2482 = vmatpush.msra.mxu0 %v5762_v46 }
 0x4f0   :  { %2583 = vmatpush.msrb.mxu2 %v7427_v32  ;;  %2618 = vmatpush.msrb.mxu3 %v7428_v37 }
 0x4f1   :  { %2543 = vmatpush.msra.mxu1 %v7429_v33  ;;  %2484 = vmatpush.msra.mxu0 %v7425_v15 }
 0x4f2   :  { %2586 = vmatpush.msrb.mxu2 %v7430_v13  ;;  %2620 = vmatpush.msrb.mxu3 %v7431_v7 }
 0x4f3   :  { %2549 = vmatpush.msra.mxu1 %v7468_v53  ;;  %2486 = vmatpush.msra.mxu0 %v7428_v37 }
 0x4f4   :  { %2589 = vmatpush.msrb.mxu2 %v7469_v43  ;;  %2622 = vmatpush.msrb.mxu3 %v7470_v51  ;;  %v7501_v43 = vld [vmem:[#allocation101_spill] sm:$0xff] }
 0x4f5   :  { %2555 = vmatpush.msra.mxu1 %v7471_v9  ;;  %2488 = vmatpush.msra.mxu0 %v7431_v7 }
 0x4f6   :  { %2592 = vmatpush.msrb.mxu2 %v7472_v11  ;;  %2624 = vmatpush.msrb.mxu3 %v7473_v49 }
 0x4f7   :  { %2561 = vmatpush.msra.mxu1 %v7474_v40  ;;  %2490 = vmatpush.msra.mxu0 %v7470_v51 }
 0x4f8   :  { %2595 = vmatpush.msrb.mxu2 %v7475_v3  ;;  %2626 = vmatpush.msrb.mxu3 %v7476_v50  ;;  %v7497_v3 = vld [vmem:[#allocation73_spill] sm:$0xff] }
 0x4f9   :  { %2690 = vmatpush.msrb.mxu1 %v5762_v46  ;;  %2492 = vmatpush.msra.mxu0 %v7473_v49 }
 0x4fa   :  { %2598 = vmatpush.msrb.mxu2 %v7477_v2  ;;  %2628 = vmatpush.msrb.mxu3 %v7478_v5  ;;  %v7496_v2 = vld [vmem:[#allocation71_spill] sm:$0xff] }
 0x4fb   :  { %2692 = vmatpush.msrb.mxu1 %v7425_v15  ;;  %2494 = vmatpush.msra.mxu0 %v7476_v50 }
 0x4fc   :  { %2719 = vmatpush.msra.mxu2 %v5886_v27  ;;  %2756 = vmatpush.msra.mxu3 %v7479_v24 }
 0x4fd   :  { %2694 = vmatpush.msrb.mxu1 %v7428_v37  ;;  %2496 = vmatpush.msra.mxu0 %v7478_v5 }
 0x4fe   :  { %2721 = vmatpush.msra.mxu2 %v5900_v38  ;;  %2762 = vmatpush.msra.mxu3 %v7480_v6 }
 0x4ff   :  { %2696 = vmatpush.msrb.mxu1 %v7431_v7  ;;  %2647 = vmatpush.msrb.mxu0 %v7481_v25 }
 0x500   :  { %2723 = vmatpush.msra.mxu2 %v5923_v59  ;;  %2768 = vmatpush.msra.mxu3 %v7482_v45 }
 0x501   :  { %2698 = vmatpush.msrb.mxu1 %v7470_v51  ;;  %2651 = vmatpush.msrb.mxu0 %v7483_v54 }
 0x502   :  { %2725 = vmatpush.msra.mxu2 %v5946_v14  ;;  %2774 = vmatpush.msra.mxu3 %v7484_v39 }
 0x503   :  { %2700 = vmatpush.msrb.mxu1 %v7473_v49  ;;  %2655 = vmatpush.msrb.mxu0 %v7485_v17  ;;  %v7493_v17 = vld [vmem:[#allocation39_spill] sm:$0xff] }
 0x504   :  { %2727 = vmatpush.msra.mxu2 %v5963_v41  ;;  %2780 = vmatpush.msra.mxu3 %v7486_v63  ;;  %v7494_v63 = vld [vmem:[#allocation43_spill] sm:$0xff] }
 0x505   :  { %2702 = vmatpush.msrb.mxu1 %v7476_v50  ;;  %2659 = vmatpush.msrb.mxu0 %v7487_v28 }
 0x506   :  { %2729 = vmatpush.msra.mxu2 %v5979_v44  ;;  %2786 = vmatpush.msra.mxu3 %v7488_v30 }
 0x507   :  { %2704 = vmatpush.msrb.mxu1 %v7478_v5  ;;  %2663 = vmatpush.msrb.mxu0 %v7489_v20  ;;  %v7495_v5 = vld [vmem:[#allocation48_spill] sm:$0xff] }
 0x508   :  { %2731 = vmatpush.msra.mxu2 %v6002_v31  ;;  %2792 = vmatpush.msra.mxu3 %v7490_v4  ;;  %v437_v4 = vadd.f32 %v7496_v2, %v7495_v5 }
 0x509   :  { %2667 = vmatpush.msrb.mxu0 %v7491_v26 }
 0x50a   :  { %2733 = vmatpush.msra.mxu2 %v6022_v56  ;;  %2798 = vmatpush.msra.mxu3 %v7492_v16  ;;  %v490_v16 = vadd.f32 %v7497_v3, %v437_v4 }
 0x50b   :  { %2671 = vmatpush.msrb.mxu0 %v7493_v17  ;;  %v7498_v17 = vld [vmem:[#allocation79_spill] sm:$0xff] }
 0x50c   :  { %v555_v40 = vadd.f32 %v7498_v17, %v6341_v61  ;;  %v7503_v17 = vld [vmem:[#allocation108_spill] sm:$0xff] }
 0x50d   :  { %2675 = vmatpush.msrb.mxu0 %v7494_v63 }
 0x550   :  { %v2057_v28 = vpop.f32.mrf.mxu1 }
 0x558   :  { %v1996_v39 = vpop.f32.mrf.mxu0  ;;  %v2095_v45 = vpop.f32.mrf.mxu2 }
 0x559   :  { %v2058_v54 = vadd.f32 %v2057_v28, %v1996_v39  ;;  %v2200_v20 = vpop.f32.mrf.mxu1  ;;  %v7499_v39 = vld [vmem:[#allocation82_spill] sm:$0xff] }
 0x55a   :  { %v2126_v30 = vpop.f32.mrf.mxu3  ;;  %v644_v28 = vadd.f32 %v7499_v39, %v555_v40 }
 0x55b   :  { %v2096_v25 = vadd.f32 %v2095_v45, %v2058_v54 }
 0x55d   :  { %v2127_v6 = vadd.f32 %v2126_v30, %v2096_v25  ;;  %v7500_v25 = vld [vmem:[#allocation100_spill] sm:$0xff] }
 0x55e   :  { %v704_v30 = vadd.f32 %v7500_v25, %v644_v28 }
 0x560   :  { %v768_v2 = vadd.f32 %v7501_v43, %v704_v30 }
 0x561   :  { %v2233_v26 = vpop.f32.mrf.mxu2 }
 0x562   :  { %v2171_v24 = vpop.f32.mrf.mxu0 }
 0x563   :  { %v2172_v50 = vadd.f32 %v2171_v24, %v2127_v6  ;;  %v2363_v51 = vpop.f32.mrf.mxu1  ;;  %v7502_v6 = vld [vmem:[#allocation106_spill] sm:$0xff] }
 0x564   :  { %v2294_v49 = vpop.f32.mrf.mxu3  ;;  %v839_v3 = vadd.f32 %v7502_v6, %v768_v2 }
 0x565   :  { %v2201_v63 = vadd.f32 %v2200_v20, %v2172_v50  ;;  %v2295_v45 = vadd.f32 %v2294_v49, %v2233_v26 }
 0x566   :  { %v892_v50 = vadd.f32 %v7503_v17, %v839_v3 }
 0x567   :  { %v2440_v11 = vadd.f32 %v2201_v63, %v490_v16 }
 0x569   :  { %v2442_v49 = vmul.f32 0.5, %v2440_v11 }
 0x56a   :  { %v2332_v54 = vpop.f32.mrf.mxu0 }
 0x56b   :  { %v2333_v9 = vadd.f32 %v2332_v54, %v2295_v45  ;;  %v2408_v24 = vpop.f32.mrf.mxu2 }
 0x56d   :  { %v2364_v5 = vadd.f32 %v2363_v51, %v2333_v9  ;;  %v2437_v53 = vpop.f32.mrf.mxu3 }
 0x56f   :  { %v2409_v4 = vadd.f32 %v2408_v24, %v2364_v5 }
 0x571   :  { %v2438_v20 = vadd.f32 %v2437_v53, %v2409_v4 }
 0x573   :  { %v2441_v63 = vadd.f32 %v2438_v20, %v892_v50  ;;  %v7504_v50 = vld [vmem:[#allocation41_spill] sm:$0xff]  ;;  %v7505_v20 = vld [vmem:[#allocation26_spill] sm:$0xff] }
 0x575   :  { %5308 = vtanh.f32 %v2441_v63  ;;  %v2443_v54 = vmul.f32 0.5, %v2441_v63  ;;  %v7506_v63 = vld [vmem:[#allocation25_spill] sm:$0xff] }
 0x576   :  { %5310 = vtanh.f32 %v2442_v49  ;;  %v7508_v49 = vld [vmem:[#allocation31_spill] sm:$0xff] }
 0x57b   :  { %v5309_v40 = vpop.eup %5308 }
 0x57c   :  { %2453 = vrot.lane.b32.xlu0 %v5309_v40, %s5441_s3  ;;  %v5311_v26 = vpop.eup %5310  ;;  %v7507_v40 = vld [vmem:[#allocation44_spill] sm:$0xff] }
 0x57d   :  { %v2446_v16 = vmul.f32 0.5, %v5311_v26  ;;  %v7509_v26 = vld [vmem:[#allocation29_spill] sm:$0xff] }
 0x57f   :  { %v2448_v39 = vadd.f32 0.5, %v2446_v16  ;;  %v7510_v16 = vld [vmem:[#allocation46_spill] sm:$0xff] }
 0x581   :  { %v2451_v9 = vmul.f32 %v2448_v39, %v6465_v12 }
 0x5ee   :  { %v2454_v43 = vpop.permute.xlu0 %2453 }
 0x5ef   :  { %v2456_v51 = vmul.f32 %v2454_v43, %v2448_v39  ;;  %v7511_v39 = vld [vmem:[#allocation35_spill] sm:$0xff]  ;;  %v7512_v43 = vld [vmem:[#allocation32_spill] sm:$0xff] }
 0x5f1   :  { %2458 = vrot.lane.b32.xlu1 %v2456_v51, %s5441_s3  ;;  %v7513_v51 = vld [vmem:[#allocation38_spill] sm:$0xff] }
 0x663   :  { %v2459_v28 = vpop.permute.xlu1 %2458 }
 0x664   :  { %v6579_v45 = vadd.f32 %v2459_v28, %v2451_v9  ;;  %v7514_v9 = vld [vmem:[#allocation36_spill] sm:$0xff]  ;;  %v7515_v28 = vld [vmem:[#allocation45_spill] sm:$0xff] }
 0x666   :  { %5312 = vtanh.f32 %v6579_v45 }
 0x667   :  { %5314 = vtanh.f32 %v2443_v54  ;;  %v7517_v54 = vld [vmem:[#allocation12_spill] sm:$0xff] }
 0x66c   :  { %v5313_v53 = vpop.eup %5312 }
 0x66d   :  { %2464 = vrot.lane.b32.xlu2 %v5313_v53, %s5441_s3  ;;  %v5315_v11 = vpop.eup %5314  ;;  %v7516_v53 = vld [vmem:[#allocation47_spill] sm:$0xff] }
 0x66e   :  { %v2447_v25 = vmul.f32 0.5, %v5315_v11  ;;  %v7518_v11 = vld [vmem:[#allocation51_spill] sm:$0xff] }
 0x670   :  { %v2449_v30 = vadd.f32 0.5, %v2447_v25  ;;  %v7519_v25 = vld [vmem:[#allocation14_spill] sm:$0xff] }
 0x6c7   :  { %v2465_v2 = vpop.permute.xlu2 %2464 }
 0x6c8   :  { %v2467_v5 = vmul.f32 %v2465_v2, %v2449_v30  ;;  %v7520_v30 = vld [vmem:[#allocation53_spill] sm:$0xff]  ;;  %v7521_v2 = vld [vmem:[#allocation19_spill] sm:$0xff] }
 0x6ca   :  { %v2471_v24 = vsel %vm948_vm2, %v2467_v5, 0  ;;  %v7522_v5 = vld [vmem:[#allocation54_spill] sm:$0xff] }
 0x6cb   :  { %v2497_v6 = vand.u32 4294901760, %v2471_v24 }
 0x6cd   :  { %v2498_v3 = vsub.f32 %v2471_v24, %v2497_v6  ;;  %2563 = vmatmul.f32.vlgmr.msra.gmra.mxu1 %v2497_v6  ;;  %v7523_v24 = vld [vmem:[#allocation23_spill] sm:$0xff] }
 0x6ce   :  { %2851 = vmatpush.msra.mxu1 %v5886_v27 }
 0x6cf   :  { %v2499_v12 = vand.u32 4294901760, %v2498_v3  ;;  %2601 = vmatmul.f32.vlgmr.msrb.gmra.mxu2 %v2498_v3 }
 0x6d0   :  { %2853 = vmatpush.msra.mxu1 %v5900_v38  ;;  %2884 = vmatpush.msrb.mxu2 %v5921_v58 }
 0x6d1   :  { %v2500_v4 = vsub.f32 %v2498_v3, %v2499_v12  ;;  %2632 = vmatmul.f32.vlgmr.msrb.gmra.mxu3 %v2499_v12 }
 0x6d2   :  { %2855 = vmatpush.msra.mxu1 %v5923_v59  ;;  %2888 = vmatpush.msrb.mxu2 %v5944_v42 }
 0x6d3   :  { %2927 = vmatpush.msrb.mxu3 %v5886_v27  ;;  %v2501_v17 = vand.u32 4294901760, %v2500_v4  ;;  %v7527_v4 = vld [vmem:[#allocation34_spill] sm:$0xff] }
 0x6d4   :  { %2857 = vmatpush.msra.mxu1 %v5946_v14  ;;  %2892 = vmatpush.msrb.mxu2 %v5968_v48 }
 0x6d5   :  { %2929 = vmatpush.msrb.mxu3 %v5900_v38  ;;  %2502 = vmatmul.f32.vlgmr.msra.gmra.mxu0 %v2501_v17 }
 0x6d6   :  { %2706 = vmatmul.f32.vlgmr.msrb.gmra.mxu1 %v2497_v6  ;;  %2814 = vmatpush.msra.mxu0 %v5903_v19 }
 0x6d7   :  { %2859 = vmatpush.msra.mxu1 %v5963_v41  ;;  %2896 = vmatpush.msrb.mxu2 %v5991_v57 }
 0x6d8   :  { %2931 = vmatpush.msrb.mxu3 %v5923_v59  ;;  %2739 = vmatmul.f32.vlgmr.msra.gmra.mxu2 %v2501_v17  ;;  %v7528_v17 = vld [vmem:[#allocation61_spill] sm:$0xff] }
 0x6d9   :  { %2817 = vmatpush.msra.mxu0 %v5926_v23  ;;  %2861 = vmatpush.msra.mxu1 %v5979_v44 }
 0x6da   :  { %2900 = vmatpush.msrb.mxu2 %v6000_v34  ;;  %2933 = vmatpush.msrb.mxu3 %v5946_v14 }
 0x6db   :  { %2800 = vmatmul.f32.vlgmr.msra.gmra.mxu3 %v2497_v6  ;;  %2820 = vmatpush.msra.mxu0 %v5953_v36 }
 0x6dc   :  { %2863 = vmatpush.msra.mxu1 %v6002_v31  ;;  %2904 = vmatpush.msrb.mxu2 %v6020_v1 }
 0x6dd   :  { %2935 = vmatpush.msrb.mxu3 %v5963_v41  ;;  %2823 = vmatpush.msra.mxu0 %v5971_v55 }
 0x6de   :  { %2865 = vmatpush.msra.mxu1 %v6022_v56  ;;  %2908 = vmatpush.msrb.mxu2 %v6036_v18 }
 0x6df   :  { %2937 = vmatpush.msrb.mxu3 %v5979_v44  ;;  %2677 = vmatmul.f32.vlgmr.msrb.gmra.mxu0 %v2497_v6 }
 0x6e0   :  { %2869 = vmatmul.f32.vlgmr.msra.gmra.mxu1 %v2499_v12  ;;  %2826 = vmatpush.msra.mxu0 %v5982_v29  ;;  %v7526_v12 = vld [vmem:[#allocation60_spill] sm:$0xff] }
 0x6e1   :  { %2912 = vmatpush.msrb.mxu2 %v6050_v47  ;;  %2939 = vmatpush.msrb.mxu3 %v6002_v31 }
 0x6e2   :  { %2914 = vmatmul.f32.vlgmr.msrb.gmra.mxu2 %v2497_v6  ;;  %2829 = vmatpush.msra.mxu0 %v6005_v35 }
 0x6e3   :  { %2941 = vmatpush.msrb.mxu3 %v6022_v56  ;;  %3026 = vmatpush.msrb.mxu1 %v5778_v62 }
 0x6e4   :  { %2943 = vmatmul.f32.vlgmr.msrb.gmra.mxu3 %v2497_v6  ;;  %2832 = vmatpush.msra.mxu0 %v6025_v21  ;;  %v7524_v6 = vld [vmem:[#allocation58_spill] sm:$0xff] }
 0x6e5   :  { %3032 = vmatpush.msrb.mxu1 %v5802_v8  ;;  %3084 = vmatpush.msra.mxu2 %v5766_v52 }
 0x6e6   :  { %2835 = vmatpush.msra.mxu0 %v6039_v10  ;;  %3121 = vmatpush.msra.mxu3 %v5762_v46 }
 0x6e7   :  { %2838 = vmatmul.f32.vlgmr.msra.gmra.mxu0 %v2498_v3  ;;  %3038 = vmatpush.msrb.mxu1 %v5827_v22  ;;  %v7525_v3 = vld [vmem:[#allocation28_spill] sm:$0xff] }
 0x6e8   :  { %3087 = vmatpush.msra.mxu2 %v5785_v0  ;;  %3123 = vmatpush.msra.mxu3 %v7425_v15 }
 0x6e9   :  { %3044 = vmatpush.msrb.mxu1 %v7426_v60  ;;  %2989 = vmatpush.msrb.mxu0 %v5762_v46 }
 0x6ea   :  { %3090 = vmatpush.msra.mxu2 %v7427_v32  ;;  %3125 = vmatpush.msra.mxu3 %v7428_v37 }
 0x6eb   :  { %3050 = vmatpush.msrb.mxu1 %v7429_v33  ;;  %2991 = vmatpush.msrb.mxu0 %v7425_v15 }
 0x6ec   :  { %3093 = vmatpush.msra.mxu2 %v7430_v13  ;;  %3127 = vmatpush.msra.mxu3 %v7431_v7 }
 0x6ed   :  { %3056 = vmatpush.msrb.mxu1 %v7504_v50  ;;  %2993 = vmatpush.msrb.mxu0 %v7428_v37 }
 0x6ee   :  { %3096 = vmatpush.msra.mxu2 %v7505_v20  ;;  %3129 = vmatpush.msra.mxu3 %v7506_v63  ;;  %v7541_v20 = vld [vmem:[#allocation104_spill] sm:$0xff] }
 0x6ef   :  { %3062 = vmatpush.msrb.mxu1 %v7507_v40  ;;  %2995 = vmatpush.msrb.mxu0 %v7431_v7 }
 0x6f0   :  { %3099 = vmatpush.msra.mxu2 %v7508_v49  ;;  %3131 = vmatpush.msra.mxu3 %v7509_v26 }
 0x6f1   :  { %3068 = vmatpush.msrb.mxu1 %v7510_v16  ;;  %2997 = vmatpush.msrb.mxu0 %v7506_v63 }
 0x6f2   :  { %3102 = vmatpush.msra.mxu2 %v7511_v39  ;;  %3133 = vmatpush.msra.mxu3 %v7512_v43  ;;  %v7535_v39 = vld [vmem:[#allocation55_spill] sm:$0xff] }
 0x6f3   :  { %3197 = vmatpush.msra.mxu1 %v5762_v46  ;;  %2999 = vmatpush.msrb.mxu0 %v7509_v26 }
 0x6f4   :  { %3105 = vmatpush.msra.mxu2 %v7513_v51  ;;  %3135 = vmatpush.msra.mxu3 %v7514_v9 }
 0x6f5   :  { %3199 = vmatpush.msra.mxu1 %v7425_v15  ;;  %3001 = vmatpush.msrb.mxu0 %v7512_v43 }
 0x6f6   :  { %3226 = vmatpush.msrb.mxu2 %v5886_v27  ;;  %3263 = vmatpush.msrb.mxu3 %v7515_v28 }
 0x6f7   :  { %3201 = vmatpush.msra.mxu1 %v7428_v37  ;;  %3003 = vmatpush.msrb.mxu0 %v7514_v9 }
 0x6f8   :  { %3228 = vmatpush.msrb.mxu2 %v5900_v38  ;;  %3269 = vmatpush.msrb.mxu3 %v7516_v53 }
 0x6f9   :  { %3203 = vmatpush.msra.mxu1 %v7431_v7  ;;  %3154 = vmatpush.msra.mxu0 %v7517_v54 }
 0x6fa   :  { %3230 = vmatpush.msrb.mxu2 %v5923_v59  ;;  %3275 = vmatpush.msrb.mxu3 %v7518_v11 }
 0x6fb   :  { %3205 = vmatpush.msra.mxu1 %v7506_v63  ;;  %3158 = vmatpush.msra.mxu0 %v7519_v25  ;;  %v7538_v63 = vld [vmem:[#allocation83_spill] sm:$0xff] }
 0x6fc   :  { %3232 = vmatpush.msrb.mxu2 %v5946_v14  ;;  %3281 = vmatpush.msrb.mxu3 %v7520_v30  ;;  %v7532_v30 = vld [vmem:[#allocation30_spill] sm:$0xff] }
 0x6fd   :  { %3207 = vmatpush.msra.mxu1 %v7509_v26  ;;  %3162 = vmatpush.msra.mxu0 %v7521_v2  ;;  %v7529_v2 = vld [vmem:[#allocation39_spill] sm:$0xff]  ;;  %v7536_v26 = vld [vmem:[#allocation74_spill] sm:$0xff] }
 0x6fe   :  { %3234 = vmatpush.msrb.mxu2 %v5963_v41  ;;  %3287 = vmatpush.msrb.mxu3 %v7522_v5  ;;  %v7530_v5 = vld [vmem:[#allocation43_spill] sm:$0xff] }
 0x6ff   :  { %3209 = vmatpush.msra.mxu1 %v7512_v43  ;;  %3166 = vmatpush.msra.mxu0 %v7523_v24  ;;  %v7531_v24 = vld [vmem:[#allocation17_spill] sm:$0xff] }
 0x700   :  { %3236 = vmatpush.msrb.mxu2 %v5979_v44  ;;  %3293 = vmatpush.msrb.mxu3 %v7524_v6  ;;  %v161_v25 = vadd.f32 %v7532_v30, %v7531_v24  ;;  %v7533_v6 = vld [vmem:[#allocation40_spill] sm:$0xff] }
 0x701   :  { %3211 = vmatpush.msra.mxu1 %v7514_v9  ;;  %3170 = vmatpush.msra.mxu0 %v7525_v3  ;;  %v7537_v30 = vld [vmem:[#allocation76_spill] sm:$0xff] }
 0x702   :  { %3238 = vmatpush.msrb.mxu2 %v6002_v31  ;;  %3299 = vmatpush.msrb.mxu3 %v7526_v12  ;;  %v246_v53 = vadd.f32 %v7533_v6, %v161_v25  ;;  %v7534_v12 = vld [vmem:[#allocation49_spill] sm:$0xff]  ;;  %v563_v25 = vadd.f32 %v7538_v63, %v6341_v61  ;;  %v7539_v6 = vld [vmem:[#allocation86_spill] sm:$0xff]  ;;  %v7543_v63 = vld [vmem:[#allocation112_spill] sm:$0xff] }
 0x703   :  { %3174 = vmatpush.msra.mxu0 %v7527_v4 }
 0x704   :  { %3240 = vmatpush.msrb.mxu2 %v6022_v56  ;;  %3305 = vmatpush.msrb.mxu3 %v7528_v17  ;;  %v307_v43 = vadd.f32 %v7534_v12, %v246_v53 }
 0x705   :  { %3178 = vmatpush.msra.mxu0 %v7529_v2 }
 0x706   :  { %v372_v17 = vadd.f32 %v7535_v39, %v307_v43 }
 0x707   :  { %3182 = vmatpush.msra.mxu0 %v7530_v5 }
 0x708   :  { %v441_v5 = vadd.f32 %v7536_v26, %v372_v17  ;;  %v7542_v17 = vld [vmem:[#allocation110_spill] sm:$0xff] }
 0x70a   :  { %v494_v24 = vadd.f32 %v7537_v30, %v441_v5 }
 0x74a   :  { %v2564_v11 = vpop.f32.mrf.mxu1 }
 0x752   :  { %v2503_v54 = vpop.f32.mrf.mxu0  ;;  %v2602_v28 = vpop.f32.mrf.mxu2 }
 0x753   :  { %v2565_v3 = vadd.f32 %v2564_v11, %v2503_v54  ;;  %v2707_v16 = vpop.f32.mrf.mxu1 }
 0x754   :  { %v2633_v51 = vpop.f32.mrf.mxu3 }
 0x755   :  { %v2603_v9 = vadd.f32 %v2602_v28, %v2565_v3  ;;  %v648_v3 = vadd.f32 %v7539_v6, %v563_v25 }
 0x757   :  { %v2634_v4 = vadd.f32 %v2633_v51, %v2603_v9  ;;  %v7540_v9 = vld [vmem:[#allocation103_spill] sm:$0xff] }
 0x758   :  { %v709_v39 = vadd.f32 %v7540_v9, %v648_v3 }
 0x75a   :  { %v774_v26 = vadd.f32 %v7541_v20, %v709_v39 }
 0x75b   :  { %v2740_v40 = vpop.f32.mrf.mxu2 }
 0x75c   :  { %v2678_v2 = vpop.f32.mrf.mxu0  ;;  %v843_v5 = vadd.f32 %v7542_v17, %v774_v26 }
 0x75d   :  { %v2679_v49 = vadd.f32 %v2678_v2, %v2634_v4  ;;  %v2870_v12 = vpop.f32.mrf.mxu1 }
 0x75e   :  { %v2801_v11 = vpop.f32.mrf.mxu3 }
 0x75f   :  { %v2708_v54 = vadd.f32 %v2707_v16, %v2679_v49  ;;  %v2802_v53 = vadd.f32 %v2801_v11, %v2740_v40  ;;  %v896_v49 = vadd.f32 %v7543_v63, %v843_v5 }
 0x761   :  { %v2947_v28 = vadd.f32 %v2708_v54, %v494_v24 }
 0x763   :  { %v2949_v40 = vmul.f32 0.5, %v2947_v28 }
 0x764   :  { %v2839_v51 = vpop.f32.mrf.mxu0 }
 0x765   :  { %v2840_v43 = vadd.f32 %v2839_v51, %v2802_v53  ;;  %v2915_v4 = vpop.f32.mrf.mxu2 }
 0x767   :  { %v2871_v2 = vadd.f32 %v2870_v12, %v2840_v43  ;;  %v2944_v50 = vpop.f32.mrf.mxu3 }
 0x769   :  { %v2916_v30 = vadd.f32 %v2915_v4, %v2871_v2 }
 0x76b   :  { %v2945_v16 = vadd.f32 %v2944_v50, %v2916_v30 }
 0x76d   :  { %v2948_v24 = vadd.f32 %v2945_v16, %v896_v49  ;;  %v7544_v49 = vld [vmem:[#allocation41_spill] sm:$0xff]  ;;  %v7545_v16 = vld [vmem:[#allocation26_spill] sm:$0xff] }
 0x76f   :  { %5316 = vtanh.f32 %v2948_v24  ;;  %v2950_v39 = vmul.f32 0.5, %v2948_v24  ;;  %v7546_v24 = vld [vmem:[#allocation25_spill] sm:$0xff] }
 0x770   :  { %5318 = vtanh.f32 %v2949_v40  ;;  %v7548_v40 = vld [vmem:[#allocation31_spill] sm:$0xff] }
 0x775   :  { %v5317_v25 = vpop.eup %5316 }
 0x776   :  { %2960 = vrot.lane.b32.xlu0 %v5317_v25, %s5441_s3  ;;  %v5319_v54 = vpop.eup %5318  ;;  %v7547_v25 = vld [vmem:[#allocation44_spill] sm:$0xff] }
 0x777   :  { %v2953_v11 = vmul.f32 0.5, %v5319_v54  ;;  %v7549_v54 = vld [vmem:[#allocation29_spill] sm:$0xff] }
 0x779   :  { %v2955_v6 = vadd.f32 0.5, %v2953_v11  ;;  %v7550_v11 = vld [vmem:[#allocation46_spill] sm:$0xff] }
 0x77b   :  { %v2958_v53 = vmul.f32 %v2955_v6, %v6579_v45 }
 0x7e8   :  { %v2961_v20 = vpop.permute.xlu0 %2960 }
 0x7e9   :  { %v2963_v3 = vmul.f32 %v2961_v20, %v2955_v6  ;;  %v7551_v6 = vld [vmem:[#allocation35_spill] sm:$0xff]  ;;  %v7552_v20 = vld [vmem:[#allocation32_spill] sm:$0xff] }
 0x7eb   :  { %2965 = vrot.lane.b32.xlu1 %v2963_v3, %s5441_s3  ;;  %v7553_v3 = vld [vmem:[#allocation38_spill] sm:$0xff] }
 0x85d   :  { %v2966_v51 = vpop.permute.xlu1 %2965 }
 0x85e   :  { %v6697_v9 = vadd.f32 %v2966_v51, %v2958_v53  ;;  %v7554_v53 = vld [vmem:[#allocation36_spill] sm:$0xff]  ;;  %v7555_v51 = vld [vmem:[#allocation45_spill] sm:$0xff] }
 0x860   :  { %5320 = vtanh.f32 %v6697_v9 }
 0x861   :  { %5322 = vtanh.f32 %v2950_v39  ;;  %v7557_v39 = vld [vmem:[#allocation12_spill] sm:$0xff] }
 0x866   :  { %v5321_v50 = vpop.eup %5320 }
 0x867   :  { %2971 = vrot.lane.b32.xlu2 %v5321_v50, %s5441_s3  ;;  %v5323_v28 = vpop.eup %5322  ;;  %v7556_v50 = vld [vmem:[#allocation47_spill] sm:$0xff] }
 0x868   :  { %v2954_v43 = vmul.f32 0.5, %v5323_v28  ;;  %v7558_v28 = vld [vmem:[#allocation51_spill] sm:$0xff] }
 0x86a   :  { %v2956_v12 = vadd.f32 0.5, %v2954_v43  ;;  %v7559_v43 = vld [vmem:[#allocation14_spill] sm:$0xff] }
 0x8c1   :  { %v2972_v26 = vpop.permute.xlu2 %2971 }
 0x8c2   :  { %v2974_v2 = vmul.f32 %v2972_v26, %v2956_v12  ;;  %v7560_v12 = vld [vmem:[#allocation53_spill] sm:$0xff]  ;;  %v7561_v26 = vld [vmem:[#allocation19_spill] sm:$0xff] }
 0x8c4   :  { %v2978_v4 = vsel %vm948_vm2, %v2974_v2, 0  ;;  %v7562_v2 = vld [vmem:[#allocation54_spill] sm:$0xff] }
 0x8c5   :  { %v3004_v17 = vand.u32 4294901760, %v2978_v4 }
 0x8c7   :  { %v3005_v5 = vsub.f32 %v2978_v4, %v3004_v17  ;;  %3070 = vmatmul.f32.vlgmr.msrb.gmra.mxu1 %v3004_v17  ;;  %v7563_v4 = vld [vmem:[#allocation23_spill] sm:$0xff] }
 0x8c8   :  { %3358 = vmatpush.msrb.mxu1 %v5886_v27 }
 0x8c9   :  { %v3006_v45 = vand.u32 4294901760, %v3005_v5  ;;  %3108 = vmatmul.f32.vlgmr.msra.gmra.mxu2 %v3005_v5 }
 0x8ca   :  { %3360 = vmatpush.msrb.mxu1 %v5900_v38  ;;  %3391 = vmatpush.msra.mxu2 %v5921_v58 }
 0x8cb   :  { %v3007_v30 = vsub.f32 %v3005_v5, %v3006_v45  ;;  %3139 = vmatmul.f32.vlgmr.msra.gmra.mxu3 %v3006_v45 }
 0x8cc   :  { %3362 = vmatpush.msrb.mxu1 %v5923_v59  ;;  %3395 = vmatpush.msra.mxu2 %v5944_v42 }
 0x8cd   :  { %3434 = vmatpush.msra.mxu3 %v5886_v27  ;;  %v3008_v63 = vand.u32 4294901760, %v3007_v30  ;;  %v7567_v30 = vld [vmem:[#allocation34_spill] sm:$0xff] }
 0x8ce   :  { %3364 = vmatpush.msrb.mxu1 %v5946_v14  ;;  %3399 = vmatpush.msra.mxu2 %v5968_v48 }
 0x8cf   :  { %3436 = vmatpush.msra.mxu3 %v5900_v38  ;;  %3009 = vmatmul.f32.vlgmr.msrb.gmra.mxu0 %v3008_v63 }
 0x8d0   :  { %3213 = vmatmul.f32.vlgmr.msra.gmra.mxu1 %v3004_v17  ;;  %3321 = vmatpush.msrb.mxu0 %v5903_v19 }
 0x8d1   :  { %3366 = vmatpush.msrb.mxu1 %v5963_v41  ;;  %3403 = vmatpush.msra.mxu2 %v5991_v57 }
 0x8d2   :  { %3438 = vmatpush.msra.mxu3 %v5923_v59  ;;  %3246 = vmatmul.f32.vlgmr.msrb.gmra.mxu2 %v3008_v63  ;;  %v7568_v63 = vld [vmem:[#allocation61_spill] sm:$0xff] }
 0x8d3   :  { %3324 = vmatpush.msrb.mxu0 %v5926_v23  ;;  %3368 = vmatpush.msrb.mxu1 %v5979_v44 }
 0x8d4   :  { %3407 = vmatpush.msra.mxu2 %v6000_v34  ;;  %3440 = vmatpush.msra.mxu3 %v5946_v14 }
 0x8d5   :  { %3307 = vmatmul.f32.vlgmr.msrb.gmra.mxu3 %v3004_v17  ;;  %3327 = vmatpush.msrb.mxu0 %v5953_v36 }
 0x8d6   :  { %3370 = vmatpush.msrb.mxu1 %v6002_v31  ;;  %3411 = vmatpush.msra.mxu2 %v6020_v1 }
 0x8d7   :  { %3442 = vmatpush.msra.mxu3 %v5963_v41  ;;  %3330 = vmatpush.msrb.mxu0 %v5971_v55 }
 0x8d8   :  { %3372 = vmatpush.msrb.mxu1 %v6022_v56  ;;  %3415 = vmatpush.msra.mxu2 %v6036_v18 }
 0x8d9   :  { %3444 = vmatpush.msra.mxu3 %v5979_v44  ;;  %3184 = vmatmul.f32.vlgmr.msra.gmra.mxu0 %v3004_v17 }
 0x8da   :  { %3376 = vmatmul.f32.vlgmr.msrb.gmra.mxu1 %v3006_v45  ;;  %3333 = vmatpush.msrb.mxu0 %v5982_v29  ;;  %v7566_v45 = vld [vmem:[#allocation60_spill] sm:$0xff] }
 0x8db   :  { %3419 = vmatpush.msra.mxu2 %v6050_v47  ;;  %3446 = vmatpush.msra.mxu3 %v6002_v31 }
 0x8dc   :  { %3421 = vmatmul.f32.vlgmr.msra.gmra.mxu2 %v3004_v17  ;;  %3336 = vmatpush.msrb.mxu0 %v6005_v35 }
 0x8dd   :  { %3448 = vmatpush.msra.mxu3 %v6022_v56  ;;  %3533 = vmatpush.msra.mxu1 %v5778_v62 }
 0x8de   :  { %3450 = vmatmul.f32.vlgmr.msra.gmra.mxu3 %v3004_v17  ;;  %3339 = vmatpush.msrb.mxu0 %v6025_v21  ;;  %v7564_v17 = vld [vmem:[#allocation58_spill] sm:$0xff] }
 0x8df   :  { %3539 = vmatpush.msra.mxu1 %v5802_v8  ;;  %3591 = vmatpush.msrb.mxu2 %v5766_v52 }
 0x8e0   :  { %3342 = vmatpush.msrb.mxu0 %v6039_v10  ;;  %3628 = vmatpush.msrb.mxu3 %v5762_v46 }
 0x8e1   :  { %3345 = vmatmul.f32.vlgmr.msrb.gmra.mxu0 %v3005_v5  ;;  %3545 = vmatpush.msra.mxu1 %v5827_v22  ;;  %v7565_v5 = vld [vmem:[#allocation28_spill] sm:$0xff] }
 0x8e2   :  { %3594 = vmatpush.msrb.mxu2 %v5785_v0  ;;  %3630 = vmatpush.msrb.mxu3 %v7425_v15 }
 0x8e3   :  { %3551 = vmatpush.msra.mxu1 %v7426_v60  ;;  %3496 = vmatpush.msra.mxu0 %v5762_v46 }
 0x8e4   :  { %3597 = vmatpush.msrb.mxu2 %v7427_v32  ;;  %3632 = vmatpush.msrb.mxu3 %v7428_v37 }
 0x8e5   :  { %3557 = vmatpush.msra.mxu1 %v7429_v33  ;;  %3498 = vmatpush.msra.mxu0 %v7425_v15 }
 0x8e6   :  { %3600 = vmatpush.msrb.mxu2 %v7430_v13  ;;  %3634 = vmatpush.msrb.mxu3 %v7431_v7 }
 0x8e7   :  { %3563 = vmatpush.msra.mxu1 %v7544_v49  ;;  %3500 = vmatpush.msra.mxu0 %v7428_v37 }
 0x8e8   :  { %3603 = vmatpush.msrb.mxu2 %v7545_v16  ;;  %3636 = vmatpush.msrb.mxu3 %v7546_v24  ;;  %v7581_v16 = vld [vmem:[#allocation109_spill] sm:$0xff] }
 0x8e9   :  { %3569 = vmatpush.msra.mxu1 %v7547_v25  ;;  %3502 = vmatpush.msra.mxu0 %v7431_v7 }
 0x8ea   :  { %3606 = vmatpush.msrb.mxu2 %v7548_v40  ;;  %3638 = vmatpush.msrb.mxu3 %v7549_v54 }
 0x8eb   :  { %3575 = vmatpush.msra.mxu1 %v7550_v11  ;;  %3504 = vmatpush.msra.mxu0 %v7546_v24 }
 0x8ec   :  { %3609 = vmatpush.msrb.mxu2 %v7551_v6  ;;  %3640 = vmatpush.msrb.mxu3 %v7552_v20  ;;  %v7575_v6 = vld [vmem:[#allocation62_spill] sm:$0xff] }
 0x8ed   :  { %3704 = vmatpush.msrb.mxu1 %v5762_v46  ;;  %3506 = vmatpush.msra.mxu0 %v7549_v54 }
 0x8ee   :  { %3612 = vmatpush.msrb.mxu2 %v7553_v3  ;;  %3642 = vmatpush.msrb.mxu3 %v7554_v53 }
 0x8ef   :  { %3706 = vmatpush.msrb.mxu1 %v7425_v15  ;;  %3508 = vmatpush.msra.mxu0 %v7552_v20 }
 0x8f0   :  { %3733 = vmatpush.msra.mxu2 %v5886_v27  ;;  %3770 = vmatpush.msra.mxu3 %v7555_v51 }
 0x8f1   :  { %3708 = vmatpush.msrb.mxu1 %v7428_v37  ;;  %3510 = vmatpush.msra.mxu0 %v7554_v53 }
 0x8f2   :  { %3735 = vmatpush.msra.mxu2 %v5900_v38  ;;  %3776 = vmatpush.msra.mxu3 %v7556_v50 }
 0x8f3   :  { %3710 = vmatpush.msrb.mxu1 %v7431_v7  ;;  %3661 = vmatpush.msrb.mxu0 %v7557_v39 }
 0x8f4   :  { %3737 = vmatpush.msra.mxu2 %v5923_v59  ;;  %3782 = vmatpush.msra.mxu3 %v7558_v28 }
 0x8f5   :  { %3712 = vmatpush.msrb.mxu1 %v7546_v24  ;;  %3665 = vmatpush.msrb.mxu0 %v7559_v43  ;;  %v7578_v24 = vld [vmem:[#allocation87_spill] sm:$0xff] }
 0x8f6   :  { %3739 = vmatpush.msra.mxu2 %v5946_v14  ;;  %3788 = vmatpush.msra.mxu3 %v7560_v12  ;;  %v7572_v12 = vld [vmem:[#allocation42_spill] sm:$0xff] }
 0x8f7   :  { %3714 = vmatpush.msrb.mxu1 %v7549_v54  ;;  %3669 = vmatpush.msrb.mxu0 %v7561_v26  ;;  %v7569_v26 = vld [vmem:[#allocation39_spill] sm:$0xff]  ;;  %v7576_v54 = vld [vmem:[#allocation77_spill] sm:$0xff] }
 0x8f8   :  { %3741 = vmatpush.msra.mxu2 %v5963_v41  ;;  %3794 = vmatpush.msra.mxu3 %v7562_v2  ;;  %v7570_v2 = vld [vmem:[#allocation43_spill] sm:$0xff] }
 0x8f9   :  { %3716 = vmatpush.msrb.mxu1 %v7552_v20  ;;  %3673 = vmatpush.msrb.mxu0 %v7563_v4  ;;  %v7571_v4 = vld [vmem:[#allocation17_spill] sm:$0xff] }
 0x8fa   :  { %3743 = vmatpush.msra.mxu2 %v5979_v44  ;;  %3800 = vmatpush.msra.mxu3 %v7564_v17  ;;  %v169_v43 = vadd.f32 %v7572_v12, %v7571_v4  ;;  %v7573_v17 = vld [vmem:[#allocation50_spill] sm:$0xff]  ;;  %v7577_v12 = vld [vmem:[#allocation80_spill] sm:$0xff] }
 0x8fb   :  { %3718 = vmatpush.msrb.mxu1 %v7554_v53  ;;  %3677 = vmatpush.msrb.mxu0 %v7565_v5 }
 0x8fc   :  { %3745 = vmatpush.msra.mxu2 %v6002_v31  ;;  %3806 = vmatpush.msra.mxu3 %v7566_v45  ;;  %v250_v50 = vadd.f32 %v7573_v17, %v169_v43  ;;  %v7574_v45 = vld [vmem:[#allocation56_spill] sm:$0xff]  ;;  %v571_v43 = vadd.f32 %v7578_v24, %v6341_v61  ;;  %v7579_v17 = vld [vmem:[#allocation90_spill] sm:$0xff]  ;;  %v7583_v24 = vld [vmem:[#allocation115_spill] sm:$0xff] }
 0x8fd   :  { %3681 = vmatpush.msrb.mxu0 %v7567_v30 }
 0x8fe   :  { %3747 = vmatpush.msra.mxu2 %v6022_v56  ;;  %3812 = vmatpush.msra.mxu3 %v7568_v63  ;;  %v312_v20 = vadd.f32 %v7574_v45, %v250_v50 }
 0x8ff   :  { %3685 = vmatpush.msrb.mxu0 %v7569_v26 }
 0x900   :  { %v378_v63 = vadd.f32 %v7575_v6, %v312_v20 }
 0x901   :  { %3689 = vmatpush.msrb.mxu0 %v7570_v2 }
 0x902   :  { %v445_v2 = vadd.f32 %v7576_v54, %v378_v63  ;;  %v7582_v63 = vld [vmem:[#allocation113_spill] sm:$0xff] }
 0x904   :  { %v498_v4 = vadd.f32 %v7577_v12, %v445_v2 }
 0x944   :  { %v3071_v28 = vpop.f32.mrf.mxu1 }
 0x94c   :  { %v3010_v39 = vpop.f32.mrf.mxu0  ;;  %v3109_v51 = vpop.f32.mrf.mxu2 }
 0x94d   :  { %v3072_v5 = vadd.f32 %v3071_v28, %v3010_v39  ;;  %v3214_v11 = vpop.f32.mrf.mxu1 }
 0x94e   :  { %v3140_v3 = vpop.f32.mrf.mxu3 }
 0x94f   :  { %v3110_v53 = vadd.f32 %v3109_v51, %v3072_v5  ;;  %v652_v5 = vadd.f32 %v7579_v17, %v571_v43 }
 0x951   :  { %v3141_v30 = vadd.f32 %v3140_v3, %v3110_v53  ;;  %v7580_v53 = vld [vmem:[#allocation107_spill] sm:$0xff] }
 0x952   :  { %v714_v6 = vadd.f32 %v7580_v53, %v652_v5 }
 0x954   :  { %v780_v54 = vadd.f32 %v7581_v16, %v714_v6 }
 0x955   :  { %v3247_v25 = vpop.f32.mrf.mxu2 }
 0x956   :  { %v3185_v26 = vpop.f32.mrf.mxu0  ;;  %v847_v2 = vadd.f32 %v7582_v63, %v780_v54 }
 0x957   :  { %v3186_v40 = vadd.f32 %v3185_v26, %v3141_v30  ;;  %v3377_v45 = vpop.f32.mrf.mxu1 }
 0x958   :  { %v3308_v28 = vpop.f32.mrf.mxu3 }
 0x959   :  { %v3215_v39 = vadd.f32 %v3214_v11, %v3186_v40  ;;  %v3309_v50 = vadd.f32 %v3308_v28, %v3247_v25  ;;  %v900_v40 = vadd.f32 %v7583_v24, %v847_v2 }
 0x95b   :  { %v3454_v51 = vadd.f32 %v3215_v39, %v498_v4 }
 0x95d   :  { %v3456_v25 = vmul.f32 0.5, %v3454_v51 }
 0x95e   :  { %v3346_v3 = vpop.f32.mrf.mxu0 }
 0x95f   :  { %v3347_v20 = vadd.f32 %v3346_v3, %v3309_v50  ;;  %v3422_v30 = vpop.f32.mrf.mxu2 }
 0x961   :  { %v3378_v26 = vadd.f32 %v3377_v45, %v3347_v20  ;;  %v3451_v49 = vpop.f32.mrf.mxu3 }
 0x963   :  { %v3423_v12 = vadd.f32 %v3422_v30, %v3378_v26 }
 0x965   :  { %v3452_v11 = vadd.f32 %v3451_v49, %v3423_v12 }
 0x967   :  { %v3455_v4 = vadd.f32 %v3452_v11, %v900_v40  ;;  %v7584_v40 = vld [vmem:[#allocation41_spill] sm:$0xff]  ;;  %v7585_v11 = vld [vmem:[#allocation26_spill] sm:$0xff] }
 0x969   :  { %5324 = vtanh.f32 %v3455_v4  ;;  %v3457_v6 = vmul.f32 0.5, %v3455_v4  ;;  %v7586_v4 = vld [vmem:[#allocation25_spill] sm:$0xff] }
 0x96a   :  { %5326 = vtanh.f32 %v3456_v25  ;;  %v7588_v25 = vld [vmem:[#allocation31_spill] sm:$0xff] }
 0x96f   :  { %v5325_v43 = vpop.eup %5324 }
 0x970   :  { %3467 = vrot.lane.b32.xlu0 %v5325_v43, %s5441_s3  ;;  %v5327_v39 = vpop.eup %5326  ;;  %v7587_v43 = vld [vmem:[#allocation44_spill] sm:$0xff] }
 0x971   :  { %v3460_v28 = vmul.f32 0.5, %v5327_v39  ;;  %v7589_v39 = vld [vmem:[#allocation29_spill] sm:$0xff] }
 0x973   :  { %v3462_v17 = vadd.f32 0.5, %v3460_v28  ;;  %v7590_v28 = vld [vmem:[#allocation46_spill] sm:$0xff] }
 0x975   :  { %v3465_v50 = vmul.f32 %v3462_v17, %v6697_v9 }
 0x9e2   :  { %v3468_v16 = vpop.permute.xlu0 %3467 }
 0x9e3   :  { %v3470_v5 = vmul.f32 %v3468_v16, %v3462_v17  ;;  %v7591_v17 = vld [vmem:[#allocation35_spill] sm:$0xff]  ;;  %v7592_v16 = vld [vmem:[#allocation32_spill] sm:$0xff] }
 0x9e5   :  { %3472 = vrot.lane.b32.xlu1 %v3470_v5, %s5441_s3  ;;  %v7593_v5 = vld [vmem:[#allocation38_spill] sm:$0xff] }
 0xa57   :  { %v3473_v3 = vpop.permute.xlu1 %3472 }
 0xa58   :  { %v6815_v53 = vadd.f32 %v3473_v3, %v3465_v50  ;;  %v7594_v50 = vld [vmem:[#allocation36_spill] sm:$0xff]  ;;  %v7595_v3 = vld [vmem:[#allocation45_spill] sm:$0xff] }
 0xa5a   :  { %5328 = vtanh.f32 %v6815_v53 }
 0xa5b   :  { %5330 = vtanh.f32 %v3457_v6  ;;  %v7597_v6 = vld [vmem:[#allocation12_spill] sm:$0xff] }
 0xa60   :  { %v5329_v49 = vpop.eup %5328 }
 0xa61   :  { %3478 = vrot.lane.b32.xlu2 %v5329_v49, %s5441_s3  ;;  %v5331_v51 = vpop.eup %5330  ;;  %v7596_v49 = vld [vmem:[#allocation47_spill] sm:$0xff] }
 0xa62   :  { %v3461_v20 = vmul.f32 0.5, %v5331_v51  ;;  %v7598_v51 = vld [vmem:[#allocation51_spill] sm:$0xff] }
 0xa64   :  { %v3463_v45 = vadd.f32 0.5, %v3461_v20  ;;  %v7599_v20 = vld [vmem:[#allocation14_spill] sm:$0xff] }
 0xabb   :  { %v3479_v54 = vpop.permute.xlu2 %3478 }
 0xabc   :  { %v3481_v26 = vmul.f32 %v3479_v54, %v3463_v45  ;;  %v7600_v45 = vld [vmem:[#allocation53_spill] sm:$0xff]  ;;  %v7601_v54 = vld [vmem:[#allocation19_spill] sm:$0xff] }
 0xabe   :  { %v3485_v30 = vsel %vm948_vm2, %v3481_v26, 0  ;;  %v7602_v26 = vld [vmem:[#allocation54_spill] sm:$0xff] }
 0xabf   :  { %v3511_v63 = vand.u32 4294901760, %v3485_v30 }
 0xac1   :  { %v3512_v2 = vsub.f32 %v3485_v30, %v3511_v63  ;;  %3577 = vmatmul.f32.vlgmr.msra.gmra.mxu1 %v3511_v63  ;;  %v7603_v30 = vld [vmem:[#allocation23_spill] sm:$0xff] }
 0xac2   :  { %3865 = vmatpush.msra.mxu1 %v5886_v27 }
 0xac3   :  { %v3513_v9 = vand.u32 4294901760, %v3512_v2  ;;  %3615 = vmatmul.f32.vlgmr.msrb.gmra.mxu2 %v3512_v2 }
 0xac4   :  { %3867 = vmatpush.msra.mxu1 %v5900_v38  ;;  %3898 = vmatpush.msrb.mxu2 %v5921_v58 }
 0xac5   :  { %v3514_v12 = vsub.f32 %v3512_v2, %v3513_v9  ;;  %3646 = vmatmul.f32.vlgmr.msrb.gmra.mxu3 %v3513_v9 }
 0xac6   :  { %3869 = vmatpush.msra.mxu1 %v5923_v59  ;;  %3902 = vmatpush.msrb.mxu2 %v5944_v42 }
 0xac7   :  { %3941 = vmatpush.msrb.mxu3 %v5886_v27  ;;  %v3515_v24 = vand.u32 4294901760, %v3514_v12  ;;  %v7607_v12 = vld [vmem:[#allocation34_spill] sm:$0xff] }
 0xac8   :  { %3871 = vmatpush.msra.mxu1 %v5946_v14  ;;  %3906 = vmatpush.msrb.mxu2 %v5968_v48 }
 0xac9   :  { %3943 = vmatpush.msrb.mxu3 %v5900_v38  ;;  %3516 = vmatmul.f32.vlgmr.msra.gmra.mxu0 %v3515_v24 }
 0xaca   :  { %3720 = vmatmul.f32.vlgmr.msrb.gmra.mxu1 %v3511_v63  ;;  %3828 = vmatpush.msra.mxu0 %v5903_v19 }
 0xacb   :  { %3873 = vmatpush.msra.mxu1 %v5963_v41  ;;  %3910 = vmatpush.msrb.mxu2 %v5991_v57 }
 0xacc   :  { %3945 = vmatpush.msrb.mxu3 %v5923_v59  ;;  %3753 = vmatmul.f32.vlgmr.msra.gmra.mxu2 %v3515_v24  ;;  %v7608_v24 = vld [vmem:[#allocation61_spill] sm:$0xff] }
 0xacd   :  { %3831 = vmatpush.msra.mxu0 %v5926_v23  ;;  %3875 = vmatpush.msra.mxu1 %v5979_v44 }
 0xace   :  { %3914 = vmatpush.msrb.mxu2 %v6000_v34  ;;  %3947 = vmatpush.msrb.mxu3 %v5946_v14 }
 0xacf   :  { %3814 = vmatmul.f32.vlgmr.msra.gmra.mxu3 %v3511_v63  ;;  %3834 = vmatpush.msra.mxu0 %v5953_v36 }
 0xad0   :  { %3877 = vmatpush.msra.mxu1 %v6002_v31  ;;  %3918 = vmatpush.msrb.mxu2 %v6020_v1 }
 0xad1   :  { %3949 = vmatpush.msrb.mxu3 %v5963_v41  ;;  %3837 = vmatpush.msra.mxu0 %v5971_v55 }
 0xad2   :  { %3879 = vmatpush.msra.mxu1 %v6022_v56  ;;  %3922 = vmatpush.msrb.mxu2 %v6036_v18 }
 0xad3   :  { %3951 = vmatpush.msrb.mxu3 %v5979_v44  ;;  %3691 = vmatmul.f32.vlgmr.msrb.gmra.mxu0 %v3511_v63 }
 0xad4   :  { %3883 = vmatmul.f32.vlgmr.msra.gmra.mxu1 %v3513_v9  ;;  %3840 = vmatpush.msra.mxu0 %v5982_v29  ;;  %v7606_v9 = vld [vmem:[#allocation60_spill] sm:$0xff] }
 0xad5   :  { %3926 = vmatpush.msrb.mxu2 %v6050_v47  ;;  %3953 = vmatpush.msrb.mxu3 %v6002_v31 }
 0xad6   :  { %3928 = vmatmul.f32.vlgmr.msrb.gmra.mxu2 %v3511_v63  ;;  %3843 = vmatpush.msra.mxu0 %v6005_v35 }
 0xad7   :  { %3955 = vmatpush.msrb.mxu3 %v6022_v56  ;;  %4040 = vmatpush.msrb.mxu1 %v5778_v62 }
 0xad8   :  { %3957 = vmatmul.f32.vlgmr.msrb.gmra.mxu3 %v3511_v63  ;;  %3846 = vmatpush.msra.mxu0 %v6025_v21  ;;  %v7604_v63 = vld [vmem:[#allocation58_spill] sm:$0xff] }
 0xad9   :  { %4046 = vmatpush.msrb.mxu1 %v5802_v8  ;;  %4098 = vmatpush.msra.mxu2 %v5766_v52 }
 0xada   :  { %3849 = vmatpush.msra.mxu0 %v6039_v10  ;;  %4135 = vmatpush.msra.mxu3 %v5762_v46 }
 0xadb   :  { %3852 = vmatmul.f32.vlgmr.msra.gmra.mxu0 %v3512_v2  ;;  %4052 = vmatpush.msrb.mxu1 %v5827_v22  ;;  %v7605_v2 = vld [vmem:[#allocation28_spill] sm:$0xff] }
 0xadc   :  { %4101 = vmatpush.msra.mxu2 %v5785_v0  ;;  %4137 = vmatpush.msra.mxu3 %v7425_v15 }
 0xadd   :  { %4058 = vmatpush.msrb.mxu1 %v7426_v60  ;;  %4003 = vmatpush.msrb.mxu0 %v5762_v46 }
 0xade   :  { %4104 = vmatpush.msra.mxu2 %v7427_v32  ;;  %4139 = vmatpush.msra.mxu3 %v7428_v37 }
 0xadf   :  { %4064 = vmatpush.msrb.mxu1 %v7429_v33  ;;  %4005 = vmatpush.msrb.mxu0 %v7425_v15 }
 0xae0   :  { %4107 = vmatpush.msra.mxu2 %v7430_v13  ;;  %4141 = vmatpush.msra.mxu3 %v7431_v7 }
 0xae1   :  { %4070 = vmatpush.msrb.mxu1 %v7584_v40  ;;  %4007 = vmatpush.msrb.mxu0 %v7428_v37 }
 0xae2   :  { %4110 = vmatpush.msra.mxu2 %v7585_v11  ;;  %4143 = vmatpush.msra.mxu3 %v7586_v4  ;;  %v7621_v11 = vld [vmem:[#allocation114_spill] sm:$0xff] }
 0xae3   :  { %4076 = vmatpush.msrb.mxu1 %v7587_v43  ;;  %4009 = vmatpush.msrb.mxu0 %v7431_v7 }
 0xae4   :  { %4113 = vmatpush.msra.mxu2 %v7588_v25  ;;  %4145 = vmatpush.msra.mxu3 %v7589_v39 }
 0xae5   :  { %4082 = vmatpush.msrb.mxu1 %v7590_v28  ;;  %4011 = vmatpush.msrb.mxu0 %v7586_v4 }
 0xae6   :  { %4116 = vmatpush.msra.mxu2 %v7591_v17  ;;  %4147 = vmatpush.msra.mxu3 %v7592_v16  ;;  %v7615_v17 = vld [vmem:[#allocation65_spill] sm:$0xff] }
 0xae7   :  { %4211 = vmatpush.msra.mxu1 %v5762_v46  ;;  %4013 = vmatpush.msrb.mxu0 %v7589_v39 }
 0xae8   :  { %4119 = vmatpush.msra.mxu2 %v7593_v5  ;;  %4149 = vmatpush.msra.mxu3 %v7594_v50 }
 0xae9   :  { %4213 = vmatpush.msra.mxu1 %v7425_v15  ;;  %4015 = vmatpush.msrb.mxu0 %v7592_v16 }
 0xaea   :  { %4240 = vmatpush.msrb.mxu2 %v5886_v27  ;;  %4277 = vmatpush.msrb.mxu3 %v7595_v3 }
 0xaeb   :  { %4215 = vmatpush.msra.mxu1 %v7428_v37  ;;  %4017 = vmatpush.msrb.mxu0 %v7594_v50 }
 0xaec   :  { %4242 = vmatpush.msrb.mxu2 %v5900_v38  ;;  %4283 = vmatpush.msrb.mxu3 %v7596_v49 }
 0xaed   :  { %4217 = vmatpush.msra.mxu1 %v7431_v7  ;;  %4168 = vmatpush.msra.mxu0 %v7597_v6 }
 0xaee   :  { %4244 = vmatpush.msrb.mxu2 %v5923_v59  ;;  %4289 = vmatpush.msrb.mxu3 %v7598_v51 }
 0xaef   :  { %4219 = vmatpush.msra.mxu1 %v7586_v4  ;;  %4172 = vmatpush.msra.mxu0 %v7599_v20  ;;  %v7618_v4 = vld [vmem:[#allocation91_spill] sm:$0xff] }
 0xaf0   :  { %4246 = vmatpush.msrb.mxu2 %v5946_v14  ;;  %4295 = vmatpush.msrb.mxu3 %v7600_v45  ;;  %v7612_v45 = vld [vmem:[#allocation52_spill] sm:$0xff] }
 0xaf1   :  { %4221 = vmatpush.msra.mxu1 %v7589_v39  ;;  %4176 = vmatpush.msra.mxu0 %v7601_v54  ;;  %v7609_v54 = vld [vmem:[#allocation39_spill] sm:$0xff]  ;;  %v7616_v39 = vld [vmem:[#allocation81_spill] sm:$0xff] }
 0xaf2   :  { %4248 = vmatpush.msrb.mxu2 %v5963_v41  ;;  %4301 = vmatpush.msrb.mxu3 %v7602_v26  ;;  %v7610_v26 = vld [vmem:[#allocation43_spill] sm:$0xff] }
 0xaf3   :  { %4223 = vmatpush.msra.mxu1 %v7592_v16  ;;  %4180 = vmatpush.msra.mxu0 %v7603_v30  ;;  %v7611_v30 = vld [vmem:[#allocation17_spill] sm:$0xff] }
 0xaf4   :  { %4250 = vmatpush.msrb.mxu2 %v5979_v44  ;;  %4307 = vmatpush.msrb.mxu3 %v7604_v63  ;;  %v177_v20 = vadd.f32 %v7612_v45, %v7611_v30  ;;  %v7613_v63 = vld [vmem:[#allocation57_spill] sm:$0xff]  ;;  %v7617_v45 = vld [vmem:[#allocation84_spill] sm:$0xff] }
 0xaf5   :  { %4225 = vmatpush.msra.mxu1 %v7594_v50  ;;  %4184 = vmatpush.msra.mxu0 %v7605_v2 }
 0xaf6   :  { %4252 = vmatpush.msrb.mxu2 %v6002_v31  ;;  %4313 = vmatpush.msrb.mxu3 %v7606_v9  ;;  %v254_v49 = vadd.f32 %v7613_v63, %v177_v20  ;;  %v7614_v9 = vld [vmem:[#allocation63_spill] sm:$0xff]  ;;  %v579_v20 = vadd.f32 %v7618_v4, %v6341_v61  ;;  %v7619_v63 = vld [vmem:[#allocation93_spill] sm:$0xff] }
 0xaf7   :  { %4188 = vmatpush.msra.mxu0 %v7607_v12  ;;  %v7623_v4 = vld [vmem:[#allocation119_spill] sm:$0xff] }
 0xaf8   :  { %4254 = vmatpush.msrb.mxu2 %v6022_v56  ;;  %4319 = vmatpush.msrb.mxu3 %v7608_v24  ;;  %v317_v16 = vadd.f32 %v7614_v9, %v254_v49 }
 0xaf9   :  { %4192 = vmatpush.msra.mxu0 %v7609_v54 }
 0xafa   :  { %v384_v24 = vadd.f32 %v7615_v17, %v317_v16 }
 0xafb   :  { %4196 = vmatpush.msra.mxu0 %v7610_v26 }
 0xafc   :  { %v449_v26 = vadd.f32 %v7616_v39, %v384_v24  ;;  %v7622_v24 = vld [vmem:[#allocation117_spill] sm:$0xff] }
 0xafe   :  { %v502_v30 = vadd.f32 %v7617_v45, %v449_v26 }
 0xb3e   :  { %v3578_v51 = vpop.f32.mrf.mxu1 }
 0xb46   :  { %v3517_v6 = vpop.f32.mrf.mxu0  ;;  %v3616_v3 = vpop.f32.mrf.mxu2 }
 0xb47   :  { %v3579_v2 = vadd.f32 %v3578_v51, %v3517_v6  ;;  %v3721_v28 = vpop.f32.mrf.mxu1 }
 0xb48   :  { %v3647_v5 = vpop.f32.mrf.mxu3 }
 0xb49   :  { %v3617_v50 = vadd.f32 %v3616_v3, %v3579_v2  ;;  %v656_v2 = vadd.f32 %v7619_v63, %v579_v20 }
 0xb4b   :  { %v3648_v12 = vadd.f32 %v3647_v5, %v3617_v50  ;;  %v7620_v50 = vld [vmem:[#allocation111_spill] sm:$0xff] }
 0xb4c   :  { %v719_v17 = vadd.f32 %v7620_v50, %v656_v2 }
 0xb4e   :  { %v786_v39 = vadd.f32 %v7621_v11, %v719_v17 }
 0xb4f   :  { %v3754_v43 = vpop.f32.mrf.mxu2 }
 0xb50   :  { %v3692_v54 = vpop.f32.mrf.mxu0  ;;  %v851_v26 = vadd.f32 %v7622_v24, %v786_v39 }
 0xb51   :  { %v3693_v25 = vadd.f32 %v3692_v54, %v3648_v12  ;;  %v3884_v9 = vpop.f32.mrf.mxu1 }
 0xb52   :  { %v3815_v51 = vpop.f32.mrf.mxu3 }
 0xb53   :  { %v3722_v6 = vadd.f32 %v3721_v28, %v3693_v25  ;;  %v3816_v49 = vadd.f32 %v3815_v51, %v3754_v43  ;;  %v904_v25 = vadd.f32 %v7623_v4, %v851_v26 }
 0xb55   :  { %v3961_v3 = vadd.f32 %v3722_v6, %v502_v30 }
 0xb57   :  { %v3963_v43 = vmul.f32 0.5, %v3961_v3 }
 0xb58   :  { %v3853_v5 = vpop.f32.mrf.mxu0 }
 0xb59   :  { %v3854_v16 = vadd.f32 %v3853_v5, %v3816_v49  ;;  %v3929_v12 = vpop.f32.mrf.mxu2 }
 0xb5b   :  { %v3885_v54 = vadd.f32 %v3884_v9, %v3854_v16  ;;  %v3958_v40 = vpop.f32.mrf.mxu3 }
 0xb5d   :  { %v3930_v45 = vadd.f32 %v3929_v12, %v3885_v54 }
 0xb5f   :  { %v3959_v28 = vadd.f32 %v3958_v40, %v3930_v45 }
 0xb61   :  { %v3962_v30 = vadd.f32 %v3959_v28, %v904_v25  ;;  %v7633_v25 = vld [vmem:[#allocation38_spill] sm:$0xff]  ;;  %v7634_v28 = vld [vmem:[#allocation36_spill] sm:$0xff] }
 0xb63   :  { %5332 = vtanh.f32 %v3962_v30  ;;  %v3964_v17 = vmul.f32 0.5, %v3962_v30  ;;  %v7635_v30 = vld [vmem:[#allocation45_spill] sm:$0xff] }
 0xb64   :  { %5334 = vtanh.f32 %v3963_v43  ;;  %v7641_v43 = vld [vmem:[#allocation19_spill] sm:$0xff] }
 0xb69   :  { %v5333_v20 = vpop.eup %5332 }
 0xb6a   :  { %3974 = vrot.lane.b32.xlu0 %v5333_v20, %s5441_s3  ;;  %v5335_v6 = vpop.eup %5334  ;;  %v7639_v20 = vld [vmem:[#allocation14_spill] sm:$0xff] }
 0xb6b   :  { %v3967_v51 = vmul.f32 0.5, %v5335_v6  ;;  %v7642_v6 = vld [vmem:[#allocation54_spill] sm:$0xff] }
 0xb6d   :  { %v3969_v63 = vadd.f32 0.5, %v3967_v51  ;;  %v7643_v51 = vld [vmem:[#allocation23_spill] sm:$0xff] }
 0xb6f   :  { %v3972_v49 = vmul.f32 %v3969_v63, %v6815_v53 }
 0xbdc   :  { %v3975_v11 = vpop.permute.xlu0 %3974 }
 0xbdd   :  { %v3977_v2 = vmul.f32 %v3975_v11, %v3969_v63  ;;  %v7644_v63 = vld [vmem:[#allocation58_spill] sm:$0xff]  ;;  %v7645_v11 = vld [vmem:[#allocation28_spill] sm:$0xff] }
 0xbdf   :  { %3979 = vrot.lane.b32.xlu1 %v3977_v2, %s5441_s3  ;;  %v7646_v2 = vld [vmem:[#allocation60_spill] sm:$0xff] }
 0xc51   :  { %v3980_v5 = vpop.permute.xlu1 %3979 }
 0xc52   :  { %v6933_v50 = vadd.f32 %v3980_v5, %v3972_v49  ;;  %v7647_v49 = vld [vmem:[#allocation34_spill] sm:$0xff]  ;;  %v7648_v5 = vld [vmem:[#allocation61_spill] sm:$0xff] }
 0xc54   :  { %5336 = vtanh.f32 %v6933_v50 }
 0xc55   :  { %5338 = vtanh.f32 %v3964_v17  ;;  %v7650_v17 = vld [vmem:[#allocation43_spill] sm:$0xff] }
 0xc5a   :  { %v5337_v40 = vpop.eup %5336 }
 0xc5b   :  { %3985 = vrot.lane.b32.xlu2 %v5337_v40, %s5441_s3  ;;  %v5339_v3 = vpop.eup %5338  ;;  %v7649_v40 = vld [vmem:[#allocation39_spill] sm:$0xff] }
 0xc5c   :  { %v3968_v16 = vmul.f32 0.5, %v5339_v3  ;;  %v7651_v3 = vld [vmem:[#allocation17_spill] sm:$0xff] }
 0xc5e   :  { %v3970_v9 = vadd.f32 0.5, %v3968_v16  ;;  %v7652_v16 = vld [vmem:[#allocation59_spill] sm:$0xff] }
 0xcb5   :  { %v3986_v39 = vpop.permute.xlu2 %3985 }
 0xcb6   :  { %v3988_v54 = vmul.f32 %v3986_v39, %v3970_v9  ;;  %v185_v9 = vadd.f32 %v7652_v16, %v7651_v3 }
 0xcb8   :  { %v3992_v12 = vsel %vm948_vm2, %v3988_v54, 0 }
 0xcb9   :  { %v4018_v24 = vand.u32 4294901760, %v3992_v12 }
 0xcbb   :  { %v4019_v26 = vsub.f32 %v3992_v12, %v4018_v24  ;;  %4084 = vmatmul.f32.vlgmr.msrb.gmra.mxu1 %v4018_v24  ;;  %v7653_v12 = vld [vmem:[#allocation64_spill] sm:$0xff] }
 0xcbc   :  { %4372 = vmatpush.msrb.mxu1 %v5886_v27 }
 0xcbd   :  { %v4020_v53 = vand.u32 4294901760, %v4019_v26  ;;  %4122 = vmatmul.f32.vlgmr.msra.gmra.mxu2 %v4019_v26 }
 0xcbe   :  { %4374 = vmatpush.msrb.mxu1 %v5900_v38  ;;  %4405 = vmatpush.msra.mxu2 %v5921_v58 }
 0xcbf   :  { %v4021_v45 = vsub.f32 %v4019_v26, %v4020_v53  ;;  %4153 = vmatmul.f32.vlgmr.msra.gmra.mxu3 %v4020_v53 }
 0xcc0   :  { %4376 = vmatpush.msrb.mxu1 %v5923_v59  ;;  %4409 = vmatpush.msra.mxu2 %v5944_v42 }
 0xcc1   :  { %4448 = vmatpush.msra.mxu3 %v5886_v27  ;;  %v4022_v4 = vand.u32 4294901760, %v4021_v45 }
 0xcc2   :  { %4378 = vmatpush.msrb.mxu1 %v5946_v14  ;;  %4413 = vmatpush.msra.mxu2 %v5968_v48 }
 0xcc3   :  { %4450 = vmatpush.msra.mxu3 %v5900_v38  ;;  %4023 = vmatmul.f32.vlgmr.msrb.gmra.mxu0 %v4022_v4 }
 0xcc4   :  { %4227 = vmatmul.f32.vlgmr.msra.gmra.mxu1 %v4018_v24  ;;  %4335 = vmatpush.msrb.mxu0 %v5903_v19 }
 0xcc5   :  { %4380 = vmatpush.msrb.mxu1 %v5963_v41  ;;  %4417 = vmatpush.msra.mxu2 %v5991_v57 }
 0xcc6   :  { %4452 = vmatpush.msra.mxu3 %v5923_v59  ;;  %4260 = vmatmul.f32.vlgmr.msrb.gmra.mxu2 %v4022_v4 }
 0xcc7   :  { %4338 = vmatpush.msrb.mxu0 %v5926_v23  ;;  %4382 = vmatpush.msrb.mxu1 %v5979_v44 }
 0xcc8   :  { %4421 = vmatpush.msra.mxu2 %v6000_v34  ;;  %4454 = vmatpush.msra.mxu3 %v5946_v14 }
 0xcc9   :  { %4321 = vmatmul.f32.vlgmr.msrb.gmra.mxu3 %v4018_v24  ;;  %4341 = vmatpush.msrb.mxu0 %v5953_v36 }
 0xcca   :  { %4384 = vmatpush.msrb.mxu1 %v6002_v31  ;;  %4425 = vmatpush.msra.mxu2 %v6020_v1 }
 0xccb   :  { %4456 = vmatpush.msra.mxu3 %v5963_v41  ;;  %4344 = vmatpush.msrb.mxu0 %v5971_v55 }
 0xccc   :  { %4386 = vmatpush.msrb.mxu1 %v6022_v56  ;;  %4429 = vmatpush.msra.mxu2 %v6036_v18 }
 0xccd   :  { %4458 = vmatpush.msra.mxu3 %v5979_v44  ;;  %4198 = vmatmul.f32.vlgmr.msra.gmra.mxu0 %v4018_v24 }
 0xcce   :  { %4390 = vmatmul.f32.vlgmr.msrb.gmra.mxu1 %v4020_v53  ;;  %4347 = vmatpush.msrb.mxu0 %v5982_v29 }
 0xccf   :  { %4433 = vmatpush.msra.mxu2 %v6050_v47  ;;  %4460 = vmatpush.msra.mxu3 %v6002_v31 }
 0xcd0   :  { %4435 = vmatmul.f32.vlgmr.msra.gmra.mxu2 %v4018_v24  ;;  %4350 = vmatpush.msrb.mxu0 %v6005_v35 }
 0xcd1   :  { %4462 = vmatpush.msra.mxu3 %v6022_v56  ;;  %4547 = vmatpush.msra.mxu1 %v5778_v62  ;;  %v7625_v62 = vld [vmem:[#allocation26_spill] sm:$0xff] }
 0xcd2   :  { %4464 = vmatmul.f32.vlgmr.msra.gmra.mxu3 %v4018_v24  ;;  %4353 = vmatpush.msrb.mxu0 %v6025_v21  ;;  %v258_v24 = vadd.f32 %v7653_v12, %v185_v9 }
 0xcd3   :  { %4553 = vmatpush.msra.mxu1 %v5802_v8  ;;  %4605 = vmatpush.msrb.mxu2 %v5766_v52  ;;  %v7624_v52 = vld [vmem:[#allocation41_spill] sm:$0xff]  ;;  %v7627_v8 = vld [vmem:[#allocation44_spill] sm:$0xff] }
 0xcd4   :  { %4356 = vmatpush.msrb.mxu0 %v6039_v10  ;;  %4642 = vmatpush.msrb.mxu3 %v5762_v46 }
 0xcd5   :  { %4359 = vmatmul.f32.vlgmr.msrb.gmra.mxu0 %v4019_v26  ;;  %4559 = vmatpush.msra.mxu1 %v5827_v22  ;;  %v7628_v22 = vld [vmem:[#allocation31_spill] sm:$0xff] }
 0xcd6   :  { %4608 = vmatpush.msrb.mxu2 %v5785_v0  ;;  %4644 = vmatpush.msrb.mxu3 %v7425_v15  ;;  %v7626_v0 = vld [vmem:[#allocation25_spill] sm:$0xff] }
 0xcd7   :  { %4565 = vmatpush.msra.mxu1 %v7426_v60  ;;  %4510 = vmatpush.msra.mxu0 %v5762_v46  ;;  %v7629_v60 = vld [vmem:[#allocation29_spill] sm:$0xff] }
 0xcd8   :  { %4611 = vmatpush.msrb.mxu2 %v7427_v32  ;;  %4646 = vmatpush.msrb.mxu3 %v7428_v37  ;;  %v7630_v32 = vld [vmem:[#allocation46_spill] sm:$0xff] }
 0xcd9   :  { %4571 = vmatpush.msra.mxu1 %v7429_v33  ;;  %4512 = vmatpush.msra.mxu0 %v7425_v15  ;;  %v7631_v33 = vld [vmem:[#allocation35_spill] sm:$0xff] }
 0xcda   :  { %4614 = vmatpush.msrb.mxu2 %v7430_v13  ;;  %4648 = vmatpush.msrb.mxu3 %v7431_v7  ;;  %v7632_v13 = vld [vmem:[#allocation32_spill] sm:$0xff] }
 0xcdb   :  { %4577 = vmatpush.msra.mxu1 %v7624_v52  ;;  %4514 = vmatpush.msra.mxu0 %v7428_v37  ;;  %v7654_v52 = vld [vmem:[#allocation66_spill] sm:$0xff] }
 0xcdc   :  { %4617 = vmatpush.msrb.mxu2 %v7625_v62  ;;  %4650 = vmatpush.msrb.mxu3 %v7626_v0  ;;  %v322_v62 = vadd.f32 %v7654_v52, %v258_v24 }
 0xcdd   :  { %4583 = vmatpush.msra.mxu1 %v7627_v8  ;;  %4516 = vmatpush.msra.mxu0 %v7431_v7  ;;  %v7655_v8 = vld [vmem:[#allocation68_spill] sm:$0xff] }
 0xcde   :  { %4620 = vmatpush.msrb.mxu2 %v7628_v22  ;;  %4652 = vmatpush.msrb.mxu3 %v7629_v60  ;;  %v390_v22 = vadd.f32 %v7655_v8, %v322_v62 }
 0xcdf   :  { %4589 = vmatpush.msra.mxu1 %v7630_v32  ;;  %4518 = vmatpush.msra.mxu0 %v7626_v0 }
 0xce0   :  { %4623 = vmatpush.msrb.mxu2 %v7631_v33  ;;  %4654 = vmatpush.msrb.mxu3 %v7632_v13  ;;  %v7656_v33 = vld [vmem:[#allocation85_spill] sm:$0xff] }
 0xce1   :  { %4718 = vmatpush.msrb.mxu1 %v5762_v46  ;;  %4520 = vmatpush.msra.mxu0 %v7629_v60  ;;  %v7636_v46 = vld [vmem:[#allocation47_spill] sm:$0xff] }
 0xce2   :  { %4626 = vmatpush.msrb.mxu2 %v7633_v25  ;;  %4656 = vmatpush.msrb.mxu3 %v7634_v28 }
 0xce3   :  { %4720 = vmatpush.msrb.mxu1 %v7425_v15  ;;  %4522 = vmatpush.msra.mxu0 %v7632_v13  ;;  %v7637_v15 = vld [vmem:[#allocation12_spill] sm:$0xff] }
 0xce4   :  { %4747 = vmatpush.msra.mxu2 %v5886_v27  ;;  %4784 = vmatpush.msra.mxu3 %v7635_v30  ;;  %v7657_v30 = vld [vmem:[#allocation88_spill] sm:$0xff] }
 0xce5   :  { %4722 = vmatpush.msrb.mxu1 %v7428_v37  ;;  %4524 = vmatpush.msra.mxu0 %v7634_v28  ;;  %v7638_v37 = vld [vmem:[#allocation51_spill] sm:$0xff] }
 0xce6   :  { %4749 = vmatpush.msra.mxu2 %v5900_v38  ;;  %4790 = vmatpush.msra.mxu3 %v7636_v46 }
 0xce7   :  { %4724 = vmatpush.msrb.mxu1 %v7431_v7  ;;  %4675 = vmatpush.msrb.mxu0 %v7637_v15  ;;  %v7640_v7 = vld [vmem:[#allocation53_spill] sm:$0xff]  ;;  %v7658_v15 = vld [vmem:[#allocation94_spill] sm:$0xff] }
 0xce8   :  { %4751 = vmatpush.msra.mxu2 %v5923_v59  ;;  %4796 = vmatpush.msra.mxu3 %v7638_v37  ;;  %v587_v37 = vadd.f32 %v7658_v15, %v6341_v61 }
 0xce9   :  { %4726 = vmatpush.msrb.mxu1 %v7626_v0  ;;  %4679 = vmatpush.msrb.mxu0 %v7639_v20 }
 0xcea   :  { %4753 = vmatpush.msra.mxu2 %v5946_v14  ;;  %4802 = vmatpush.msra.mxu3 %v7640_v7 }
 0xceb   :  { %4728 = vmatpush.msrb.mxu1 %v7629_v60  ;;  %4683 = vmatpush.msrb.mxu0 %v7641_v43 }
 0xcec   :  { %4755 = vmatpush.msra.mxu2 %v5963_v41  ;;  %4808 = vmatpush.msra.mxu3 %v7642_v6  ;;  %v7659_v6 = vld [vmem:[#allocation96_spill] sm:$0xff] }
 0xced   :  { %4730 = vmatpush.msrb.mxu1 %v7632_v13  ;;  %4687 = vmatpush.msrb.mxu0 %v7643_v51  ;;  %v453_v13 = vadd.f32 %v7656_v33, %v390_v22  ;;  %v660_v51 = vadd.f32 %v7659_v6, %v587_v37 }
 0xcee   :  { %4757 = vmatpush.msra.mxu2 %v5979_v44  ;;  %4814 = vmatpush.msra.mxu3 %v7644_v63 }
 0xcef   :  { %4732 = vmatpush.msrb.mxu1 %v7634_v28  ;;  %4691 = vmatpush.msrb.mxu0 %v7645_v11  ;;  %v506_v46 = vadd.f32 %v7657_v30, %v453_v13 }
 0xcf0   :  { %4759 = vmatpush.msra.mxu2 %v6002_v31  ;;  %4820 = vmatpush.msra.mxu3 %v7646_v2  ;;  %v7660_v2 = vld [vmem:[#allocation116_spill] sm:$0xff] }
 0xcf1   :  { %4695 = vmatpush.msrb.mxu0 %v7647_v49  ;;  %v724_v49 = vadd.f32 %v7660_v2, %v660_v51 }
 0xcf2   :  { %4761 = vmatpush.msra.mxu2 %v6022_v56  ;;  %4826 = vmatpush.msra.mxu3 %v7648_v5 }
 0xcf3   :  { %4699 = vmatpush.msrb.mxu0 %v7649_v40 }
 0xcf5   :  { %4703 = vmatpush.msrb.mxu0 %v7650_v17  ;;  %v7661_v17 = vld [vmem:[#allocation118_spill] sm:$0xff] }
 0xcf6   :  { %v792_v3 = vadd.f32 %v7661_v17, %v724_v49  ;;  %v7670_v49 = vld [vmem:[#allocation99_spill] sm:$0xff] }
 0xd38   :  { %v4085_v39 = vpop.f32.mrf.mxu1 }
 0xd40   :  { %v4024_v54 = vpop.f32.mrf.mxu0  ;;  %v4123_v53 = vpop.f32.mrf.mxu2 }
 0xd41   :  { %v4086_v26 = vadd.f32 %v4085_v39, %v4024_v54  ;;  %v4228_v60 = vpop.f32.mrf.mxu1  ;;  %v7662_v39 = vld [vmem:[#allocation120_spill] sm:$0xff] }
 0xd42   :  { %v4154_v4 = vpop.f32.mrf.mxu3  ;;  %v855_v54 = vadd.f32 %v7662_v39, %v792_v3  ;;  %v7671_v3 = vld [vmem:[#allocation121_spill] sm:$0xff] }
 0xd43   :  { %v4124_v45 = vadd.f32 %v4123_v53, %v4086_v26  ;;  %v7663_v26 = vld [vmem:[#allocation123_spill] sm:$0xff] }
 0xd44   :  { %v908_v53 = vadd.f32 %v7663_v26, %v855_v54  ;;  %v7672_v54 = vld [vmem:[#allocation122_spill] sm:$0xff] }
 0xd45   :  { %v4155_v0 = vadd.f32 %v4154_v4, %v4124_v45 }
 0xd49   :  { %v4261_v28 = vpop.f32.mrf.mxu2 }
 0xd4a   :  { %v4199_v32 = vpop.f32.mrf.mxu0 }
 0xd4b   :  { %v4200_v25 = vadd.f32 %v4199_v32, %v4155_v0  ;;  %v4391_v40 = vpop.f32.mrf.mxu1 }
 0xd4c   :  { %v4322_v7 = vpop.f32.mrf.mxu3 }
 0xd4d   :  { %v4229_v20 = vadd.f32 %v4228_v60, %v4200_v25  ;;  %v4323_v63 = vadd.f32 %v4322_v7, %v4261_v28 }
 0xd4f   :  { %v4468_v43 = vadd.f32 %v4229_v20, %v506_v46 }
 0xd51   :  { %v4470_v62 = vmul.f32 0.5, %v4468_v43 }
 0xd52   :  { %v4360_v11 = vpop.f32.mrf.mxu0 }
 0xd53   :  { %v4361_v5 = vadd.f32 %v4360_v11, %v4323_v63  ;;  %v4436_v9 = vpop.f32.mrf.mxu2 }
 0xd55   :  { %v4392_v16 = vadd.f32 %v4391_v40, %v4361_v5  ;;  %v4465_v24 = vpop.f32.mrf.mxu3 }
 0xd57   :  { %v4437_v12 = vadd.f32 %v4436_v9, %v4392_v16 }
 0xd59   :  { %v4466_v45 = vadd.f32 %v4465_v24, %v4437_v12 }
 0xd5b   :  { %v4469_v4 = vadd.f32 %v4466_v45, %v908_v53  ;;  %v7673_v53 = vld [vmem:[#allocation124_spill] sm:$0xff] }
 0xd5d   :  { %5340 = vtanh.f32 %v4469_v4  ;;  %v4471_v30 = vmul.f32 0.5, %v4469_v4 }
 0xd5e   :  { %5342 = vtanh.f32 %v4470_v62 }
 0xd63   :  { %v5341_v52 = vpop.eup %5340 }
 0xd64   :  { %4481 = vrot.lane.b32.xlu0 %v5341_v52, %s5441_s3  ;;  %v5343_v0 = vpop.eup %5342 }
 0xd65   :  { %v4474_v8 = vmul.f32 0.5, %v5343_v0 }
 0xd67   :  { %v4476_v22 = vadd.f32 0.5, %v4474_v8 }
 0xd69   :  { %v4479_v33 = vmul.f32 %v4476_v22, %v6933_v50 }
 0xdd6   :  { %v4482_v60 = vpop.permute.xlu0 %4481 }
 0xdd7   :  { %v4484_v32 = vmul.f32 %v4482_v60, %v4476_v22 }
 0xdd9   :  { %4486 = vrot.lane.b32.xlu1 %v4484_v32, %s5441_s3 }
 0xe4b   :  { %v4487_v13 = vpop.permute.xlu1 %4486 }
 0xe4c   :  { %v7051_v25 = vadd.f32 %v4487_v13, %v4479_v33 }
 0xe4e   :  { %5344 = vtanh.f32 %v7051_v25 }
 0xe4f   :  { %5346 = vtanh.f32 %v4471_v30 }
 0xe54   :  { %v5345_v28 = vpop.eup %5344 }
 0xe55   :  { %4492 = vrot.lane.b32.xlu2 %v5345_v28, %s5441_s3  ;;  %v5347_v46 = vpop.eup %5346 }
 0xe56   :  { %v4475_v15 = vmul.f32 0.5, %v5347_v46  ;;  %v5010_v46 = vld [vmem:[#allocation6 + $0x38] sm:$0xff] }
 0xe58   :  { %v4477_v37 = vadd.f32 0.5, %v4475_v15  ;;  %v5009_v15 = vld [vmem:[#allocation6 + $0x30] sm:$0xff] }
 0xeaf   :  { %v4493_v20 = vpop.permute.xlu2 %4492 }
 0xeb0   :  { %v4495_v7 = vmul.f32 %v4493_v20, %v4477_v37  ;;  %v5008_v37 = vld [vmem:[#allocation6 + $0x28] sm:$0xff]  ;;  %v7108_v20 = vand.u32 4294901760, %v5010_v46 }
 0xeb2   :  { %v4499_v43 = vsel %vm948_vm2, %v4495_v7, 0  ;;  %v7110_v7 = vand.u32 4294901760, %v5009_v15 }
 0xeb3   :  { %v4525_v6 = vand.u32 4294901760, %v4499_v43 }
 0xeb5   :  { %v4526_v51 = vsub.f32 %v4499_v43, %v4525_v6  ;;  %4591 = vmatmul.f32.vlgmr.msra.gmra.mxu1 %v4525_v6  ;;  %v7112_v43 = vand.u32 4294901760, %v5008_v37 }
 0xeb6   :  { %4879 = vmatpush.msra.mxu1 %v5886_v27 }
 0xeb7   :  { %v4527_v50 = vand.u32 4294901760, %v4526_v51  ;;  %4629 = vmatmul.f32.vlgmr.msrb.gmra.mxu2 %v4526_v51 }
 0xeb8   :  { %4881 = vmatpush.msra.mxu1 %v5900_v38  ;;  %4912 = vmatpush.msrb.mxu2 %v5921_v58  ;;  %v7665_v58 = vld [vmem:[#allocation69_spill] sm:$0xff] }
 0xeb9   :  { %v4528_v63 = vsub.f32 %v4526_v51, %v4527_v50  ;;  %4660 = vmatmul.f32.vlgmr.msrb.gmra.mxu3 %v4527_v50 }
 0xeba   :  { %4883 = vmatpush.msra.mxu1 %v5923_v59  ;;  %4916 = vmatpush.msrb.mxu2 %v5944_v42 }
 0xebb   :  { %4955 = vmatpush.msrb.mxu3 %v5886_v27  ;;  %v4529_v11 = vand.u32 4294901760, %v4528_v63 }
 0xebc   :  { %4885 = vmatpush.msra.mxu1 %v5946_v14  ;;  %4920 = vmatpush.msrb.mxu2 %v5968_v48 }
 0xebd   :  { %4957 = vmatpush.msrb.mxu3 %v5900_v38  ;;  %4530 = vmatmul.f32.vlgmr.msra.gmra.mxu0 %v4529_v11 }
 0xebe   :  { %4734 = vmatmul.f32.vlgmr.msrb.gmra.mxu1 %v4525_v6  ;;  %4842 = vmatpush.msra.mxu0 %v5903_v19 }
 0xebf   :  { %4887 = vmatpush.msra.mxu1 %v5963_v41  ;;  %4924 = vmatpush.msrb.mxu2 %v5991_v57 }
 0xec0   :  { %4959 = vmatpush.msrb.mxu3 %v5923_v59  ;;  %4767 = vmatmul.f32.vlgmr.msra.gmra.mxu2 %v4529_v11 }
 0xec1   :  { %4845 = vmatpush.msra.mxu0 %v5926_v23  ;;  %4889 = vmatpush.msra.mxu1 %v5979_v44  ;;  %v7666_v23 = vld [vmem:[#allocation72_spill] sm:$0xff] }
 0xec2   :  { %4928 = vmatpush.msrb.mxu2 %v6000_v34  ;;  %4961 = vmatpush.msrb.mxu3 %v5946_v14  ;;  %v7667_v14 = vld [vmem:[#allocation89_spill] sm:$0xff] }
 0xec3   :  { %4828 = vmatmul.f32.vlgmr.msra.gmra.mxu3 %v4525_v6  ;;  %4848 = vmatpush.msra.mxu0 %v5953_v36 }
 0xec4   :  { %4891 = vmatpush.msra.mxu1 %v6002_v31  ;;  %4932 = vmatpush.msrb.mxu2 %v6020_v1 }
 0xec5   :  { %4963 = vmatpush.msrb.mxu3 %v5963_v41  ;;  %4851 = vmatpush.msra.mxu0 %v5971_v55 }
 0xec6   :  { %4893 = vmatpush.msra.mxu1 %v6022_v56  ;;  %4936 = vmatpush.msrb.mxu2 %v6036_v18 }
 0xec7   :  { %4965 = vmatpush.msrb.mxu3 %v5979_v44  ;;  %4705 = vmatmul.f32.vlgmr.msrb.gmra.mxu0 %v4525_v6  ;;  %v7664_v44 = vld [vmem:[#allocation22_spill] sm:$0xff] }
 0xec8   :  { %4897 = vmatmul.f32.vlgmr.msra.gmra.mxu1 %v4527_v50  ;;  %4854 = vmatpush.msra.mxu0 %v5982_v29  ;;  %v327_v59 = vadd.f32 %v7665_v58, %v7664_v44  ;;  %v5005_v50 = vld [vmem:[#allocation6 + $0x10] sm:$0xff] }
 0xec9   :  { %4940 = vmatpush.msrb.mxu2 %v6050_v47  ;;  %4967 = vmatpush.msrb.mxu3 %v6002_v31  ;;  %v7669_v31 = vld [vmem:[#allocation97_spill] sm:$0xff] }
 0xeca   :  { %4942 = vmatmul.f32.vlgmr.msrb.gmra.mxu2 %v4525_v6  ;;  %4857 = vmatpush.msra.mxu0 %v6005_v35  ;;  %v396_v36 = vadd.f32 %v7666_v23, %v327_v59  ;;  %v595_v35 = vadd.f32 %v7669_v31, %v6341_v61  ;;  %v7674_v61 = vld [vmem:[#allocation125_spill] sm:$0xff] }
 0xecb   :  { %4969 = vmatpush.msrb.mxu3 %v6022_v56 }
 0xecc   :  { %4971 = vmatmul.f32.vlgmr.msrb.gmra.mxu3 %v4525_v6  ;;  %4860 = vmatpush.msra.mxu0 %v6025_v21  ;;  %v457_v48 = vadd.f32 %v7667_v14, %v396_v36  ;;  %v664_v5 = vadd.f32 %v7670_v49, %v595_v35  ;;  %v5007_v6 = vld [vmem:[#allocation6 + $0x20] sm:$0xff] }
 0xecd   :  { %v7114_v63 = vand.u32 4294901760, %v5007_v6  ;;  %5159 = vmatpush.msra.mxu3 %v7108_v20 }
 0xece   :  { %4863 = vmatpush.msra.mxu0 %v6039_v10  ;;  %v7668_v10 = vld [vmem:[#allocation92_spill] sm:$0xff]  ;;  %v729_v16 = vadd.f32 %v7671_v3, %v664_v5 }
 0xecf   :  { %4866 = vmatmul.f32.vlgmr.msra.gmra.mxu0 %v4526_v51  ;;  %v510_v34 = vadd.f32 %v7668_v10, %v457_v48  ;;  %v5006_v51 = vld [vmem:[#allocation6 + $0x18] sm:$0xff]  ;;  %v7132_v44 = vsub.f32 %v5007_v6, %v7114_v63  ;;  %5161 = vmatpush.msra.mxu3 %v7110_v7 }
 0xed0   :  { %v798_v12 = vadd.f32 %v7672_v54, %v729_v16  ;;  %v7116_v11 = vand.u32 4294901760, %v5006_v51  ;;  %5027 = vmatpush.msrb.mxu0 %v7108_v20 }
 0xed1   :  { %v5079_v14 = vand.u32 4294901760, %v7132_v44  ;;  %5163 = vmatpush.msra.mxu3 %v7112_v43 }
 0xed2   :  { %v859_v45 = vadd.f32 %v7673_v53, %v798_v12  ;;  %v7135_v58 = vsub.f32 %v5006_v51, %v7116_v11  ;;  %5029 = vmatpush.msrb.mxu0 %v7110_v7 }
 0xed3   :  { %5165 = vmatpush.msra.mxu3 %v7114_v63 }
 0xed4   :  { %v912_v62 = vadd.f32 %v7674_v61, %v859_v45  ;;  %5031 = vmatpush.msrb.mxu0 %v7112_v43 }
 0xed5   :  { %5167 = vmatpush.msra.mxu3 %v7116_v11 }
 0xed6   :  { %5033 = vmatpush.msrb.mxu0 %v7114_v63 }
 0xed8   :  { %5035 = vmatpush.msrb.mxu0 %v7116_v11 }
 0xf32   :  { %v4592_v57 = vpop.f32.mrf.mxu1 }
 0xf3a   :  { %v4531_v1 = vpop.f32.mrf.mxu0  ;;  %v4630_v27 = vpop.f32.mrf.mxu2 }
 0xf3b   :  { %v4593_v18 = vadd.f32 %v4592_v57, %v4531_v1  ;;  %v4735_v42 = vpop.f32.mrf.mxu1  ;;  %v7118_v57 = vand.u32 4294901760, %v5005_v50  ;;  %v5004_v1 = vld [vmem:[#allocation6 + $0x8] sm:$0xff] }
 0xf3c   :  { %v4661_v19 = vpop.f32.mrf.mxu3 }
 0xf3d   :  { %v4631_v38 = vadd.f32 %v4630_v27, %v4593_v18  ;;  %v5003_v18 = vld [vmem:[#allocation6] sm:$0xff]  ;;  %v5060_v27 = vsub.f32 %v5010_v46, %v7108_v20  ;;  %v7138_v59 = vsub.f32 %v5005_v50, %v7118_v57  ;;  %5037 = vmatpush.msrb.mxu0 %v7118_v57  ;;  %5169 = vmatpush.msra.mxu3 %v7118_v57 }
 0xf3f   :  { %v4662_v41 = vadd.f32 %v4661_v19, %v4631_v38  ;;  %v7122_v38 = vsub.f32 %v5009_v15, %v7110_v7  ;;  %v7125_v19 = vsub.f32 %v5008_v37, %v7112_v43  ;;  %v5061_v23 = vand.u32 4294901760, %v5060_v27  ;;  %5122 = vmatpush.msra.mxu2 %v5060_v27 }
 0xf40   :  { %v5091_v31 = vand.u32 4294901760, %v7138_v59 }
 0xf41   :  { %v5067_v36 = vand.u32 4294901760, %v7122_v38  ;;  %5125 = vmatpush.msra.mxu2 %v7122_v38 }
 0xf42   :  { %v5092_v3 = vsub.f32 %v7138_v59, %v5091_v31 }
 0xf43   :  { %v4768_v29 = vpop.f32.mrf.mxu2  ;;  %5128 = vmatpush.msra.mxu2 %v7125_v19 }
 0xf44   :  { %v4706_v56 = vpop.f32.mrf.mxu0  ;;  %v5093_v54 = vand.u32 4294901760, %v5092_v3 }
 0xf45   :  { %v4707_v55 = vadd.f32 %v4706_v56, %v4662_v41  ;;  %v4898_v39 = vpop.f32.mrf.mxu1  ;;  %v7129_v41 = vand.u32 4294901760, %v5004_v1  ;;  %v7143_v56 = vand.u32 4294901760, %v5003_v18  ;;  %5131 = vmatpush.msra.mxu2 %v7132_v44 }
 0xf46   :  { %v4829_v47 = vpop.f32.mrf.mxu3 }
 0xf47   :  { %v4736_v21 = vadd.f32 %v4735_v42, %v4707_v55  ;;  %v4830_v40 = vadd.f32 %v4829_v47, %v4768_v29  ;;  %v5073_v42 = vand.u32 4294901760, %v7125_v19  ;;  %v7147_v48 = vsub.f32 %v5004_v1, %v7129_v41  ;;  %5134 = vmatpush.msra.mxu2 %v7135_v58  ;;  %5039 = vmatpush.msrb.mxu0 %v7129_v41 }
 0xf48   :  { %v5062_v55 = vsub.f32 %v5060_v27, %v5061_v23  ;;  %v5068_v29 = vsub.f32 %v7122_v38, %v5067_v36  ;;  %v5080_v47 = vsub.f32 %v7132_v44, %v5079_v14  ;;  %5171 = vmatpush.msra.mxu3 %v7129_v41 }
 0xf49   :  { %v4975_v2 = vadd.f32 %v4736_v21, %v510_v34  ;;  %v5074_v10 = vsub.f32 %v7125_v19, %v5073_v42  ;;  %v5085_v34 = vand.u32 4294901760, %v7135_v58  ;;  %5137 = vmatpush.msra.mxu2 %v7138_v59  ;;  %5041 = vmatpush.msrb.mxu0 %v7143_v56 }
 0xf4a   :  { %v5063_v35 = vand.u32 4294901760, %v5062_v55  ;;  %v5069_v21 = vand.u32 4294901760, %v5068_v29  ;;  %5173 = vmatpush.msra.mxu3 %v7143_v56 }
 0xf4b   :  { %v4977_v60 = vmul.f32 0.5, %v4975_v2  ;;  %v5102_v2 = vsub.f32 %v5003_v18, %v7143_v56  ;;  %v5075_v49 = vand.u32 4294901760, %v5074_v10  ;;  %v5086_v5 = vsub.f32 %v7135_v58, %v5085_v34  ;;  %5140 = vmatpush.msra.mxu2 %v7147_v48  ;;  %5192 = vmatpush.msra.mxu0 %v5061_v23 }
 0xf4c   :  { %v4867_v17 = vpop.f32.mrf.mxu0  ;;  %5064 = vmatpush.msrb.mxu1 %v5063_v35 }
 0xf4d   :  { %v4868_v9 = vadd.f32 %v4867_v17, %v4830_v40  ;;  %v4943_v26 = vpop.f32.mrf.mxu2  ;;  %v5097_v40 = vand.u32 4294901760, %v7147_v48  ;;  %v5081_v17 = vand.u32 4294901760, %v5080_v47  ;;  %v5103_v16 = vand.u32 4294901760, %v5102_v2  ;;  %5143 = vmatpush.msra.mxu2 %v5102_v2  ;;  %5196 = vmatpush.msra.mxu0 %v5067_v36 }
 0xf4e   :  { %5070 = vmatpush.msrb.mxu1 %v5069_v21 }
 0xf4f   :  { %v4899_v24 = vadd.f32 %v4898_v39, %v4868_v9  ;;  %v4972_v52 = vpop.f32.mrf.mxu3  ;;  %v5087_v9 = vand.u32 4294901760, %v5086_v5  ;;  %v5098_v39 = vsub.f32 %v7147_v48, %v5097_v40  ;;  %v5104_v12 = vsub.f32 %v5102_v2, %v5103_v16  ;;  %5200 = vmatpush.msra.mxu0 %v5073_v42 }
 0xf50   :  { %5076 = vmatpush.msrb.mxu1 %v5075_v49 }
 0xf51   :  { %v4944_v4 = vadd.f32 %v4943_v26, %v4899_v24  ;;  %v5099_v24 = vand.u32 4294901760, %v5098_v39  ;;  %v5105_v53 = vand.u32 4294901760, %v5104_v12  ;;  %5204 = vmatpush.msra.mxu0 %v5079_v14 }
 0xf52   :  { %5082 = vmatpush.msrb.mxu1 %v5081_v17 }
 0xf53   :  { %v4973_v0 = vadd.f32 %v4972_v52, %v4944_v4  ;;  %5208 = vmatpush.msra.mxu0 %v5085_v34 }
 0xf54   :  { %5088 = vmatpush.msrb.mxu1 %v5087_v9 }
 0xf55   :  { %v7100_v8 = vadd.f32 %v4973_v0, %v912_v62  ;;  %5212 = vmatpush.msra.mxu0 %v5091_v31 }
 0xf56   :  { %5094 = vmatpush.msrb.mxu1 %v5093_v54 }
 0xf57   :  { %5348 = vtanh.f32 %v7100_v8  ;;  %5216 = vmatpush.msra.mxu0 %v5097_v40 }
 0xf58   :  { %5350 = vtanh.f32 %v4977_v60  ;;  %5100 = vmatpush.msrb.mxu1 %v5099_v24 }
 0xf59   :  { %5220 = vmatpush.msra.mxu0 %v5103_v16 }
 0xf5a   :  { %5106 = vmatpush.msrb.mxu1 %v5105_v53 }
 0xf5c   :  { %5235 = vmatpush.msra.mxu1 %v7108_v20 }
 0xf5d   :  { %v5349_v22 = vpop.eup %5348 }
 0xf5e   :  { %4988 = vrot.lane.b32.xlu0 %v5349_v22, %s5441_s3  ;;  %v5351_v32 = vpop.eup %5350  ;;  %5237 = vmatpush.msra.mxu1 %v7110_v7 }
 0xf5f   :  { %v4981_v33 = vmul.f32 0.5, %v5351_v32 }
 0xf60   :  { %5239 = vmatpush.msra.mxu1 %v7112_v43 }
 0xf61   :  { %v7104_v13 = vadd.f32 0.5, %v4981_v33 }
 0xf62   :  { %5241 = vmatpush.msra.mxu1 %v7114_v63 }
 0xf63   :  { %v4986_v26 = vmul.f32 %v7104_v13, %v7051_v25  ;;  %v4978_v25 = vmul.f32 0.5, %v7100_v8  ;;  %v5291_v8 = vld [vmem:[%s7202_s5] ss:$0 sm:$0xff] }
 0xf64   :  { %5243 = vmatpush.msra.mxu1 %v7116_v11 }
 0xf66   :  { %5245 = vmatpush.msra.mxu1 %v7118_v57 }
 0xf68   :  { %5247 = vmatpush.msra.mxu1 %v7129_v41 }
 0xf6a   :  { %5249 = vmatpush.msra.mxu1 %v7143_v56 }
 0xfd0   :  { %v4989_v28 = vpop.permute.xlu0 %4988 }
 0xfd1   :  { %v4991_v30 = vmul.f32 %v4989_v28, %v7104_v13 }
 0xfd3   :  { %4993 = vrot.lane.b32.xlu1 %v4991_v30, %s5441_s3 }
0x1045   :  { %v4994_v45 = vpop.permute.xlu1 %4993 }
0x1046   :  { %v4996_v4 = vadd.f32 %v4994_v45, %v4986_v26 }
0x1048   :  { %5352 = vtanh.f32 %v4996_v4 }
0x1049   :  { %5354 = vtanh.f32 %v4978_v25 }
0x104e   :  { %v5353_v52 = vpop.eup %5352 }
0x104f   :  { %4999 = vrot.lane.b32.xlu2 %v5353_v52, %s5441_s3  ;;  %v5355_v61 = vpop.eup %5354 }
0x1050   :  { %v4982_v62 = vmul.f32 0.5, %v5355_v61 }
0x1052   :  { %v4984_v0 = vadd.f32 0.5, %v4982_v62 }
0x10a9   :  { %v5000_v22 = vpop.permute.xlu2 %4999 }
0x10aa   :  { %v5002_v60 = vmul.f32 %v5000_v22, %v4984_v0 }
0x10ac   :  { %v5016_v32 = vsel %vm948_vm2, %v5002_v60, 0 }
0x10ad   :  { %v5042_v33 = vand.u32 4294901760, %v5016_v32 }
0x10af   :  { %v5043_v13 = vsub.f32 %v5016_v32, %v5042_v33  ;;  %5108 = vmatmul.f32.vlgmr.msrb.gmra.mxu1 %v5042_v33 }
0x10b1   :  { %v5044_v28 = vand.u32 4294901760, %v5043_v13  ;;  %5146 = vmatmul.f32.vlgmr.msra.gmra.mxu2 %v5043_v13 }
0x10b3   :  { %v5045_v30 = vsub.f32 %v5043_v13, %v5044_v28  ;;  %5177 = vmatmul.f32.vlgmr.msra.gmra.mxu3 %v5044_v28 }
0x10b5   :  { %v5046_v46 = vand.u32 4294901760, %v5045_v30 }
0x10b7   :  { %5047 = vmatmul.f32.vlgmr.msrb.gmra.mxu0 %v5046_v46  ;;  %5251 = vmatmul.f32.vlgmr.msra.gmra.mxu1 %v5042_v33 }
0x10bf   :  { %5222 = vmatmul.f32.vlgmr.msra.gmra.mxu0 %v5042_v33 }
0x112c   :  { %v5109_v15 = vpop.f32.mrf.mxu1 }
0x1134   :  { %v5048_v37 = vpop.f32.mrf.mxu0  ;;  %v5147_v43 = vpop.f32.mrf.mxu2 }
0x1135   :  { %v5049_v20 = vadd.f32 %v5291_v8, %v5048_v37  ;;  %v5252_v57 = vpop.f32.mrf.mxu1 }
0x1136   :  { %v5178_v51 = vpop.f32.mrf.mxu3 }
0x1137   :  { %v5110_v7 = vadd.f32 %v5109_v15, %v5049_v20 }
0x1139   :  { %v5148_v6 = vadd.f32 %v5147_v43, %v5110_v7 }
0x113b   :  { %v5179_v50 = vadd.f32 %v5178_v51, %v5148_v6 }
0x113c   :  { %v5223_v63 = vpop.f32.mrf.mxu0 }
0x113d   :  { %v5224_v11 = vadd.f32 %v5223_v63, %v5179_v50 }
0x113f   :  { %v5253_v1 = vadd.f32 %v5252_v57, %v5224_v11 }
0x1141   :  { %5255 = vst [vmem:[#allocation8] sm:$0xff] %v5253_v1 }
0x1142   :  { %5266 = dma.vmem_to_hbm [thread:$0]  %s5262_s18, 128, %s5264_s21, [#allocation5]  }
0x1143   :  { %5432 = dma.done.wait [#allocation5], 128  }
0x1144   :  { %5433 = vsyncadd [#allocation5], 4294967168 }
0x1145   :  { %5271 = vsyncpa [#allocation4], 1 }
0x1146   :  { %5272 = vsyncpa [#allocation7], 1 }
0x1147   :  { %5273 = vsyncpa [#allocation5], 1 }

</bundles_post_ra>
